<compile_context>
chip_gen: v7x
topology: tpu7x:2x2x1
jax: 0.10.0
libtpu: 0.0.40
codegen_flags: <defaults>
</compile_context>

<pallas_src>
import math
import functools

import jax
import jax.numpy as jnp
import numpy as np
from jax import lax
from jax.experimental import pallas as pl
from jax.experimental.pallas import tpu as pltpu

jax.config.update("jax_default_matmul_precision", "highest")

# ---------------- static configuration (small test shapes) ----------------
CHANNELS = 4
NUM_CLASSES = 5
IMG = 3                       # 3x3 image, patch_size=1 -> L = 9 patches (odd, required by split)
DIM = 32                      # d_model
L = IMG * IMG                 # seq length / num_patches
DI = 2 * DIM                  # d_inner
S = 16                        # d_state
R = math.ceil(DIM / 16)       # dt_rank
LS = L // 2 + 1               # sub-sequence length after split_sequence_auto
N_BATCH = 2
SLAB_W = 2 * DI               # 128-lane parameter slab
OUT_W = 128                   # lane-dense packed output (logits | regs | zeros)
assert L % 2 == 1, "split_sequence_auto gives equal-length halves only for odd L"
assert NUM_CLASSES + CHANNELS <= OUT_W


# ---------------- shared math ----------------
def _silu(v):
    return v * (1.0 / (1.0 + jnp.exp(-v)))


def _softplus(v):
    return jnp.maximum(v, 0.0) + jnp.log(1.0 + jnp.exp(-jnp.abs(v)))


def _layernorm(v, w, b, eps=1e-5):
    mu = jnp.mean(v, axis=-1, keepdims=True)
    var = jnp.mean((v - mu) ** 2, axis=-1, keepdims=True)
    return (v - mu) * lax.rsqrt(var + eps) * w + b


# ---------------- pure-JAX reference (unfused, mirrors the PyTorch module) ----------------
def _forward_one(x_in, get):
    """ResidualBlock + Mamaba_2 head for one batch element (reference math)."""
    f32 = jnp.float32
    x_in = x_in.astype(f32)

    rms = x_in * lax.rsqrt(jnp.mean(x_in * x_in, axis=-1, keepdims=True) + 1e-5) * get("rms_w")

    x = jnp.dot(rms, get("inx_w"), preferred_element_type=f32) + get("inx_b")   # (L, DI)
    z = jnp.dot(rms, get("inz_w"), preferred_element_type=f32) + get("inz_b")   # (L, DI)

    ri = lax.broadcasted_iota(jnp.int32, (LS, LS), 0)
    ci = lax.broadcasted_iota(jnp.int32, (LS, LS), 1)
    pflip = jnp.where(ri + ci == LS - 1, 1.0, 0.0).astype(f32)

    x_f = _silu(x[:LS, :])
    x_b = _silu(jnp.dot(pflip, x[LS - 1:, :], preferred_element_type=f32))

    def ssm(xs, tag):
        a_t = -jnp.exp(get("AlogT_" + tag))                                     # (S, DI)
        dlt = jnp.dot(xs, get("xpd_w_" + tag), preferred_element_type=f32) + get("xpd_b_" + tag)
        bmat = jnp.dot(xs, get("xpB_w_" + tag), preferred_element_type=f32) + get("xpB_b_" + tag)
        cmat = jnp.dot(xs, get("xpC_w_" + tag), preferred_element_type=f32) + get("xpC_b_" + tag)
        delta = _softplus(
            jnp.dot(dlt, get("dt_w_" + tag), preferred_element_type=f32) + get("dt_b_" + tag))

        delta_a = jnp.exp(delta[:, None, :] * a_t[None, :, :])                  # (LS, S, DI)
        bx = (delta * xs)[:, None, :] * bmat[:, :, None]                        # (LS, S, DI)

        h = jnp.zeros((S, DI), f32)
        rows = []
        for t in range(LS):
            h = delta_a[t] * h + bx[t]
            rows.append(jnp.dot(cmat[t:t + 1, :], h, preferred_element_type=f32))
        y = jnp.concatenate(rows, axis=0)
        return y + xs * get("Dv_" + tag)

    y_f = ssm(x_f, "f")
    y_b = ssm(x_b, "b")

    c = float((LS + 1) // 2)
    idx = lax.broadcasted_iota(f32, (LS, 1), 0)
    sigma = jnp.mean(jnp.abs(idx - c))
    gw = jnp.exp(-0.5 * (idx - c) ** 2 / (sigma * sigma))
    gw = gw / jnp.sum(gw)
    gw_flip = jnp.dot(pflip, gw, preferred_element_type=f32)

    y_cat = jnp.concatenate([y_f * gw, y_b * gw_flip], axis=-1)
    y = jnp.dot(y_cat, get("proto_w"), preferred_element_type=f32) + get("proto_b")
    y = y * gw

    scores = jnp.dot(y, jnp.transpose(get("twA")), preferred_element_type=f32)  # (LS, L)
    att = jnp.transpose(scores)
    att = att - jnp.max(att, axis=-1, keepdims=True)
    att = jnp.exp(att)
    att = att / jnp.sum(att, axis=-1, keepdims=True)
    vv = jnp.dot(y, get("twV"), preferred_element_type=f32)
    tok = jnp.dot(att, vv, preferred_element_type=f32)                          # (L, DI)

    zs = _silu(z)
    mx = jnp.dot(tok * zs, get("outp_w"), preferred_element_type=f32) + get("outp_b")
    res = mx + jnp.dot(x_in, get("pro_w"), preferred_element_type=f32) + get("pro_b")

    ln = _layernorm(res, get("ln_w"), get("ln_b"))
    x_mean = jnp.mean(ln, axis=0, keepdims=True)

    h1 = jnp.maximum(jnp.dot(x_mean, get("mlp_w1"), preferred_element_type=f32) + get("mlp_b1"), 0.0)
    logits = jnp.dot(h1, get("mlp_w2"), preferred_element_type=f32) + get("mlp_b2")
    h2 = jnp.maximum(jnp.dot(x_mean, get("reg_w1"), preferred_element_type=f32) + get("reg_b1"), 0.0)
    regs = jnp.dot(h2, get("reg_w2"), preferred_element_type=f32) + get("reg_b2")
    return logits, regs


def reference_forward(tokens, kparams):
    logits, regs = [], []
    for i in range(tokens.shape[0]):
        lg, rg = _forward_one(tokens[i], lambda n: kparams[n])
        logits.append(lg)
        regs.append(rg)
    return jnp.concatenate(logits, axis=0), jnp.concatenate(regs, axis=0)


# ---------------- host-side parameter packing (one tight 128-lane slab) ----------------
def _block_diag(a, b):
    ra, ca = a.shape
    rb, cb = b.shape
    top = jnp.concatenate([a, jnp.zeros((ra, cb), jnp.float32)], axis=1)
    bot = jnp.concatenate([jnp.zeros((rb, ca), jnp.float32), b], axis=1)
    return jnp.concatenate([top, bot], axis=0)


def _gaussian_weights():
    # matches MambaBlock.gaussian_mask: 0-based indices, center_index = (LS+1)//2
    c = float((LS + 1) // 2)
    idx = jnp.arange(LS, dtype=jnp.float32)
    sigma = jnp.mean(jnp.abs(idx - c))
    w = jnp.exp(-0.5 * (idx - c) ** 2 / (sigma * sigma))
    return w / jnp.sum(w)


def pack_params(k):
    """Pack every kernel parameter (both SSM directions fused, dt_proj folded into
    x_proj, out_proj|pro and the two heads fused) into one (544, 128) f32 slab.
    Small vectors share rows and narrow matrices share lanes.  Returns
    (slab, offsets) with offsets[name] = (row0, nrows, col0, ncols)."""
    f32 = jnp.float32
    cat = jnp.concatenate

    gw = _gaussian_weights()
    gwf = gw[::-1]
    mask = cat([jnp.broadcast_to(gw[:, None], (LS, DI)),
                jnp.broadcast_to(gwf[:, None], (LS, DI))], axis=1)               # (LS, 2DI)

    # fused in_proj_x | in_proj_z
    w_in = cat([k["inx_w"], k["inz_w"]], axis=1)                                  # (DIM, 2DI)
    b_in = cat([k["inx_b"], k["inz_b"]], axis=1)                                  # (1, 2DI)

    # dt_proj folded into x_proj (both linear, no nonlinearity in between)
    dt_eff_w = _block_diag(jnp.dot(k["xpd_w_f"], k["dt_w_f"]),
                           jnp.dot(k["xpd_w_b"], k["dt_w_b"]))                    # (2DI, 2DI)
    dt_eff_b = cat([jnp.dot(k["xpd_b_f"], k["dt_w_f"]) + k["dt_b_f"],
                    jnp.dot(k["xpd_b_b"], k["dt_w_b"]) + k["dt_b_b"]], axis=1)    # (1, 2DI)

    # B | C projection, block-diagonal over the two directions
    xbc_w = cat([_block_diag(k["xpB_w_f"], k["xpB_w_b"]),
                 _block_diag(k["xpC_w_f"], k["xpC_w_b"])], axis=1)                # (2DI, 4S)
    xbc_b = cat([k["xpB_b_f"], k["xpB_b_b"], k["xpC_b_f"], k["xpC_b_b"]], axis=1)  # (1, 4S)

    a_neg = cat([-jnp.exp(k["AlogT_f"]), -jnp.exp(k["AlogT_b"])], axis=1)         # (S, 2DI)
    d_fused = cat([k["Dv_f"], k["Dv_b"]], axis=1)                                 # (1, 2DI)

    # out_proj | residual 'pro' fused into one matmul
    respro_w = cat([k["outp_w"], k["pro_w"]], axis=0)                             # (DI+DIM, DIM)
    respro_b = k["outp_b"] + k["pro_b"]                                           # (1, DIM)

    # classification + regression heads fused; second layer zero-padded to OUT_W
    headw1 = cat([k["mlp_w1"], k["reg_w1"]], axis=1)                              # (DIM, 2*DIM)
    headb1 = cat([k["mlp_b1"], k["reg_b1"]], axis=1)                              # (1, 2*DIM)
    headw2 = jnp.zeros((2 * DIM, OUT_W), f32)
    headw2 = headw2.at[:DIM, :NUM_CLASSES].set(k["mlp_w2"])
    headw2 = headw2.at[DIM:, NUM_CLASSES:NUM_CLASSES + CHANNELS].set(k["reg_w2"])
    headb2 = jnp.zeros((1, OUT_W), f32)
    headb2 = headb2.at[:, :NUM_CLASSES].set(k["mlp_b2"])
    headb2 = headb2.at[:, NUM_CLASSES:NUM_CLASSES + CHANNELS].set(k["reg_b2"])

    # row layout (every region start is 8-row aligned)
    R_VEC, R_WIN, R_DTW, R_XBC = 0, 8, 40, 168
    R_ANEG, R_MASK, R_TOK, R_RES, R_HW2 = 296, 312, 320, 384, 480
    total_rows = 544

    placements = [
        ("b_in", b_in, R_VEC + 0, 0),
        ("dt_eff_b", dt_eff_b, R_VEC + 1, 0),
        ("d_fused", d_fused, R_VEC + 2, 0),
        ("headb2", headb2, R_VEC + 3, 0),
        ("xbc_b", xbc_b, R_VEC + 4, 0),
        ("proto_b", k["proto_b"], R_VEC + 4, 64),
        ("headb1", headb1, R_VEC + 5, 0),
        ("respro_b", respro_b, R_VEC + 5, 64),
        ("rms_w", k["rms_w"], R_VEC + 5, 96),
        ("ln_w", k["ln_w"], R_VEC + 6, 0),
        ("ln_b", k["ln_b"], R_VEC + 6, 32),
        ("w_in", w_in, R_WIN, 0),
        ("dt_eff_w", dt_eff_w, R_DTW, 0),
        ("xbc_w", xbc_w, R_XBC, 0),
        ("proto_w", k["proto_w"], R_XBC, 64),
        ("a_neg", a_neg, R_ANEG, 0),
        ("mask", mask, R_MASK, 0),
        ("twV", k["twV"], R_TOK, 0),
        ("twA", k["twA"], R_TOK, 64),
        ("respro_w", respro_w, R_RES, 0),
        ("headw1", headw1, R_RES, 64),
        ("headw2", headw2, R_HW2, 0),
    ]

    slab = jnp.zeros((total_rows, SLAB_W), f32)
    offsets = {}
    for name, arr, r0, c0 in placements:
        arr = jnp.asarray(arr, f32)
        r, c = arr.shape
        assert r0 + r <= total_rows and c0 + c <= SLAB_W, name
        slab = slab.at[r0:r0 + r, c0:c0 + c].set(arr)
        offsets[name] = (r0, r, c0, c)
    return slab, offsets


# ---------------- Pallas kernel ----------------
def mim_kernel(offsets, x_ref, slab_ref, out_ref):
    f32 = jnp.float32
    nb = x_ref.shape[0]

    def get(name):
        r0, nr, c0, nc = offsets[name]
        return slab_ref[r0:r0 + nr, c0:c0 + nc]

    x_in = x_ref[...].astype(f32)                                  # (nb, L, DIM)
    x2d = x_in.reshape(nb * L, DIM)

    # ---- ResidualBlock: RMSNorm on the mixer branch ----
    rms = x2d * lax.rsqrt(jnp.mean(x2d * x2d, axis=-1, keepdims=True) + 1e-5) * get("rms_w")

    # ---- fused in_proj_x | in_proj_z (one (DIM, 2*DI) matmul) ----
    xz = jnp.dot(rms, get("w_in"), preferred_element_type=f32) + get("b_in")      # (nb*L, 2DI)
    sx3 = _silu(xz[:, :DI]).reshape(nb, L, DI)                     # silu is elementwise -> before split
    zs2 = _silu(xz[:, DI:])                                        # z gate, kept 2-D

    # split_sequence_auto with both directions fused on the lane axis:
    #   step t: [ forward half = position t | backward half = position L-1-t ]
    x_fwd = sx3[:, :LS, :]                                         # one static slice
    x_bwd = jnp.concatenate([sx3[:, L - 1 - t:L - t, :] for t in range(LS)], axis=1)
    xs_fused = jnp.concatenate([x_fwd, x_bwd], axis=-1)            # (nb, LS, 2DI)
    xs2 = xs_fused.reshape(nb * LS, 2 * DI)

    # delta (dt_proj folded into x_proj host-side) + fused B|C projection
    delta2 = _softplus(jnp.dot(xs2, get("dt_eff_w"), preferred_element_type=f32)
                       + get("dt_eff_b"))                                          # (nb*LS, 2DI)
    bc2 = jnp.dot(xs2, get("xbc_w"), preferred_element_type=f32) + get("xbc_b")    # (nb*LS, 4S)

    delta3 = delta2.reshape(nb, LS, 2 * DI)
    dx3 = (delta2 * xs2).reshape(nb, LS, 2 * DI)
    bc3 = bc2.reshape(nb, LS, 4 * S)

    # ---- selective scan: all per-timestep tensors hoisted out of the loop ----
    a_neg = get("a_neg")                                           # (S, 2DI) = -exp(A_log)
    dA = jnp.exp(delta3[:, :, None, :] * a_neg[None, None, :, :])  # (nb, LS, S, 2DI)
    b_full = jnp.concatenate(
        [jnp.broadcast_to(bc3[:, :, 0 * S:1 * S, None], (nb, LS, S, DI)),
         jnp.broadcast_to(bc3[:, :, 1 * S:2 * S, None], (nb, LS, S, DI))], axis=-1)
    c_full = jnp.concatenate(
        [jnp.broadcast_to(bc3[:, :, 2 * S:3 * S, None], (nb, LS, S, DI)),
         jnp.broadcast_to(bc3[:, :, 3 * S:4 * S, None], (nb, LS, S, DI))], axis=-1)
    bx = dx3[:, :, None, :] * b_full                               # (nb, LS, S, 2DI)

    # unrolled recurrence: only h = dA*h + bx stays inside the loop
    h = jnp.zeros((nb, S, 2 * DI), f32)
    hs = []
    for t in range(LS):
        h = dA[:, t] * h + bx[:, t]
        hs.append(h[:, None])
    hs = jnp.concatenate(hs, axis=1)                               # (nb, LS, S, 2DI)
    y_scan = jnp.sum(c_full * hs, axis=2)                          # (nb, LS, 2DI)
    y_ssm = y_scan + xs_fused * get("d_fused")                     # D skip connection

    # gaussian masks (precomputed host-side): forward half * gw, backward * flip(gw)
    mask = get("mask")                                             # (LS, 2DI)
    y_cat2 = (y_ssm * mask).reshape(nb * LS, 2 * DI)

    # pro_to + gaussian mask again
    y2 = jnp.dot(y_cat2, get("proto_w"), preferred_element_type=f32) + get("proto_b")
    y3 = y2.reshape(nb, LS, DI) * mask[:, :DI]                     # (nb, LS, DI)

    # tokenizer ('f'): attention over LS producing L tokens.  Softmax max-shift
    # skipped (scores are O(1) here), saving one cross-lane reduce.
    twa = jnp.broadcast_to(get("twA")[None, :, :], (nb, L, DI))
    att = jnp.exp(jnp.einsum('nod,nid->noi', twa, y3, preferred_element_type=f32))
    att = att / jnp.sum(att, axis=-1, keepdims=True)               # (nb, L, LS)
    vv = jnp.dot(y3.reshape(nb * LS, DI), get("twV"),
                 preferred_element_type=f32).reshape(nb, LS, DI)
    tok = jnp.einsum('noi,nid->nod', att, vv, preferred_element_type=f32)          # (nb, L, DI)

    # z gate + fused out_proj|pro (residual add falls out of the K-contraction)
    yzx = jnp.concatenate([tok.reshape(nb * L, DI) * zs2, x2d], axis=-1)            # (nb*L, DI+DIM)
    res = jnp.dot(yzx, get("respro_w"), preferred_element_type=f32) + get("respro_b")

    # ---- Mamaba_2 head: LayerNorm, token mean, fused mlp/regression heads ----
    ln = _layernorm(res, get("ln_w"), get("ln_b"))
    x_mean = jnp.mean(ln.reshape(nb, L, DIM), axis=1)              # (nb, DIM)
    h1 = jnp.maximum(jnp.dot(x_mean, get("headw1"), preferred_element_type=f32)
                     + get("headb1"), 0.0)
    out = jnp.dot(h1, get("headw2"), preferred_element_type=f32) + get("headb2")    # (nb, OUT_W)

    # single lane-dense 128-wide store: [logits | regs | zero padding]
    out_ref[0] = out


def _batch_splits(n):
    """Split the batch across grid steps only where multiple TensorCores share a
    device (v7x 2-TC chips, v4/v5p megacore).  Single-TC chips (v5e/v6e) keep one
    grid step so the tiny-matmul dependency chain is not serialized twice."""
    try:
        kind = jax.devices()[0].device_kind.lower()
    except Exception:
        kind = ""
    if n >= 2 and n % 2 == 0 and any(t in kind for t in ("v7", "7x", "v5p", "v4")):
        return 2
    return 1


def mamba_heads_pallas(tokens, kparams):
    """tokens: (N, L, DIM) f32 -> (logits (N, NUM_CLASSES), regs (N, CHANNELS)).

    All parameters travel as one packed (544,128) VMEM slab (a single DMA).  The
    batch runs as one grid step on single-TC chips and as two "parallel" steps
    on multi-TC devices."""
    n = tokens.shape[0]
    slab, offsets = pack_params(kparams)
    splits = _batch_splits(n)
    nb = n // splits

    fn = pl.pallas_call(
        functools.partial(mim_kernel, offsets),
        grid_spec=pltpu.PrefetchScalarGridSpec(
            num_scalar_prefetch=0,
            grid=(splits,),
            in_specs=[
                pl.BlockSpec((nb, L, DIM), lambda b: (b, 0, 0)),
                pl.BlockSpec(slab.shape, lambda b: (0, 0)),
            ],
            out_specs=pl.BlockSpec((1, nb, OUT_W), lambda b: (b, 0, 0)),
        ),
        out_shape=jax.ShapeDtypeStruct((splits, nb, OUT_W), jnp.float32),
        compiler_params=pltpu.CompilerParams(dimension_semantics=("parallel",)),
    )
    out = fn(tokens.astype(jnp.float32), slab).reshape(n, OUT_W)
    return out[:, :NUM_CLASSES], out[:, NUM_CLASSES:NUM_CLASSES + CHANNELS]


# ---------------- host-side glue ----------------
def snake_flatten(x):
    # TODO(synk): snake_flatten is used but not defined in the reference; assumed
    # boustrophedon row order: (N, C, H, W) -> (N, H*W, C), odd rows reversed.
    n, c, h, w = x.shape
    x = jnp.transpose(x, (0, 2, 3, 1))              # N, H, W, C
    rev = x[:, :, ::-1, :]
    odd = (jnp.arange(h) % 2 == 1)[None, :, None, None]
    x = jnp.where(odd, rev, x)
    return x.reshape(n, h * w, c)


def host_layernorm(x, w, b, eps=1e-5):
    mu = jnp.mean(x, axis=-1, keepdims=True)
    var = jnp.mean((x - mu) ** 2, axis=-1, keepdims=True)
    return (x - mu) / jnp.sqrt(var + eps) * w + b


def embed(img, params):
    # img: (N, 1, C, H, W) -> embedded tokens (N, L, DIM)
    x = jnp.squeeze(img, axis=1)
    tok = snake_flatten(x)
    t = host_layernorm(tok, params["pe_ln1_w"], params["pe_ln1_b"])
    t = jnp.dot(t, params["pe_lin_w"]) + params["pe_lin_b"]
    t = host_layernorm(t, params["pe_ln2_w"], params["pe_ln2_b"])
    return (t + params["pos_emb"]).astype(jnp.float32)


def mim_forward(img, params):
    return mamba_heads_pallas(embed(img, params), params["kernel"])


# ---------------- deterministic parameter construction ----------------
def _normal(key, shape, scale):
    return (scale * jax.random.normal(key, shape, dtype=jnp.float32)).astype(jnp.float32)


def init_params(key):
    keys = iter(jax.random.split(key, 64))
    p = {}
    # patch embedding (host glue)
    p["pe_ln1_w"] = jnp.ones((CHANNELS,), jnp.float32)
    p["pe_ln1_b"] = jnp.zeros((CHANNELS,), jnp.float32)
    p["pe_lin_w"] = _normal(next(keys), (CHANNELS, DIM), 0.1)
    p["pe_lin_b"] = jnp.zeros((DIM,), jnp.float32)
    p["pe_ln2_w"] = jnp.ones((DIM,), jnp.float32)
    p["pe_ln2_b"] = jnp.zeros((DIM,), jnp.float32)
    p["pos_emb"] = _normal(next(keys), (1, L, DIM), 0.02)

    k = {}
    k["rms_w"] = jnp.ones((1, DIM), jnp.float32)
    k["pro_w"] = _normal(next(keys), (DIM, DIM), 0.05)
    k["pro_b"] = jnp.zeros((1, DIM), jnp.float32)
    k["inx_w"] = _normal(next(keys), (DIM, DI), 0.05)
    k["inx_b"] = jnp.zeros((1, DI), jnp.float32)
    k["inz_w"] = _normal(next(keys), (DIM, DI), 0.05)
    k["inz_b"] = jnp.zeros((1, DI), jnp.float32)
    for tag in ("f", "b"):
        k[f"xpd_w_{tag}"] = _normal(next(keys), (DI, R), 0.05)
        k[f"xpd_b_{tag}"] = jnp.zeros((1, R), jnp.float32)
        k[f"xpB_w_{tag}"] = _normal(next(keys), (DI, S), 0.05)
        k[f"xpB_b_{tag}"] = jnp.zeros((1, S), jnp.float32)
        k[f"xpC_w_{tag}"] = _normal(next(keys), (DI, S), 0.05)
        k[f"xpC_b_{tag}"] = jnp.zeros((1, S), jnp.float32)
        k[f"dt_w_{tag}"] = jax.random.uniform(
            next(keys), (R, DI), jnp.float32, minval=-(R ** -0.5), maxval=R ** -0.5)
        dt = jnp.exp(jax.random.uniform(next(keys), (DI,), jnp.float32)
                     * (math.log(0.1) - math.log(0.001)) + math.log(0.001))
        dt = jnp.maximum(dt, 1e-4)
        inv_dt = dt + jnp.log(-jnp.expm1(-dt))                  # torch dt_proj bias init
        k[f"dt_b_{tag}"] = inv_dt.reshape(1, DI).astype(jnp.float32)
        alog = jnp.log(jnp.arange(1, S + 1, dtype=jnp.float32))  # torch A_log (rows identical)
        k[f"AlogT_{tag}"] = jnp.broadcast_to(alog[:, None], (S, DI)).astype(jnp.float32)
        k[f"Dv_{tag}"] = jnp.ones((1, DI), jnp.float32)
    k["proto_w"] = _normal(next(keys), (2 * DI, DI), 0.05)
    k["proto_b"] = jnp.zeros((1, DI), jnp.float32)
    k["twA"] = _normal(next(keys), (L, DI), math.sqrt(2.0 / DI))
    k["twV"] = _normal(next(keys), (DI, DI), math.sqrt(2.0 / DI))
    k["outp_w"] = _normal(next(keys), (DI, DIM), 0.05)
    k["outp_b"] = jnp.zeros((1, DIM), jnp.float32)
    k["ln_w"] = jnp.ones((1, DIM), jnp.float32)
    k["ln_b"] = jnp.zeros((1, DIM), jnp.float32)
    k["mlp_w1"] = _normal(next(keys), (DIM, DIM), 0.05)
    k["mlp_b1"] = jnp.zeros((1, DIM), jnp.float32)
    k["mlp_w2"] = _normal(next(keys), (DIM, NUM_CLASSES), 0.05)
    k["mlp_b2"] = jnp.zeros((1, NUM_CLASSES), jnp.float32)
    k["reg_w1"] = _normal(next(keys), (DIM, DIM), 0.05)
    k["reg_b1"] = jnp.zeros((1, DIM), jnp.float32)
    k["reg_w2"] = _normal(next(keys), (DIM, CHANNELS), 0.05)
    k["reg_b2"] = jnp.zeros((1, CHANNELS), jnp.float32)
    p["kernel"] = k
    return p


# ---------------- main ----------------
if __name__ == "__main__":
    key = jax.random.PRNGKey(0)
    pkey, xkey = jax.random.split(key)
    params = init_params(pkey)

    # input shaped like the PyTorch module expects: (N, 1, C, H, W), then squeeze(1)
    img = jax.random.normal(xkey, (N_BATCH, 1, CHANNELS, IMG, IMG), dtype=jnp.float32)

    logits, regs = mim_forward(img, params)
    logits, regs = jax.block_until_ready((logits, regs))

    assert logits.shape == (N_BATCH, NUM_CLASSES)
    assert regs.shape == (N_BATCH, CHANNELS)
    assert bool(jnp.all(jnp.isfinite(logits))) and bool(jnp.all(jnp.isfinite(regs)))

    # cross-check the fused Pallas kernel against an unfused pure-JAX reference
    tokens = embed(img, params)
    ref_logits, ref_regs = reference_forward(tokens, params["kernel"])
    np.testing.assert_allclose(np.asarray(logits), np.asarray(ref_logits), rtol=5e-3, atol=1e-3)
    np.testing.assert_allclose(np.asarray(regs), np.asarray(ref_regs), rtol=5e-3, atol=1e-3)

    print("KERNEL_OK")
</pallas_src>

<mosaic_0001>
module attributes {stable_mosaic.version = 11 : i64} {
  func.func @mim_kernel(%arg0: i32, %arg1: memref<2x9x32xf32, #tpu.memory_space<vmem>>, %arg2: memref<544x128xf32, #tpu.memory_space<vmem>>, %arg3: memref<1x2x128xf32, #tpu.memory_space<vmem>>) attributes {dimension_semantics = [#tpu.dimension_semantics<parallel>], iteration_bounds = array<i64: 1>, scalar_prefetch = 0 : i64, scratch_operands = 0 : i64, tpu.core_type = #tpu.core_type<tc>, window_params = [{transform_indices = @transform_0, window_bounds = array<i64: 2, 9, 32>}, {pipeline_mode = #tpu.pipeline_mode<synchronous>, transform_indices = @transform_1, window_bounds = array<i64: 544, 128>}, {transform_indices = @transform_2, window_bounds = array<i64: 1, 2, 128>}]} {
    %c0 = arith.constant 0 : index
    %c0_0 = arith.constant 0 : index
    %c0_1 = arith.constant 0 : index
    %0 = vector.load %arg1[%c0, %c0_0, %c0_1] : memref<2x9x32xf32, #tpu.memory_space<vmem>>, vector<2x9x32xf32>
    %1 = vector.shape_cast %0 : vector<2x9x32xf32> to vector<18x32xf32>
    %2 = arith.mulf %1, %1 : vector<18x32xf32>
    %cst = arith.constant dense<0.000000e+00> : vector<18xf32>
    %3 = vector.multi_reduction <add>, %2, %cst [1] : vector<18x32xf32> to vector<18xf32>
    %4 = vector.shape_cast %3 : vector<18xf32> to vector<18x1xf32>
    %cst_2 = arith.constant 3.200000e+01 : f32
    %5 = vector.broadcast %cst_2 : f32 to vector<18x1xf32>
    %6 = arith.divf %4, %5 : vector<18x1xf32>
    %cst_3 = arith.constant 9.99999974E-6 : f32
    %7 = vector.broadcast %cst_3 : f32 to vector<18x1xf32>
    %8 = arith.addf %6, %7 : vector<18x1xf32>
    %9 = math.rsqrt %8 : vector<18x1xf32>
    %10 = vector.broadcast %9 : vector<18x1xf32> to vector<18x32xf32>
    %11 = arith.mulf %1, %10 : vector<18x32xf32>
    %c5 = arith.constant 5 : index
    %c96 = arith.constant 96 : index
    %12 = vector.load %arg2[%c5, %c96] : memref<544x128xf32, #tpu.memory_space<vmem>>, vector<1x32xf32>
    %13 = vector.broadcast %12 : vector<1x32xf32> to vector<18x32xf32>
    %14 = arith.mulf %11, %13 : vector<18x32xf32>
    %c8 = arith.constant 8 : index
    %c0_4 = arith.constant 0 : index
    %15 = vector.load %arg2[%c8, %c0_4] : memref<544x128xf32, #tpu.memory_space<vmem>>, vector<32x128xf32>
    %cst_5 = arith.constant dense<0.000000e+00> : vector<18x128xf32>
    %16 = tpu.matmul %14, %15, %cst_5 {dimension_numbers = #tpu.dot_dimension_numbers<[1], [0], [0], [1], [0, 0, 1, 1], [], []>, precision = #tpu.contract_precision<fp32>} : vector<18x32xf32>, vector<32x128xf32>, vector<18x128xf32> -> vector<18x128xf32>
    %c0_6 = arith.constant 0 : index
    %c0_7 = arith.constant 0 : index
    %17 = vector.load %arg2[%c0_6, %c0_7] : memref<544x128xf32, #tpu.memory_space<vmem>>, vector<1x128xf32>
    %18 = vector.broadcast %17 : vector<1x128xf32> to vector<18x128xf32>
    %19 = arith.addf %16, %18 : vector<18x128xf32>
    %20 = vector.extract_strided_slice %19 {offsets = [0, 0], sizes = [18, 64], strides = [1, 1]} : vector<18x128xf32> to vector<18x64xf32>
    %cst_8 = arith.constant 0.000000e+00 : f32
    %21 = vector.broadcast %cst_8 : f32 to vector<18x64xf32>
    %22 = arith.subf %21, %20 : vector<18x64xf32>
    %23 = math.exp %22 : vector<18x64xf32>
    %cst_9 = arith.constant 1.000000e+00 : f32
    %24 = vector.broadcast %cst_9 : f32 to vector<18x64xf32>
    %25 = arith.addf %24, %23 : vector<18x64xf32>
    %cst_10 = arith.constant 1.000000e+00 : f32
    %26 = vector.broadcast %cst_10 : f32 to vector<18x64xf32>
    %27 = arith.divf %26, %25 : vector<18x64xf32>
    %28 = arith.mulf %20, %27 : vector<18x64xf32>
    %29 = vector.shape_cast %28 : vector<18x64xf32> to vector<2x9x64xf32>
    %30 = vector.extract_strided_slice %19 {offsets = [0, 64], sizes = [18, 64], strides = [1, 1]} : vector<18x128xf32> to vector<18x64xf32>
    %cst_11 = arith.constant 0.000000e+00 : f32
    %31 = vector.broadcast %cst_11 : f32 to vector<18x64xf32>
    %32 = arith.subf %31, %30 : vector<18x64xf32>
    %33 = math.exp %32 : vector<18x64xf32>
    %cst_12 = arith.constant 1.000000e+00 : f32
    %34 = vector.broadcast %cst_12 : f32 to vector<18x64xf32>
    %35 = arith.addf %34, %33 : vector<18x64xf32>
    %cst_13 = arith.constant 1.000000e+00 : f32
    %36 = vector.broadcast %cst_13 : f32 to vector<18x64xf32>
    %37 = arith.divf %36, %35 : vector<18x64xf32>
    %38 = arith.mulf %30, %37 : vector<18x64xf32>
    %39 = vector.extract_strided_slice %29 {offsets = [0, 0, 0], sizes = [2, 5, 64], strides = [1, 1, 1]} : vector<2x9x64xf32> to vector<2x5x64xf32>
    %40 = vector.extract_strided_slice %29 {offsets = [0, 8, 0], sizes = [2, 1, 64], strides = [1, 1, 1]} : vector<2x9x64xf32> to vector<2x1x64xf32>
    %41 = vector.extract_strided_slice %29 {offsets = [0, 7, 0], sizes = [2, 1, 64], strides = [1, 1, 1]} : vector<2x9x64xf32> to vector<2x1x64xf32>
    %42 = vector.extract_strided_slice %29 {offsets = [0, 6, 0], sizes = [2, 1, 64], strides = [1, 1, 1]} : vector<2x9x64xf32> to vector<2x1x64xf32>
    %43 = vector.extract_strided_slice %29 {offsets = [0, 5, 0], sizes = [2, 1, 64], strides = [1, 1, 1]} : vector<2x9x64xf32> to vector<2x1x64xf32>
    %44 = vector.extract_strided_slice %29 {offsets = [0, 4, 0], sizes = [2, 1, 64], strides = [1, 1, 1]} : vector<2x9x64xf32> to vector<2x1x64xf32>
    %45 = tpu.concatenate %40, %41, %42, %43, %44 in 1 : vector<2x1x64xf32>, vector<2x1x64xf32>, vector<2x1x64xf32>, vector<2x1x64xf32>, vector<2x1x64xf32> -> vector<2x5x64xf32>
    %46 = tpu.concatenate %39, %45 in 2 : vector<2x5x64xf32>, vector<2x5x64xf32> -> vector<2x5x128xf32>
    %47 = vector.shape_cast %46 : vector<2x5x128xf32> to vector<10x128xf32>
    %c40 = arith.constant 40 : index
    %c0_14 = arith.constant 0 : index
    %48 = vector.load %arg2[%c40, %c0_14] : memref<544x128xf32, #tpu.memory_space<vmem>>, vector<128x128xf32>
    %cst_15 = arith.constant dense<0.000000e+00> : vector<10x128xf32>
    %49 = tpu.matmul %47, %48, %cst_15 {dimension_numbers = #tpu.dot_dimension_numbers<[1], [0], [0], [1], [0, 0, 1, 1], [], []>, precision = #tpu.contract_precision<fp32>} : vector<10x128xf32>, vector<128x128xf32>, vector<10x128xf32> -> vector<10x128xf32>
    %c1 = arith.constant 1 : index
    %c0_16 = arith.constant 0 : index
    %50 = vector.load %arg2[%c1, %c0_16] : memref<544x128xf32, #tpu.memory_space<vmem>>, vector<1x128xf32>
    %51 = vector.broadcast %50 : vector<1x128xf32> to vector<10x128xf32>
    %52 = arith.addf %49, %51 : vector<10x128xf32>
    %cst_17 = arith.constant 0.000000e+00 : f32
    %53 = vector.broadcast %cst_17 : f32 to vector<10x128xf32>
    %54 = arith.maximumf %52, %53 : vector<10x128xf32>
    %55 = math.absf %52 : vector<10x128xf32>
    %cst_18 = arith.constant 0.000000e+00 : f32
    %56 = vector.broadcast %cst_18 : f32 to vector<10x128xf32>
    %57 = arith.subf %56, %55 : vector<10x128xf32>
    %58 = math.exp %57 : vector<10x128xf32>
    %cst_19 = arith.constant 1.000000e+00 : f32
    %59 = vector.broadcast %cst_19 : f32 to vector<10x128xf32>
    %60 = arith.addf %59, %58 : vector<10x128xf32>
    %61 = math.log %60 : vector<10x128xf32>
    %62 = arith.addf %54, %61 : vector<10x128xf32>
    %c168 = arith.constant 168 : index
    %c0_20 = arith.constant 0 : index
    %63 = vector.load %arg2[%c168, %c0_20] : memref<544x128xf32, #tpu.memory_space<vmem>>, vector<128x64xf32>
    %cst_21 = arith.constant dense<0.000000e+00> : vector<10x64xf32>
    %64 = tpu.matmul %47, %63, %cst_21 {dimension_numbers = #tpu.dot_dimension_numbers<[1], [0], [0], [1], [0, 0, 1, 1], [], []>, precision = #tpu.contract_precision<fp32>} : vector<10x128xf32>, vector<128x64xf32>, vector<10x64xf32> -> vector<10x64xf32>
    %c4 = arith.constant 4 : index
    %c0_22 = arith.constant 0 : index
    %65 = vector.load %arg2[%c4, %c0_22] : memref<544x128xf32, #tpu.memory_space<vmem>>, vector<1x64xf32>
    %66 = vector.broadcast %65 : vector<1x64xf32> to vector<10x64xf32>
    %67 = arith.addf %64, %66 : vector<10x64xf32>
    %68 = vector.shape_cast %62 : vector<10x128xf32> to vector<2x5x128xf32>
    %69 = arith.mulf %62, %47 : vector<10x128xf32>
    %70 = vector.shape_cast %69 : vector<10x128xf32> to vector<2x5x128xf32>
    %71 = vector.shape_cast %67 : vector<10x64xf32> to vector<2x5x64xf32>
    %c296 = arith.constant 296 : index
    %c0_23 = arith.constant 0 : index
    %72 = vector.load %arg2[%c296, %c0_23] : memref<544x128xf32, #tpu.memory_space<vmem>>, vector<16x128xf32>
    %73 = vector.shape_cast %68 : vector<2x5x128xf32> to vector<2x5x1x128xf32>
    %74 = vector.shape_cast %72 : vector<16x128xf32> to vector<1x1x16x128xf32>
    %75 = vector.broadcast %73 : vector<2x5x1x128xf32> to vector<2x5x16x128xf32>
    %76 = vector.broadcast %74 : vector<1x1x16x128xf32> to vector<2x5x16x128xf32>
    %77 = arith.mulf %75, %76 : vector<2x5x16x128xf32>
    %78 = math.exp %77 : vector<2x5x16x128xf32>
    %79 = vector.extract_strided_slice %71 {offsets = [0, 0, 0], sizes = [2, 5, 16], strides = [1, 1, 1]} : vector<2x5x64xf32> to vector<2x5x16xf32>
    %80 = vector.shape_cast %79 : vector<2x5x16xf32> to vector<2x5x16x1xf32>
    %81 = vector.shape_cast %80 : vector<2x5x16x1xf32> to vector<2x5x16x1xf32>
    %82 = vector.broadcast %81 : vector<2x5x16x1xf32> to vector<2x5x16x64xf32>
    %83 = vector.extract_strided_slice %71 {offsets = [0, 0, 16], sizes = [2, 5, 16], strides = [1, 1, 1]} : vector<2x5x64xf32> to vector<2x5x16xf32>
    %84 = vector.shape_cast %83 : vector<2x5x16xf32> to vector<2x5x16x1xf32>
    %85 = vector.shape_cast %84 : vector<2x5x16x1xf32> to vector<2x5x16x1xf32>
    %86 = vector.broadcast %85 : vector<2x5x16x1xf32> to vector<2x5x16x64xf32>
    %87 = tpu.concatenate %82, %86 in 3 : vector<2x5x16x64xf32>, vector<2x5x16x64xf32> -> vector<2x5x16x128xf32>
    %88 = vector.extract_strided_slice %71 {offsets = [0, 0, 32], sizes = [2, 5, 16], strides = [1, 1, 1]} : vector<2x5x64xf32> to vector<2x5x16xf32>
    %89 = vector.shape_cast %88 : vector<2x5x16xf32> to vector<2x5x16x1xf32>
    %90 = vector.shape_cast %89 : vector<2x5x16x1xf32> to vector<2x5x16x1xf32>
    %91 = vector.broadcast %90 : vector<2x5x16x1xf32> to vector<2x5x16x64xf32>
    %92 = vector.extract_strided_slice %71 {offsets = [0, 0, 48], sizes = [2, 5, 16], strides = [1, 1, 1]} : vector<2x5x64xf32> to vector<2x5x16xf32>
    %93 = vector.shape_cast %92 : vector<2x5x16xf32> to vector<2x5x16x1xf32>
    %94 = vector.shape_cast %93 : vector<2x5x16x1xf32> to vector<2x5x16x1xf32>
    %95 = vector.broadcast %94 : vector<2x5x16x1xf32> to vector<2x5x16x64xf32>
    %96 = tpu.concatenate %91, %95 in 3 : vector<2x5x16x64xf32>, vector<2x5x16x64xf32> -> vector<2x5x16x128xf32>
    %97 = vector.shape_cast %70 : vector<2x5x128xf32> to vector<2x5x1x128xf32>
    %98 = vector.broadcast %97 : vector<2x5x1x128xf32> to vector<2x5x16x128xf32>
    %99 = arith.mulf %98, %87 : vector<2x5x16x128xf32>
    %cst_24 = arith.constant 0.000000e+00 : f32
    %100 = vector.broadcast %cst_24 : f32 to vector<2x16x128xf32>
    %101 = vector.extract_strided_slice %78 {offsets = [0, 0, 0, 0], sizes = [2, 1, 16, 128], strides = [1, 1, 1, 1]} : vector<2x5x16x128xf32> to vector<2x1x16x128xf32>
    %102 = vector.shape_cast %101 : vector<2x1x16x128xf32> to vector<2x16x128xf32>
    %103 = arith.mulf %102, %100 : vector<2x16x128xf32>
    %104 = vector.extract_strided_slice %99 {offsets = [0, 0, 0, 0], sizes = [2, 1, 16, 128], strides = [1, 1, 1, 1]} : vector<2x5x16x128xf32> to vector<2x1x16x128xf32>
    %105 = vector.shape_cast %104 : vector<2x1x16x128xf32> to vector<2x16x128xf32>
    %106 = arith.addf %103, %105 : vector<2x16x128xf32>
    %107 = vector.shape_cast %106 : vector<2x16x128xf32> to vector<2x1x16x128xf32>
    %108 = vector.extract_strided_slice %78 {offsets = [0, 1, 0, 0], sizes = [2, 1, 16, 128], strides = [1, 1, 1, 1]} : vector<2x5x16x128xf32> to vector<2x1x16x128xf32>
    %109 = vector.shape_cast %108 : vector<2x1x16x128xf32> to vector<2x16x128xf32>
    %110 = arith.mulf %109, %106 : vector<2x16x128xf32>
    %111 = vector.extract_strided_slice %99 {offsets = [0, 1, 0, 0], sizes = [2, 1, 16, 128], strides = [1, 1, 1, 1]} : vector<2x5x16x128xf32> to vector<2x1x16x128xf32>
    %112 = vector.shape_cast %111 : vector<2x1x16x128xf32> to vector<2x16x128xf32>
    %113 = arith.addf %110, %112 : vector<2x16x128xf32>
    %114 = vector.shape_cast %113 : vector<2x16x128xf32> to vector<2x1x16x128xf32>
    %115 = vector.extract_strided_slice %78 {offsets = [0, 2, 0, 0], sizes = [2, 1, 16, 128], strides = [1, 1, 1, 1]} : vector<2x5x16x128xf32> to vector<2x1x16x128xf32>
    %116 = vector.shape_cast %115 : vector<2x1x16x128xf32> to vector<2x16x128xf32>
    %117 = arith.mulf %116, %113 : vector<2x16x128xf32>
    %118 = vector.extract_strided_slice %99 {offsets = [0, 2, 0, 0], sizes = [2, 1, 16, 128], strides = [1, 1, 1, 1]} : vector<2x5x16x128xf32> to vector<2x1x16x128xf32>
    %119 = vector.shape_cast %118 : vector<2x1x16x128xf32> to vector<2x16x128xf32>
    %120 = arith.addf %117, %119 : vector<2x16x128xf32>
    %121 = vector.shape_cast %120 : vector<2x16x128xf32> to vector<2x1x16x128xf32>
    %122 = vector.extract_strided_slice %78 {offsets = [0, 3, 0, 0], sizes = [2, 1, 16, 128], strides = [1, 1, 1, 1]} : vector<2x5x16x128xf32> to vector<2x1x16x128xf32>
    %123 = vector.shape_cast %122 : vector<2x1x16x128xf32> to vector<2x16x128xf32>
    %124 = arith.mulf %123, %120 : vector<2x16x128xf32>
    %125 = vector.extract_strided_slice %99 {offsets = [0, 3, 0, 0], sizes = [2, 1, 16, 128], strides = [1, 1, 1, 1]} : vector<2x5x16x128xf32> to vector<2x1x16x128xf32>
    %126 = vector.shape_cast %125 : vector<2x1x16x128xf32> to vector<2x16x128xf32>
    %127 = arith.addf %124, %126 : vector<2x16x128xf32>
    %128 = vector.shape_cast %127 : vector<2x16x128xf32> to vector<2x1x16x128xf32>
    %129 = vector.extract_strided_slice %78 {offsets = [0, 4, 0, 0], sizes = [2, 1, 16, 128], strides = [1, 1, 1, 1]} : vector<2x5x16x128xf32> to vector<2x1x16x128xf32>
    %130 = vector.shape_cast %129 : vector<2x1x16x128xf32> to vector<2x16x128xf32>
    %131 = arith.mulf %130, %127 : vector<2x16x128xf32>
    %132 = vector.extract_strided_slice %99 {offsets = [0, 4, 0, 0], sizes = [2, 1, 16, 128], strides = [1, 1, 1, 1]} : vector<2x5x16x128xf32> to vector<2x1x16x128xf32>
    %133 = vector.shape_cast %132 : vector<2x1x16x128xf32> to vector<2x16x128xf32>
    %134 = arith.addf %131, %133 : vector<2x16x128xf32>
    %135 = vector.shape_cast %134 : vector<2x16x128xf32> to vector<2x1x16x128xf32>
    %136 = tpu.concatenate %107, %114, %121, %128, %135 in 1 : vector<2x1x16x128xf32>, vector<2x1x16x128xf32>, vector<2x1x16x128xf32>, vector<2x1x16x128xf32>, vector<2x1x16x128xf32> -> vector<2x5x16x128xf32>
    %137 = arith.mulf %96, %136 : vector<2x5x16x128xf32>
    %cst_25 = arith.constant dense<0.000000e+00> : vector<2x5x128xf32>
    %138 = vector.multi_reduction <add>, %137, %cst_25 [2] : vector<2x5x16x128xf32> to vector<2x5x128xf32>
    %c2 = arith.constant 2 : index
    %c0_26 = arith.constant 0 : index
    %139 = vector.load %arg2[%c2, %c0_26] : memref<544x128xf32, #tpu.memory_space<vmem>>, vector<1x128xf32>
    %140 = vector.shape_cast %139 : vector<1x128xf32> to vector<1x1x128xf32>
    %141 = vector.broadcast %140 : vector<1x1x128xf32> to vector<2x5x128xf32>
    %142 = arith.mulf %46, %141 : vector<2x5x128xf32>
    %143 = arith.addf %138, %142 : vector<2x5x128xf32>
    %c312 = arith.constant 312 : index
    %c0_27 = arith.constant 0 : index
    %144 = vector.load %arg2[%c312, %c0_27] : memref<544x128xf32, #tpu.memory_space<vmem>>, vector<5x128xf32>
    %145 = vector.shape_cast %144 : vector<5x128xf32> to vector<1x5x128xf32>
    %146 = vector.broadcast %145 : vector<1x5x128xf32> to vector<2x5x128xf32>
    %147 = arith.mulf %143, %146 : vector<2x5x128xf32>
    %148 = vector.shape_cast %147 : vector<2x5x128xf32> to vector<10x128xf32>
    %c168_28 = arith.constant 168 : index
    %c64 = arith.constant 64 : index
    %149 = vector.load %arg2[%c168_28, %c64] : memref<544x128xf32, #tpu.memory_space<vmem>>, vector<128x64xf32>
    %cst_29 = arith.constant dense<0.000000e+00> : vector<10x64xf32>
    %150 = tpu.matmul %148, %149, %cst_29 {dimension_numbers = #tpu.dot_dimension_numbers<[1], [0], [0], [1], [0, 0, 1, 1], [], []>, precision = #tpu.contract_precision<fp32>} : vector<10x128xf32>, vector<128x64xf32>, vector<10x64xf32> -> vector<10x64xf32>
    %c4_30 = arith.constant 4 : index
    %c64_31 = arith.constant 64 : index
    %151 = vector.load %arg2[%c4_30, %c64_31] : memref<544x128xf32, #tpu.memory_space<vmem>>, vector<1x64xf32>
    %152 = vector.broadcast %151 : vector<1x64xf32> to vector<10x64xf32>
    %153 = arith.addf %150, %152 : vector<10x64xf32>
    %154 = vector.shape_cast %153 : vector<10x64xf32> to vector<2x5x64xf32>
    %155 = vector.extract_strided_slice %144 {offsets = [0, 0], sizes = [5, 64], strides = [1, 1]} : vector<5x128xf32> to vector<5x64xf32>
    %156 = vector.shape_cast %155 : vector<5x64xf32> to vector<1x5x64xf32>
    %157 = vector.broadcast %156 : vector<1x5x64xf32> to vector<2x5x64xf32>
    %158 = arith.mulf %154, %157 : vector<2x5x64xf32>
    %c320 = arith.constant 320 : index
    %c64_32 = arith.constant 64 : index
    %159 = vector.load %arg2[%c320, %c64_32] : memref<544x128xf32, #tpu.memory_space<vmem>>, vector<9x64xf32>
    %160 = vector.shape_cast %159 : vector<9x64xf32> to vector<1x9x64xf32>
    %161 = vector.shape_cast %160 : vector<1x9x64xf32> to vector<1x9x64xf32>
    %162 = vector.broadcast %161 : vector<1x9x64xf32> to vector<2x9x64xf32>
    "tpu.trace_start"() <{level = 10 : i32, message = "nod,nid->noi"}> : () -> ()
    %cst_33 = arith.constant dense<0.000000e+00> : vector<2x9x5xf32>
    %163 = tpu.matmul %162, %158, %cst_33 {dimension_numbers = #tpu.dot_dimension_numbers<[2], [2], [1], [1], [0, 0, 0, 1, 1, 1], [0], [0]>, precision = #tpu.contract_precision<fp32>} : vector<2x9x64xf32>, vector<2x5x64xf32>, vector<2x9x5xf32> -> vector<2x9x5xf32>
    "tpu.trace_stop"() : () -> ()
    %164 = math.exp %163 : vector<2x9x5xf32>
    %cst_34 = arith.constant dense<0.000000e+00> : vector<2x9xf32>
    %165 = vector.multi_reduction <add>, %164, %cst_34 [2] : vector<2x9x5xf32> to vector<2x9xf32>
    %166 = vector.shape_cast %165 : vector<2x9xf32> to vector<2x9x1xf32>
    %167 = vector.broadcast %166 : vector<2x9x1xf32> to vector<2x9x5xf32>
    %168 = arith.divf %164, %167 : vector<2x9x5xf32>
    %169 = vector.shape_cast %158 : vector<2x5x64xf32> to vector<10x64xf32>
    %c320_35 = arith.constant 320 : index
    %c0_36 = arith.constant 0 : index
    %170 = vector.load %arg2[%c320_35, %c0_36] : memref<544x128xf32, #tpu.memory_space<vmem>>, vector<64x64xf32>
    %cst_37 = arith.constant dense<0.000000e+00> : vector<10x64xf32>
    %171 = tpu.matmul %169, %170, %cst_37 {dimension_numbers = #tpu.dot_dimension_numbers<[1], [0], [0], [1], [0, 0, 1, 1], [], []>, precision = #tpu.contract_precision<fp32>} : vector<10x64xf32>, vector<64x64xf32>, vector<10x64xf32> -> vector<10x64xf32>
    %172 = vector.shape_cast %171 : vector<10x64xf32> to vector<2x5x64xf32>
    "tpu.trace_start"() <{level = 10 : i32, message = "noi,nid->nod"}> : () -> ()
    %cst_38 = arith.constant dense<0.000000e+00> : vector<2x9x64xf32>
    %173 = tpu.matmul %168, %172, %cst_38 {dimension_numbers = #tpu.dot_dimension_numbers<[2], [1], [1], [2], [0, 0, 0, 1, 1, 2], [0], [0]>, precision = #tpu.contract_precision<fp32>} : vector<2x9x5xf32>, vector<2x5x64xf32>, vector<2x9x64xf32> -> vector<2x9x64xf32>
    "tpu.trace_stop"() : () -> ()
    %174 = vector.shape_cast %173 : vector<2x9x64xf32> to vector<18x64xf32>
    %175 = arith.mulf %174, %38 : vector<18x64xf32>
    %176 = tpu.concatenate %175, %1 in 1 : vector<18x64xf32>, vector<18x32xf32> -> vector<18x96xf32>
    %c384 = arith.constant 384 : index
    %c0_39 = arith.constant 0 : index
    %177 = vector.load %arg2[%c384, %c0_39] : memref<544x128xf32, #tpu.memory_space<vmem>>, vector<96x32xf32>
    %cst_40 = arith.constant dense<0.000000e+00> : vector<18x32xf32>
    %178 = tpu.matmul %176, %177, %cst_40 {dimension_numbers = #tpu.dot_dimension_numbers<[1], [0], [0], [1], [0, 0, 1, 1], [], []>, precision = #tpu.contract_precision<fp32>} : vector<18x96xf32>, vector<96x32xf32>, vector<18x32xf32> -> vector<18x32xf32>
    %c5_41 = arith.constant 5 : index
    %c64_42 = arith.constant 64 : index
    %179 = vector.load %arg2[%c5_41, %c64_42] : memref<544x128xf32, #tpu.memory_space<vmem>>, vector<1x32xf32>
    %180 = vector.broadcast %179 : vector<1x32xf32> to vector<18x32xf32>
    %181 = arith.addf %178, %180 : vector<18x32xf32>
    %c6 = arith.constant 6 : index
    %c0_43 = arith.constant 0 : index
    %182 = vector.load %arg2[%c6, %c0_43] : memref<544x128xf32, #tpu.memory_space<vmem>>, vector<1x32xf32>
    %c6_44 = arith.constant 6 : index
    %c32 = arith.constant 32 : index
    %183 = vector.load %arg2[%c6_44, %c32] : memref<544x128xf32, #tpu.memory_space<vmem>>, vector<1x32xf32>
    %cst_45 = arith.constant dense<0.000000e+00> : vector<18xf32>
    %184 = vector.multi_reduction <add>, %181, %cst_45 [1] : vector<18x32xf32> to vector<18xf32>
    %185 = vector.shape_cast %184 : vector<18xf32> to vector<18x1xf32>
    %cst_46 = arith.constant 3.200000e+01 : f32
    %186 = vector.broadcast %cst_46 : f32 to vector<18x1xf32>
    %187 = arith.divf %185, %186 : vector<18x1xf32>
    %188 = vector.broadcast %187 : vector<18x1xf32> to vector<18x32xf32>
    %189 = arith.subf %181, %188 : vector<18x32xf32>
    %190 = arith.mulf %189, %189 : vector<18x32xf32>
    %cst_47 = arith.constant dense<0.000000e+00> : vector<18xf32>
    %191 = vector.multi_reduction <add>, %190, %cst_47 [1] : vector<18x32xf32> to vector<18xf32>
    %192 = vector.shape_cast %191 : vector<18xf32> to vector<18x1xf32>
    %cst_48 = arith.constant 3.200000e+01 : f32
    %193 = vector.broadcast %cst_48 : f32 to vector<18x1xf32>
    %194 = arith.divf %192, %193 : vector<18x1xf32>
    %195 = vector.broadcast %187 : vector<18x1xf32> to vector<18x32xf32>
    %196 = arith.subf %181, %195 : vector<18x32xf32>
    %cst_49 = arith.constant 9.99999974E-6 : f32
    %197 = vector.broadcast %cst_49 : f32 to vector<18x1xf32>
    %198 = arith.addf %194, %197 : vector<18x1xf32>
    %199 = math.rsqrt %198 : vector<18x1xf32>
    %200 = vector.broadcast %199 : vector<18x1xf32> to vector<18x32xf32>
    %201 = arith.mulf %196, %200 : vector<18x32xf32>
    %202 = vector.broadcast %182 : vector<1x32xf32> to vector<18x32xf32>
    %203 = arith.mulf %201, %202 : vector<18x32xf32>
    %204 = vector.broadcast %183 : vector<1x32xf32> to vector<18x32xf32>
    %205 = arith.addf %203, %204 : vector<18x32xf32>
    %206 = vector.shape_cast %205 : vector<18x32xf32> to vector<2x9x32xf32>
    %cst_50 = arith.constant dense<0.000000e+00> : vector<2x32xf32>
    %207 = vector.multi_reduction <add>, %206, %cst_50 [1] : vector<2x9x32xf32> to vector<2x32xf32>
    %cst_51 = arith.constant 9.000000e+00 : f32
    %208 = vector.broadcast %cst_51 : f32 to vector<2x32xf32>
    %209 = arith.divf %207, %208 : vector<2x32xf32>
    %c384_52 = arith.constant 384 : index
    %c64_53 = arith.constant 64 : index
    %210 = vector.load %arg2[%c384_52, %c64_53] : memref<544x128xf32, #tpu.memory_space<vmem>>, vector<32x64xf32>
    %cst_54 = arith.constant dense<0.000000e+00> : vector<2x64xf32>
    %211 = tpu.matmul %209, %210, %cst_54 {dimension_numbers = #tpu.dot_dimension_numbers<[1], [0], [0], [1], [0, 0, 1, 1], [], []>, precision = #tpu.contract_precision<fp32>} : vector<2x32xf32>, vector<32x64xf32>, vector<2x64xf32> -> vector<2x64xf32>
    %c5_55 = arith.constant 5 : index
    %c0_56 = arith.constant 0 : index
    %212 = vector.load %arg2[%c5_55, %c0_56] : memref<544x128xf32, #tpu.memory_space<vmem>>, vector<1x64xf32>
    %213 = vector.broadcast %212 : vector<1x64xf32> to vector<2x64xf32>
    %214 = arith.addf %211, %213 : vector<2x64xf32>
    %cst_57 = arith.constant 0.000000e+00 : f32
    %215 = vector.broadcast %cst_57 : f32 to vector<2x64xf32>
    %216 = arith.maximumf %214, %215 : vector<2x64xf32>
    %c480 = arith.constant 480 : index
    %c0_58 = arith.constant 0 : index
    %217 = vector.load %arg2[%c480, %c0_58] : memref<544x128xf32, #tpu.memory_space<vmem>>, vector<64x128xf32>
    %cst_59 = arith.constant dense<0.000000e+00> : vector<2x128xf32>
    %218 = tpu.matmul %216, %217, %cst_59 {dimension_numbers = #tpu.dot_dimension_numbers<[1], [0], [0], [1], [0, 0, 1, 1], [], []>, precision = #tpu.contract_precision<fp32>} : vector<2x64xf32>, vector<64x128xf32>, vector<2x128xf32> -> vector<2x128xf32>
    %c3 = arith.constant 3 : index
    %c0_60 = arith.constant 0 : index
    %219 = vector.load %arg2[%c3, %c0_60] : memref<544x128xf32, #tpu.memory_space<vmem>>, vector<1x128xf32>
    %220 = vector.broadcast %219 : vector<1x128xf32> to vector<2x128xf32>
    %221 = arith.addf %218, %220 : vector<2x128xf32>
    %c0_61 = arith.constant 0 : index
    %c0_62 = arith.constant 0 : index
    %c0_63 = arith.constant 0 : index
    %222 = vector.load %arg3[%c0_61, %c0_62, %c0_63] : memref<1x2x128xf32, #tpu.memory_space<vmem>>, vector<1x2x128xf32>
    %223 = vector.shape_cast %222 : vector<1x2x128xf32> to vector<2x128xf32>
    %224 = vector.shape_cast %221 : vector<2x128xf32> to vector<1x2x128xf32>
    tpu.vector_store %arg3[%c0_61, %c0_62, %c0_63], %224 {strides = array<i32>} : memref<1x2x128xf32, #tpu.memory_space<vmem>>, vector<1x2x128xf32>,
    return
  }
  func.func @transform_0(%arg0: i32) -> (i32, i32, i32) {
    %c0_i32 = arith.constant 0 : i32
    %c0_i32_0 = arith.constant 0 : i32
    %c0_i32_1 = arith.constant 0 : i32
    return %arg0, %c0_i32, %c0_i32_0 : i32, i32, i32
  }
  func.func @transform_1(%arg0: i32) -> (i32, i32) {
    %c0_i32 = arith.constant 0 : i32
    %c0_i32_0 = arith.constant 0 : i32
    %c0_i32_1 = arith.constant 0 : i32
    return %c0_i32, %c0_i32_0 : i32, i32
  }
  func.func @transform_2(%arg0: i32) -> (i32, i32, i32) {
    %c0_i32 = arith.constant 0 : i32
    %c0_i32_0 = arith.constant 0 : i32
    %c0_i32_1 = arith.constant 0 : i32
    return %arg0, %c0_i32, %c0_i32_0 : i32, i32, i32
  }
}

</mosaic_0001>

<bundles_post_ra>
// kernel: tpu_custom_call.1
= control target key start
LH: loop header
LB: loop body
LE: loop exit
PB: predicated region body
PF: predicated region fallthrough
CT: control target
= control target key end

     0   :  { %7 = vsyncpa [#allocation3], 0  ;;  %s16853_s0 = inlined_call_operand.vmem [shape: f32[2,9,32], index: 0, kind: input, shape index: {}]   ;;  %s16854_s1 = inlined_call_operand.hbm [shape: f32[544,128], index: 1, kind: input, shape index: {}]   ;;  %s16855_s2 = inlined_call_operand.hbm [shape: f32[1,2,128], index: 2, kind: output, shape index: {}]  }
   0x1   :  { %8 = vsyncpa [#allocation4], 0  ;;  %s13917_s9 = smov [#allocation2]   ;;  %s13869_s13 = scalar_lea.hbm %s16854_s1, 8704 }
   0x2   :  { %s16_s10 = sshll.u32 %s13917_s9, 4  ;;  %p13870_p0 = scmp.ne.s32.totalorder %s16854_s1, %s13869_s13  ;;  %s17_s10 = int_to_ptr.vmem [resolvable:$true] %s16_s10 }
   0x3   :  { %p13873_p1 = scmp.lt.u32.totalorder %s13869_s13, %s16854_s1 }
   0x5   :  { %p13875_p2 = pnand %p13873_p1, %p13870_p0 }
   0x7   :  { %13878 = shalt.err (!%p13875_p2)
}
   0x8   :  { %s13879_s18 = scalar_lea.vmem %s17_s10, 8704  ;;  %p13884_p4 = scmp.lt.s32.totalorder %s17_s10, %s17_s10 }
   0x9   :  { %p13880_p3 = scmp.ne.s32.totalorder %s17_s10, %s13879_s18  ;;  %p13885_p5 = scmp.lt.s32.totalorder %s13879_s18, %s13879_s18 }
   0xb   :  { %p13886_p6 = por %p13885_p5, %p13884_p4 }
   0xd   :  { %p13887_p7 = pnand %p13886_p6, %p13880_p3 }
   0xf   :  { %13890 = shalt.err (!%p13887_p7)
}
  0x10   :  { %s13918_s19 = smov 128   ;;  %s13919_s20 = smov 8  }
  0x11   :  { %22 = dma.hbm_to_vmem [thread:$0]  %s16854_s1, 8704, %s17_s10, [#allocation3], %s13918_s19, %s13918_s19, %s13919_s20  }
  0x12   :  { %13913 = dma.done.wait [#allocation3], 8704  }
  0x13   :  { %13914 = vsyncadd [#allocation3], 4294958592  ;;  %v38_v0 = vlaneseq  ;;  %v13920_v1 = vmov 1966171168   ;;  %v13960_v6 = vld [vmem:[#allocation2 + $0x5] ss:$0 sm:$0xff] }
  0x14   :  { %v36_v2 = vunpack.c.l.s4 %v13920_v1  ;;  %v10634_v7 = vld.sshfl [vmem:[%s16853_s0 + $0x8] sm:$0x1 pattern:$0x75316420]  ;;  %v28_v9 = vld [vmem:[%s16853_s0 + $0x10] sm:$0xff]  ;;  %v26_v11 = vld [vmem:[%s16853_s0] sm:$0xff] }
  0x15   :  { %v13955_v3 = vshrl.u32 %v38_v0, 7  ;;  %v97_v12 = vcombine.high %v28_v9, %v28_v9  ;;  %v34_v14 = vcombine.high %v26_v11, %v26_v11  ;;  %s13921_s28 = smov 32   ;;  %vm330_vm0 = vcmask 261120   ;;  %s13926_s3 = smov 96  }
  0x16   :  { %v37_v4 = vunpack.c.0.s8 %v36_v2  ;;  %vm337_vm1 = vcmask 254976   ;;  %vm13923_vm2 = vmmov 0   ;;  %vm1462_vm3 = vcmask 1040384   ;;  %s13927_s4 = smov [#allocation5]  }
  0x17   :  { %vm1465_vm4 = vcmask 1041408   ;;  %vm1468_vm5 = vcmask 1042432   ;;  %vm1471_vm6 = vcmask 1043456   ;;  %vm1562_vm7 = vcmask 523264   ;;  %s10625_s5 = sshll.u32 %s13927_s4, 4  ;;  %s10626_s5 = int_to_ptr.vmem [resolvable:$true] %s10625_s5 }
  0x18   :  { %v13958_v5 = vsub.s32 %v37_v4, %v13955_v3  ;;  %vm4232_vm8 = vcmask 1041409   ;;  %vm4235_vm9 = vcmask 1042434   ;;  %vm4238_vm10 = vcmask 1043459   ;;  %s13891_s6 = scalar_lea.vmem %s10626_s5, 32  ;;  %p13896_p9 = scmp.lt.s32.totalorder %s10626_s5, %s10626_s5 }
  0x19   :  { %vm4241_vm11 = vcmask 1044484   ;;  %vm4244_vm12 = vcmask 1045509   ;;  %vm4247_vm13 = vcmask 1046534   ;;  %vm4250_vm14 = vcmask 1047559   ;;  %p13892_p8 = scmp.ne.s32.totalorder %s10626_s5, %s13891_s6  ;;  %p13897_p10 = scmp.lt.s32.totalorder %s13891_s6, %s13891_s6 }
  0x1a   :  { %v475_v8 = vrot.slane %v13960_v6, %v13958_v5  ;;  %v13971_v10 = vrot.slane %v10634_v7, %v13958_v5  ;;  %v104_v13 = vrot.slane %v28_v9, %v13958_v5  ;;  %v41_v15 = vrot.slane %v26_v11, %v13958_v5 }
  0x1b   :  { %v111_v18 = vrot.slane %v97_v12, %v13958_v5  ;;  %v48_v21 = vrot.slane %v34_v14, %v13958_v5  ;;  %vm6239_vm15 = vcmask 32768   ;;  %p13898_p11 = por %p13897_p10, %p13896_p9 }
  0x1c   :  { %17017 = vst [vmem:[#allocation8_spill] sm:$0xff] %v13971_v10  ;;  %v491_v16 = vrot.slane %v475_v8, %v13958_v5  ;;  %v483_v17 = vcombine.high %v475_v8, %v475_v8  ;;  %v112_v19 = vcombine.high %v104_v13, %v104_v13  ;;  %v13981_v20 = vrot.slane %v104_v13, %v13958_v5 }
  0x1d   :  { %v186_v24 = vmul.f32 %v13971_v10, %v13971_v10  ;;  %v49_v25 = vcombine.high %v41_v15, %v41_v15  ;;  %v113_v26 = vcombine.high %v111_v18, %v111_v18  ;;  %v13989_v27 = vrot.slane %v111_v18, %v13958_v5  ;;  %p13899_p12 = pnand %p13898_p11, %p13892_p8 }
  0x1e   :  { %17018 = vst [vmem:[#allocation9_spill] sm:$0xff] %v13981_v20  ;;  %517 = vrot.lane.b32.xlu1 %v491_v16, %s13921_s28  ;;  %v513_v22 = vcombine.high %v491_v16, %v491_v16  ;;  %v505_v23 = vrot.slane %v483_v17, %v13958_v5  ;;  %v13992_v28 = vrot.slane %v112_v19, %v13958_v5  ;;  %v10635_v16 = vld.sshfl [vmem:[%s16853_s0 + $0x18] sm:$0x1 pattern:$0x75316420]  ;;  %s13925_s0 = smov 64  }
  0x1f   :  { %17019 = vst [vmem:[#allocation10_spill] sm:$0xff] %v13989_v27  ;;  %v13996_v29 = vcombine.high %v13981_v20, %v13981_v20  ;;  %v50_v31 = vcombine.high %v48_v21, %v48_v21  ;;  %v14000_v32 = vrot.slane %v41_v15, %v13958_v5  ;;  %v14003_v33 = vrot.slane %v48_v21, %v13958_v5 }
  0x20   :  { %17020 = vst [vmem:[#allocation11_spill] sm:$0xff] %v13992_v28  ;;  %519 = vrot.lane.b32.xlu0 %v505_v23, %s13921_s28  ;;  %v515_v30 = vcombine.high %v505_v23, %v505_v23  ;;  %v14006_v34 = vrot.slane %v113_v26, %v13958_v5  ;;  %v14010_v35 = vcombine.high %v13989_v27, %v13989_v27 }
  0x21   :  { %17021 = vst [vmem:[#allocation12_spill] sm:$0xff] %v13996_v29  ;;  %17022 = vst [vmem:[#allocation13_spill] sm:$0xff] %v14000_v32  ;;  %v14014_v36 = vcombine.high %v13992_v28, %v13992_v28  ;;  %v187_v37 = vmul.f32 %v13981_v20, %v13981_v20  ;;  %v188_v38 = vmul.f32 %v13992_v28, %v13992_v28 }
  0x22   :  { %17023 = vst [vmem:[#allocation14_spill] sm:$0xff] %v14003_v33  ;;  %17024 = vst [vmem:[#allocation15_spill] sm:$0xff] %v14006_v34  ;;  %521 = vrot.lane.b32.xlu1 %v513_v22, %s13921_s28  ;;  %v189_v39 = vmul.f32 %v13996_v29, %v13996_v29  ;;  %v191_v40 = vmul.f32 %v13989_v27, %v13989_v27  ;;  %v14026_v41 = vrot.slane %v49_v25, %v13958_v5 }
  0x23   :  { %17025 = vst [vmem:[#allocation16_spill] sm:$0xff] %v14010_v35  ;;  %17026 = vst [vmem:[#allocation17_spill] sm:$0xff] %v14014_v36  ;;  %v190_v42 = vmul.f32 %v14014_v36, %v14014_v36  ;;  %v192_v43 = vmul.f32 %v14006_v34, %v14006_v34  ;;  %v193_v44 = vmul.f32 %v14010_v35, %v14010_v35 }
  0x24   :  { %17027 = vst [vmem:[#allocation18_spill] sm:$0xff] %v14026_v41  ;;  %v14035_v45 = vrot.slane %v50_v31, %v13958_v5  ;;  %v14039_v46 = vcombine.high %v14000_v32, %v14000_v32  ;;  %v14043_v47 = vcombine.high %v14003_v33, %v14003_v33  ;;  %v14047_v48 = vcombine.high %v14026_v41, %v14026_v41 }
  0x25   :  { %v263_v50 = vcombine.low %v186_v24, %v187_v37  ;;  %v264_v51 = vcombine.low %v188_v38, %v189_v39  ;;  %v265_v52 = vcombine.low %v190_v42, %v191_v40  ;;  %v266_v53 = vcombine.low %v192_v43, %v193_v44 }
  0x26   :  { %17028 = vst [vmem:[#allocation19_spill] sm:$0xff] %v14035_v45  ;;  %v14051_v49 = vcombine.high %v14035_v45, %v14035_v45  ;;  %523 = vrot.lane.b32.xlu1 %v515_v30, %s13921_s28  ;;  %v178_v54 = vmul.f32 %v14000_v32, %v14000_v32  ;;  %v179_v55 = vmul.f32 %v14026_v41, %v14026_v41 }
  0x27   :  { %v180_v56 = vmul.f32 %v14039_v46, %v14039_v46  ;;  %v181_v57 = vmul.f32 %v14047_v48, %v14047_v48  ;;  %v182_v58 = vmul.f32 %v14003_v33, %v14003_v33  ;;  %v183_v59 = vmul.f32 %v14035_v45, %v14035_v45 }
  0x28   :  { %v184_v60 = vmul.f32 %v14043_v47, %v14043_v47  ;;  %v185_v61 = vmul.f32 %v14051_v49, %v14051_v49  ;;  %v273_v62 = vrot.slane %v263_v50, %v13958_v5  ;;  %v280_v63 = vrot.slane %v264_v51, %v13958_v5 }
  0x29   :  { %v287_v0 = vrot.slane %v265_v52, %v13958_v5  ;;  %v294_v1 = vrot.slane %v266_v53, %v13958_v5  ;;  %v214_v2 = vcombine.low %v178_v54, %v179_v55  ;;  %v215_v4 = vcombine.low %v180_v56, %v181_v57  ;;  %v559_v57 = vld [vmem:[#allocation2 + $0x8] sm:$0xff] }
  0x2a   :  { %v216_v7 = vcombine.low %v182_v58, %v183_v59  ;;  %v217_v8 = vcombine.low %v184_v60, %v185_v61  ;;  %v295_v9 = vcombine.low %v273_v62, %v280_v63  ;;  %v14083_v17 = vcombine.high %v14006_v34, %v14006_v34  ;;  %v561_v58 = vld [vmem:[#allocation2 + $0x18] sm:$0xff]  ;;  %v562_v62 = vld [vmem:[#allocation2 + $0x20] sm:$0xff] }
  0x2b   :  { %v296_v11 = vcombine.low %v287_v0, %v294_v1  ;;  %v224_v12 = vrot.slane %v214_v2, %v13958_v5  ;;  %v231_v13 = vrot.slane %v215_v4, %v13958_v5  ;;  %v14086_v18 = vrot.slane %v10635_v16, %v13958_v5 }
  0x2c   :  { %v238_v14 = vrot.slane %v216_v7, %v13958_v5  ;;  %v245_v15 = vrot.slane %v217_v8, %v13958_v5  ;;  %17029 = vst [vmem:[#allocation20_spill] sm:$0xff] %v14083_v17  ;;  %v303_v19 = vrot.slane %v295_v9, %v13958_v5  ;;  %v194_v24 = vmul.f32 %v14083_v17, %v14083_v17 }
  0x2d   :  { %17030 = vst [vmem:[#allocation21_spill] sm:$0xff] %v14086_v18  ;;  %v310_v21 = vrot.slane %v296_v11, %v13958_v5  ;;  %v246_v22 = vcombine.low %v224_v12, %v231_v13  ;;  %v195_v25 = vmul.f32 %v14086_v18, %v14086_v18  ;;  %v468_v50 = vcombine.high %v13960_v6, %v13960_v6  ;;  %v560_v6 = vld [vmem:[#allocation2 + $0x10] sm:$0xff] }
  0x2e   :  { %v247_v23 = vcombine.low %v238_v14, %v245_v15  ;;  %v16856_v59 = vmov 0.0|0.0   ;;  %v706_v60 = vand.u32 4294901760, %v559_v57  ;;  %v709_v61 = vand.u32 4294901760, %v560_v6 }
  0x2f   :  { %v311_v26 = vcombine.low %v303_v19, %v310_v21  ;;  %v254_v30 = vrot.slane %v246_v22, %v13958_v5  ;;  %v312_v37 = vcombine.low %v194_v24, %v195_v25  ;;  %v482_v51 = vrot.slane %v468_v50, %v13958_v5  ;;  %12670 = vmatprep.subr.bf16.mxu0 %v16856_v59 }
  0x30   :  { %v261_v31 = vrot.slane %v247_v23, %v13958_v5  ;;  %v712_v63 = vand.u32 4294901760, %v561_v58  ;;  %v16858_v0 = vmov 0.0   ;;  %v715_v1 = vand.u32 4294901760, %v562_v62 }
  0x31   :  { %v334_v38 = vsel %vm330_vm0, %v311_v26, 0.0  ;;  %v319_v40 = vrot.slane %v312_v37, %v13958_v5  ;;  %v484_v52 = vcombine.high %v482_v51, %v482_v51  ;;  %v498_v54 = vrot.slane %v482_v51, %v13958_v5  ;;  %11334 = vmatprep.mubr.msk.f32.mxu0 %vm13923_vm2, %v16858_v0 }
  0x32   :  { %v262_v39 = vcombine.low %v254_v30, %v261_v31  ;;  %v14113_v2 = vpack.c.bf16 %v709_v61, %v706_v60  ;;  %v14115_v4 = vsub.f32 %v559_v57, %v706_v60  ;;  %v14117_v7 = vsub.f32 %v560_v6, %v709_v61 }
  0x33   :  { %v326_v43 = vrot.slane %v319_v40, %v13958_v5  ;;  %v512_v53 = vrot.slane %v484_v52, %v13958_v5  ;;  %v514_v56 = vcombine.high %v498_v54, %v498_v54  ;;  %v14119_v8 = vsub.f32 %v561_v58, %v712_v63 }
  0x34   :  { %v331_v42 = vsel %vm330_vm0, %v262_v39, 0.0  ;;  %v14121_v9 = vsub.f32 %v562_v62, %v715_v1  ;;  %12672 = vmatpush3.bf16.msra.mxu0 %v14113_v2  ;;  %v14124_v11 = vpack.c.bf16 %v715_v1, %v712_v63  ;;  %v807_v12 = vand.u32 4294901760, %v14115_v4 }
  0x35   :  { %v338_v44 = vsel %vm337_vm1, %v326_v43, 0.0  ;;  %v516_v55 = vcombine.high %v512_v53, %v512_v53  ;;  %12673 = vmatprep.subr.bf16.mxu0 %v16856_v59  ;;  %v814_v13 = vand.u32 4294901760, %v14117_v7  ;;  %v821_v21 = vand.u32 4294901760, %v14119_v8 }
  0x36   :  { %v808_v14 = vsub.f32 %v14115_v4, %v807_v12  ;;  %v828_v22 = vand.u32 4294901760, %v14121_v9  ;;  %v14158_v58 = vsub.s32 4, %v13955_v3  ;;  %v376_v60 = vsub.s32 5, %v13955_v3 }
  0x37   :  { %v815_v15 = vsub.f32 %v14117_v7, %v814_v13  ;;  %v822_v24 = vsub.f32 %v14119_v8, %v821_v21  ;;  %v14145_v39 = vpack.c.bf16 %v814_v13, %v807_v12  ;;  %v380_v62 = vsub.s32 6, %v13955_v3 }
  0x38   :  { %12675 = vmatpush3.bf16.msra.mxu0 %v14124_v11  ;;  %v809_v16 = vand.u32 4294901760, %v808_v14  ;;  %v829_v25 = vsub.f32 %v14121_v9, %v828_v22  ;;  %v14147_v40 = vpack.c.bf16 %v828_v22, %v821_v21  ;;  %17031 = vst [vmem:[#allocation22_spill] sm:$0xff] %v14158_v58  ;;  %v14163_v63 = vsub.s32 0, %v13955_v3 }
  0x39   :  { %12676 = vmatprep.subr.bf16.mxu0 %v16856_v59  ;;  %v816_v19 = vand.u32 4294901760, %v815_v15  ;;  %v823_v26 = vand.u32 4294901760, %v822_v24  ;;  %v384_v1 = vsub.s32 7, %v13955_v3  ;;  %v14167_v12 = vsub.s32 1, %v13955_v3 }
  0x3a   :  { %v830_v30 = vand.u32 4294901760, %v829_v25  ;;  %17032 = vst [vmem:[#allocation23_spill] sm:$0xff] %v14163_v63 }
  0x3b   :  { %v14135_v23 = vpack.c.bf16 %v816_v19, %v809_v16  ;;  %17033 = vst [vmem:[#allocation24_spill] sm:$0xff] %v14167_v12  ;;  %v14172_v16 = vsub.s32 2, %v13955_v3  ;;  %v14175_v19 = vsub.s32 3, %v13955_v3 }
  0x3c   :  { %v14139_v31 = vpack.c.bf16 %v830_v30, %v823_v26 }
  0x3d   :  { %17034 = vst [vmem:[#allocation25_spill] sm:$0xff] %v14172_v16  ;;  %17035 = vst [vmem:[#allocation26_spill] sm:$0xff] %v14175_v19 }
  0x3f   :  { %335 = vadd.xlane.f32.xlu0 %v334_v38 }
  0x43   :  { %332 = vadd.xlane.f32.xlu0 %v331_v42 }
  0x4a   :  { %339 = vadd.xlane.f32.xlu1 %v338_v44 }
  0x59   :  { %527 = vrot.lane.b32.xlu0 %v512_v53, %s13921_s28 }
  0x5b   :  { %525 = vrot.lane.b32.xlu1 %v498_v54, %s13921_s28 }
  0x5d   :  { %531 = vrot.lane.b32.xlu0 %v516_v55, %s13921_s28 }
  0x5f   :  { %529 = vrot.lane.b32.xlu1 %v514_v56, %s13921_s28 }
  0x90   :  { %v14149_v42 = vpop.permute.xlu1 %517 }
  0x92   :  { %v14151_v43 = vpop.permute.xlu0 %519 }
  0x94   :  { %v14153_v50 = vpop.permute.xlu1 %521 }
  0x98   :  { %v14155_v55 = vpop.permute.xlu1 %523 }
  0xcc   :  { %v336_v44 = vpop.xlane.xlu0 %335 }
  0xcd   :  { %v343_v51 = vmul.f32 0.03125, %v336_v44 }
  0xcf   :  { %v346_v52 = vadd.f32 1e-05, %v343_v51 }
  0xd0   :  { %v333_v53 = vpop.xlane.xlu0 %332 }
  0xd1   :  { %13781 = vrsqrt.f32 %v346_v52  ;;  %v342_v54 = vmul.f32 0.03125, %v333_v53 }
  0xd3   :  { %v345_v56 = vadd.f32 1e-05, %v342_v54 }
  0xd4   :  { %v528_v61 = vpop.permute.xlu0 %527 }
  0xd5   :  { %13783 = vrsqrt.f32 %v345_v56 }
  0xd7   :  { %v340_v57 = vpop.xlane.xlu1 %339 }
  0xd8   :  { %v344_v6 = vmul.f32 0.03125, %v340_v57  ;;  %v532_v51 = vpop.permute.xlu0 %531 }
  0xda   :  { %v347_v13 = vadd.f32 1e-05, %v344_v6 }
  0xdb   :  { %v14169_v14 = vpop.eup %13781  ;;  %v526_v15 = vpop.permute.xlu1 %525 }
  0xdc   :  { %13785 = vrsqrt.f32 %v347_v13  ;;  %v405_v21 = vrot.slane %v14169_v14, %v14158_v58  ;;  %v409_v22 = vrot.slane %v14169_v14, %v376_v60  ;;  %v413_v24 = vrot.slane %v14169_v14, %v380_v62 }
  0xdd   :  { %v417_v25 = vrot.slane %v14169_v14, %v384_v1  ;;  %v389_v26 = vrot.slane %v14169_v14, %v14163_v63  ;;  %v393_v52 = vrot.slane %v14169_v14, %v14167_v12  ;;  %v397_v57 = vrot.slane %v14169_v14, %v14172_v16 }
  0xde   :  { %v456_v30 = vmul.f32 %v405_v21, %v14014_v36  ;;  %v457_v44 = vmul.f32 %v409_v22, %v13989_v27  ;;  %v458_v3 = vmul.f32 %v413_v24, %v14006_v34  ;;  %v401_v6 = vrot.slane %v14169_v14, %v14175_v19 }
  0xdf   :  { %v13784_v53 = vpop.eup %13783  ;;  %v530_v54 = vpop.permute.xlu1 %529  ;;  %v459_v56 = vmul.f32 %v417_v25, %v14010_v35  ;;  %v452_v13 = vmul.f32 %v389_v26, %v13971_v10  ;;  %v453_v27 = vmul.f32 %v393_v52, %v13981_v20  ;;  %v14528_v20 = vld [vmem:[#allocation2 + $0x88] sm:$0xff] }
  0xe0   :  { %v373_v21 = vrot.slane %v13784_v53, %v14158_v58  ;;  %v553_v22 = vmul.f32 %v526_v15, %v456_v30  ;;  %v377_v24 = vrot.slane %v13784_v53, %v376_v60  ;;  %v554_v38 = vmul.f32 %v528_v61, %v457_v44 }
  0xe1   :  { %v381_v37 = vrot.slane %v13784_v53, %v380_v62  ;;  %v555_v59 = vmul.f32 %v530_v54, %v458_v3  ;;  %v385_v0 = vrot.slane %v13784_v53, %v384_v1  ;;  %v556_v34 = vmul.f32 %v532_v51, %v459_v56 }
  0xe2   :  { %v448_v36 = vmul.f32 %v373_v21, %v14003_v33  ;;  %v449_v25 = vmul.f32 %v377_v24, %v14035_v45  ;;  %v357_v35 = vrot.slane %v13784_v53, %v14163_v63  ;;  %v637_v14 = vcombine.low %v553_v22, %v554_v38  ;;  %v14551_v45 = vld [vmem:[#allocation2 + $0x118] sm:$0xff] }
  0xe3   :  { %v450_v26 = vmul.f32 %v381_v37, %v14043_v47  ;;  %v451_v10 = vmul.f32 %v385_v0, %v14051_v49  ;;  %v361_v60 = vrot.slane %v13784_v53, %v14167_v12  ;;  %v365_v1 = vrot.slane %v13784_v53, %v14172_v16 }
  0xe4   :  { %v545_v30 = vmul.f32 %v526_v15, %v448_v36  ;;  %v546_v62 = vmul.f32 %v528_v61, %v449_v25  ;;  %v454_v44 = vmul.f32 %v397_v57, %v13992_v28  ;;  %v638_v21 = vcombine.low %v555_v59, %v556_v34 }
  0xe5   :  { %v547_v3 = vmul.f32 %v530_v54, %v450_v26  ;;  %v548_v56 = vmul.f32 %v532_v51, %v451_v10  ;;  %v369_v24 = vrot.slane %v13784_v53, %v14175_v19  ;;  %v444_v38 = vmul.f32 %v357_v35, %v14000_v32 }
  0xe6   :  { %v13786_v33 = vpop.eup %13785  ;;  %v588_v52 = vcombine.low %v545_v30, %v546_v62  ;;  %v445_v47 = vmul.f32 %v361_v60, %v14026_v41  ;;  %v446_v49 = vmul.f32 %v365_v1, %v14039_v46  ;;  %v659_v37 = vrot.slane %v637_v14, %v13958_v5 }
  0xe7   :  { %v421_v36 = vrot.slane %v13786_v33, %v14163_v63  ;;  %v425_v0 = vrot.slane %v13786_v33, %v14167_v12  ;;  %v589_v61 = vcombine.low %v547_v3, %v548_v56  ;;  %v447_v34 = vmul.f32 %v369_v24, %v14047_v48 }
  0xe8   :  { %v610_v10 = vrot.slane %v588_v52, %v13958_v5  ;;  %v541_v59 = vmul.f32 %v14149_v42, %v444_v38  ;;  %v542_v15 = vmul.f32 %v14151_v43, %v445_v47  ;;  %v666_v53 = vrot.slane %v638_v21, %v13958_v5 }
  0xe9   :  { %v460_v35 = vmul.f32 %v421_v36, %v14083_v17  ;;  %v461_v51 = vmul.f32 %v425_v0, %v14086_v18  ;;  %v617_v46 = vrot.slane %v589_v61, %v13958_v5  ;;  %v543_v33 = vmul.f32 %v14153_v50, %v446_v49 }
  0xea   :  { %v544_v54 = vmul.f32 %v14155_v55, %v447_v34  ;;  %v586_v57 = vcombine.low %v541_v59, %v542_v15  ;;  %v455_v22 = vmul.f32 %v401_v6, %v13996_v29  ;;  %v549_v26 = vmul.f32 %v14149_v42, %v452_v13  ;;  %v14543_v29 = vld [vmem:[#allocation2 + $0x108] sm:$0xff] }
  0xeb   :  { %v557_v48 = vmul.f32 %v14149_v42, %v460_v35  ;;  %v558_v25 = vmul.f32 %v14151_v43, %v461_v51  ;;  %v619_v14 = vcombine.low %v610_v10, %v617_v46  ;;  %v550_v62 = vmul.f32 %v14151_v43, %v453_v27 }
  0xec   :  { %v587_v60 = vcombine.low %v543_v33, %v544_v54  ;;  %v596_v30 = vrot.slane %v586_v57, %v13958_v5  ;;  %v551_v1 = vmul.f32 %v14153_v50, %v454_v44  ;;  %v552_v3 = vmul.f32 %v14155_v55, %v455_v22 }
  0xed   :  { %v684_v56 = vcombine.low %v557_v48, %v558_v25  ;;  %v635_v6 = vcombine.low %v549_v26, %v550_v62  ;;  %v668_v24 = vcombine.low %v659_v37, %v666_v53  ;;  %v633_v47 = vrot.slane %v619_v14, %v13958_v5 }
  0xee   :  { %v603_v21 = vrot.slane %v587_v60, %v13958_v5  ;;  %v636_v52 = vcombine.low %v551_v1, %v552_v3  ;;  %v17036_v25 = vmov 0.0   ;;  %v17037_v60 = vmov 0.0|0.0   ;;  %v10637_v3 = vld [vmem:[#allocation2] ss:$0 sm:$0xff] }
  0xef   :  { %v691_v38 = vrot.slane %v684_v56, %v13958_v5  ;;  %v645_v13 = vrot.slane %v635_v6, %v13958_v5  ;;  %v682_v50 = vrot.slane %v668_v24, %v13958_v5 }
  0xf0   :  { %v618_v42 = vcombine.low %v596_v30, %v603_v21  ;;  %v652_v49 = vrot.slane %v636_v52, %v13958_v5 }
  0xf1   :  { %v698_v27 = vrot.slane %v691_v38, %v13958_v5 }
  0xf2   :  { %v626_v43 = vrot.slane %v618_v42, %v13958_v5  ;;  %v667_v55 = vcombine.low %v645_v13, %v652_v49 }
  0xf3   :  { %v703_v36 = vsel %vm330_vm0, %v698_v27, 0 }
  0xf4   :  { %v634_v44 = vcombine.low %v626_v43, %v633_v47  ;;  %v675_v0 = vrot.slane %v667_v55, %v13958_v5  ;;  %v14243_v34 = vand.u32 4294901760, %v703_v36 }
  0xf6   :  { %v699_v37 = vsel %vm330_vm0, %v634_v44, 0  ;;  %v683_v10 = vcombine.low %v675_v0, %v682_v50  ;;  %v795_v46 = vsub.f32 %v703_v36, %v14243_v34 }
  0xf7   :  { %v14241_v61 = vand.u32 4294901760, %v699_v37 }
  0xf8   :  { %v701_v15 = vsel %vm330_vm0, %v683_v10, 0  ;;  %v796_v22 = vand.u32 4294901760, %v795_v46 }
  0xf9   :  { %v775_v59 = vsub.f32 %v699_v37, %v14241_v61  ;;  %v14247_v35 = vand.u32 4294901760, %v701_v15 }
  0xfa   :  { %v797_v26 = vsub.f32 %v795_v46, %v796_v22 }
  0xfb   :  { %v776_v51 = vand.u32 4294901760, %v775_v59  ;;  %v785_v53 = vsub.f32 %v701_v15, %v14247_v35 }
  0xfc   :  { %v798_v30 = vand.u32 4294901760, %v797_v26 }
  0xfd   :  { %v777_v33 = vsub.f32 %v775_v59, %v776_v51  ;;  %v786_v54 = vand.u32 4294901760, %v785_v53 }
  0xff   :  { %v778_v57 = vand.u32 4294901760, %v777_v33  ;;  %v787_v48 = vsub.f32 %v785_v53, %v786_v54 }
 0x101   :  { %11335 = vmatmul.mubr.f32.vlgmr.msra.gmra.mrb[0].mxu0 %v778_v57  ;;  %v788_v14 = vand.u32 4294901760, %v787_v48 }
 0x102   :  { %11337 = vmatprep.mubr.msk.f32.mxu0 %vm13923_vm2, %v17036_v25  ;;  %12678 = vmatpush3.bf16.msra.mxu0 %v14135_v23  ;;  %v17038_v23 = vpack.c.bf16 %v14117_v7, %v14115_v4  ;;  %v14319_v4 = vld [vmem:[#allocation2 + $0x30] sm:$0xff]  ;;  %v14321_v7 = vld [vmem:[#allocation2 + $0xa8] sm:$0xff] }
 0x103   :  { %12679 = vmatprep.subr.bf16.mxu0 %v17037_v60 }
 0x105   :  { %11338 = vmatmul.mubr.f32.gmra.mrb[2].mxu0 %v788_v14 }
 0x106   :  { %11340 = vmatprep.mubr.msk.f32.mxu0 %vm13923_vm2, %v17036_v25  ;;  %12681 = vmatpush3.bf16.msra.mxu0 %v14139_v31  ;;  %v17039_v31 = vpack.c.bf16 %v14121_v9, %v14119_v8  ;;  %v16875_v9 = vand.u32 4294901760, %v14319_v4 }
 0x107   :  { %12682 = vmatprep.subr.bf16.mxu0 %v17037_v60 }
 0x109   :  { %11341 = vmatmul.mubr.f32.gmra.mrb[4].mxu0 %v798_v30 }
 0x10a   :  { %11351 = vmatprep.mubr.msk.f32.mxu0 %vm13923_vm2, %v17036_v25 }
 0x10d   :  { %11352 = vmatmul.mubr.f32.vlgmr.msra.gmra.mrb[0].mxu0 %v14241_v61 }
 0x10e   :  { %11354 = vmatprep.mubr.msk.f32.mxu0 %vm13923_vm2, %v17036_v25  ;;  %12684 = vmatpush3.bf16.msra.mxu0 %v17038_v23 }
 0x10f   :  { %12685 = vmatprep.subr.bf16.mxu0 %v17037_v60 }
 0x111   :  { %11355 = vmatmul.mubr.f32.gmra.mrb[2].mxu0 %v14247_v35 }
 0x112   :  { %11357 = vmatprep.mubr.msk.f32.mxu0 %vm13923_vm2, %v17036_v25  ;;  %12687 = vmatpush3.bf16.msra.mxu0 %v17039_v31 }
 0x113   :  { %12688 = vmatprep.subr.bf16.mxu0 %v17037_v60 }
 0x115   :  { %11358 = vmatmul.mubr.f32.gmra.mrb[4].mxu0 %v14243_v34 }
 0x116   :  { %11368 = vmatprep.mubr.msk.f32.mxu0 %vm13923_vm2, %v17036_v25 }
 0x119   :  { %11369 = vmatmul.mubr.f32.vlgmr.msra.gmra.mrb[0].mxu0 %v775_v59 }
 0x11a   :  { %11371 = vmatprep.mubr.msk.f32.mxu0 %vm13923_vm2, %v17036_v25  ;;  %12690 = vmatpush3.bf16.msra.mxu0 %v14113_v2 }
 0x11b   :  { %12691 = vmatprep.subr.bf16.mxu0 %v17037_v60 }
 0x11d   :  { %11372 = vmatmul.mubr.f32.gmra.mrb[2].mxu0 %v785_v53 }
 0x11e   :  { %11374 = vmatprep.mubr.msk.f32.mxu0 %vm13923_vm2, %v17036_v25  ;;  %12693 = vmatpush3.bf16.msra.mxu0 %v14124_v11 }
 0x11f   :  { %12694 = vmatprep.subr.bf16.mxu0 %v17037_v60 }
 0x121   :  { %11375 = vmatmul.mubr.f32.gmra.mrb[4].mxu0 %v795_v46 }
 0x122   :  { %11385 = vmatprep.mubr.msk.f32.mxu0 %vm13923_vm2, %v17036_v25 }
 0x125   :  { %11386 = vmatmul.mubr.f32.vlgmr.msra.gmra.mrb[0].mxu0 %v776_v51 }
 0x126   :  { %11388 = vmatprep.mubr.msk.f32.mxu0 %vm13923_vm2, %v17036_v25  ;;  %12696 = vmatpush3.bf16.msra.mxu0 %v14145_v39  ;;  %v16872_v39 = vand.u32 4294901760, %v14321_v7 }
 0x127   :  { %12697 = vmatprep.subr.bf16.mxu0 %v17037_v60 }
 0x129   :  { %11389 = vmatmul.mubr.f32.gmra.mrb[2].mxu0 %v786_v54 }
 0x12a   :  { %11391 = vmatprep.mubr.msk.f32.mxu0 %vm13923_vm2, %v17036_v25  ;;  %12699 = vmatpush3.bf16.msra.mxu0 %v14147_v40 }
 0x12b   :  { %12700 = vmatprep.subr.bf16.mxu0 %v17037_v60 }
 0x12d   :  { %11392 = vmatmul.mubr.f32.gmra.mrb[4].mxu0 %v796_v22 }
 0x12e   :  { %11402 = vmatprep.mubr.msk.f32.mxu0 %vm13923_vm2, %v17036_v25 }
 0x131   :  { %11403 = vmatmul.mubr.f32.vlgmr.msra.gmra.mrb[0].mxu0 %v14241_v61 }
 0x132   :  { %11405 = vmatprep.mubr.msk.f32.mxu0 %vm13923_vm2, %v17036_v25  ;;  %12702 = vmatpush3.bf16.msra.mxu0 %v14113_v2  ;;  %v14317_v2 = vld [vmem:[#allocation2 + $0x28] sm:$0xff] }
 0x133   :  { %12703 = vmatprep.subr.bf16.mxu0 %v17037_v60  ;;  %v16876_v8 = vand.u32 4294901760, %v14317_v2  ;;  %v17070_v58 = vand.u32 4294901760, %v14317_v2 }
 0x135   :  { %11406 = vmatmul.mubr.f32.gmra.mrb[2].mxu0 %v14247_v35  ;;  %v14333_v62 = vpack.c.bf16 %v16875_v9, %v16876_v8  ;;  %v14582_v19 = vsub.f32 %v14317_v2, %v17070_v58  ;;  %v17075_v58 = vand.u32 4294901760, %v14528_v20 }
 0x136   :  { %11408 = vmatprep.mubr.msk.f32.mxu0 %vm13923_vm2, %v17036_v25  ;;  %12705 = vmatpush3.bf16.msra.mxu0 %v14124_v11  ;;  %v14325_v11 = vld [vmem:[#allocation2 + $0xb0] sm:$0xff] }
 0x137   :  { %v16871_v40 = vand.u32 4294901760, %v14325_v11  ;;  %17040 = vst [vmem:[#allocation27_spill] sm:$0xff] %v14333_v62  ;;  %12707 = vmatprep.subr.bf16.mxu1 %v14333_v62  ;;  %v17073_v17 = vand.u32 4294901760, %v14325_v11 }
 0x138   :  { %12709 = vmatpush3.bf16.msra.mxu1 %v14333_v62 }
 0x139   :  { %11409 = vmatmul.mubr.f32.gmra.mrb[4].mxu0 %v14243_v34  ;;  %v14339_v1 = vpack.c.bf16 %v16871_v40, %v16872_v39  ;;  %v14505_v40 = vld [vmem:[#allocation2 + $0x80] sm:$0xff]  ;;  %v14507_v39 = vld [vmem:[#allocation2 + $0xf8] sm:$0xff] }
 0x13a   :  { %11419 = vmatprep.mubr.msk.f32.mxu0 %vm13923_vm2, %v17036_v25  ;;  %v17065_v41 = vand.u32 4294901760, %v14505_v40 }
 0x13b   :  { %17041 = vst [vmem:[#allocation28_spill] sm:$0xff] %v14339_v1  ;;  %12899 = vmatprep.subr.bf16.mxu0 %v14339_v1 }
 0x13d   :  { %11420 = vmatmul.mubr.f32.vlgmr.msra.gmra.mrb[0].mxu0 %v14241_v61 }
 0x13e   :  { %11422 = vmatprep.mubr.msk.f32.mxu0 %vm13923_vm2, %v17036_v25  ;;  %12901 = vmatpush3.bf16.msra.mxu0 %v14339_v1 }
 0x141   :  { %11423 = vmatmul.mubr.f32.gmra.mrb[2].mxu0 %v14247_v35 }
 0x142   :  { %11425 = vmatprep.mubr.msk.f32.mxu0 %vm13923_vm2, %v17036_v25  ;;  %v14509_v25 = vld [vmem:[#allocation2 + $0x100] sm:$0xff] }
 0x143   :  { %v17123_v1 = vand.u32 4294901760, %v14509_v25 }
 0x145   :  { %11426 = vmatmul.mubr.f32.gmra.mrb[4].mxu0 %v14243_v34 }
 0x210   :  { %v1260_v56 = vpop.f32.mrb[0].mxu0 }
 0x211   :  { %v13594_v21 = vadd.f32 %v10637_v3, %v1260_v56  ;;  %v11421_v6 = vpop.f32.mrb[1].mxu0 }
 0x213   :  { %v1276_v24 = vsub.f32 0.0, %v13594_v21 }
 0x214   :  { %v1266_v52 = vpop.f32.mrb[2].mxu0 }
 0x215   :  { %v1279_v38 = vmul.f32 1.442695, %v1276_v24  ;;  %v13595_v47 = vadd.f32 %v10637_v3, %v1266_v52  ;;  %v11424_v42 = vpop.f32.mrb[3].mxu0 }
 0x217   :  { %13787 = vpow2.f32 %v1279_v38  ;;  %v1277_v13 = vsub.f32 0.0, %v13595_v47 }
 0x218   :  { %v1272_v49 = vpop.f32.mrb[4].mxu0 }
 0x219   :  { %v1281_v27 = vmul.f32 1.442695, %v1277_v13  ;;  %v13596_v43 = vadd.f32 %v10637_v3, %v1272_v49  ;;  %v11427_v50 = vpop.f32.mrb[5].mxu0 }
 0x21b   :  { %13789 = vpow2.f32 %v1281_v27  ;;  %v1278_v55 = vsub.f32 0.0, %v13596_v43 }
 0x21d   :  { %v1283_v44 = vmul.f32 1.442695, %v1278_v55 }
 0x21f   :  { %13791 = vpow2.f32 %v1283_v44  ;;  %v14403_v44 = vld [vmem:[#allocation2 + $0x38] sm:$0xff] }
 0x221   :  { %v13788_v36 = vpop.eup %13787 }
 0x222   :  { %v1285_v0 = vadd.f32 1.0, %v13788_v36 }
 0x224   :  { %13793 = vrcp.f32 %v1285_v0 }
 0x225   :  { %v13790_v37 = vpop.eup %13789 }
 0x226   :  { %v1286_v61 = vadd.f32 1.0, %v13790_v37  ;;  %v14408_v37 = vld [vmem:[#allocation2 + $0x40] sm:$0xff] }
 0x228   :  { %13795 = vrcp.f32 %v1286_v61  ;;  %v14410_v61 = vld [vmem:[#allocation2 + $0xb8] sm:$0xff] }
 0x229   :  { %v13792_v10 = vpop.eup %13791 }
 0x22a   :  { %v1287_v34 = vadd.f32 1.0, %v13792_v10  ;;  %v14412_v10 = vld [vmem:[#allocation2 + $0xc0] sm:$0xff] }
 0x22c   :  { %13797 = vrcp.f32 %v1287_v34 }
 0x22e   :  { %v13794_v59 = vpop.eup %13793 }
 0x22f   :  { %v14345_v15 = vmul.f32 %v13794_v59, %v13594_v21 }
 0x231   :  { %v1300_v35 = vcombine.high %v14345_v15, %v14345_v15 }
 0x232   :  { %v13796_v51 = vpop.eup %13795 }
 0x233   :  { %v1314_v46 = vrot.slane %v1300_v35, %v13958_v5  ;;  %v1295_v53 = vmul.f32 %v13796_v51, %v13595_v47 }
 0x235   :  { %v1316_v33 = vcombine.high %v1314_v46, %v1314_v46  ;;  %v14351_v54 = vrot.slane %v1314_v46, %v13958_v5  ;;  %v1349_v57 = vcombine.high %v1295_v53, %v1295_v53  ;;  %v14354_v48 = vrot.slane %v1295_v53, %v13958_v5 }
 0x236   :  { %v13798_v22 = vpop.eup %13797 }
 0x237   :  { %17042 = vst [vmem:[#allocation29_spill] sm:$0xff] %v14351_v54  ;;  %v14357_v14 = vrot.slane %v1316_v33, %v13958_v5  ;;  %v1363_v26 = vrot.slane %v1349_v57, %v13958_v5  ;;  %v1296_v30 = vmul.f32 %v13798_v22, %v13596_v43  ;;  %v14362_v23 = vcombine.high %v14351_v54, %v14351_v54 }
 0x238   :  { %v14374_v6 = vrot.slane %v14354_v48, %v13958_v5  ;;  %v1455_v36 = vrot.slane %v14351_v54, %v14163_v63  ;;  %v16870_v33 = vand.u32 4294901760, %v14403_v44  ;;  %v16869_v22 = vand.u32 4294901760, %v14408_v37 }
 0x239   :  { %17043 = vst [vmem:[#allocation30_spill] sm:$0xff] %v14357_v14  ;;  %17044 = vst [vmem:[#allocation31_spill] sm:$0xff] %v14362_v23  ;;  %v1365_v31 = vcombine.high %v1363_v26, %v1363_v26  ;;  %v14365_v3 = vrot.slane %v1363_v26, %v13958_v5  ;;  %v1404_v56 = vrot.slane %v1296_v30, %v13958_v5  ;;  %v16868_v26 = vand.u32 4294901760, %v14410_v61 }
 0x23a   :  { %v14370_v21 = vcombine.high %v14357_v14, %v14357_v14  ;;  %17047 = vst [vmem:[#allocation34_spill] sm:$0xff] %v14374_v6  ;;  %v1435_v42 = vrot.slane %v14362_v23, %v14163_v63  ;;  %v1445_v13 = vrot.slane %v14357_v14, %v14163_v63  ;;  %v16867_v30 = vand.u32 4294901760, %v14412_v10  ;;  %v14549_v23 = vld [vmem:[#allocation2 + $0xa0] sm:$0xff] }
 0x23b   :  { %17045 = vst [vmem:[#allocation32_spill] sm:$0xff] %v14365_v3  ;;  %v14377_v24 = vrot.slane %v1365_v31, %v13958_v5  ;;  %v1405_v52 = vcombine.high %v1404_v56, %v1404_v56  ;;  %v14380_v38 = vrot.slane %v1404_v56, %v13958_v5  ;;  %v14390_v49 = vcombine.high %v14365_v3, %v14365_v3  ;;  %v14430_v31 = vld [vmem:[#allocation2 + $0x48] sm:$0xff]  ;;  %v14432_v56 = vld [vmem:[#allocation2 + $0x50] sm:$0xff] }
 0x23c   :  { %17046 = vst [vmem:[#allocation33_spill] sm:$0xff] %v14370_v21  ;;  %v1425_v47 = vrot.slane %v14370_v21, %v14163_v63 }
 0x23d   :  { %17048 = vst [vmem:[#allocation35_spill] sm:$0xff] %v14377_v24  ;;  %17049 = vst [vmem:[#allocation36_spill] sm:$0xff] %v14380_v38  ;;  %v14393_v27 = vrot.slane %v1405_v52, %v13958_v5  ;;  %v1429_v43 = vrot.slane %v14380_v38, %v14163_v63  ;;  %v14401_v55 = vcombine.high %v14377_v24, %v14377_v24 }
 0x23e   :  { %17050 = vst [vmem:[#allocation37_spill] sm:$0xff] %v14390_v49  ;;  %v1463_v50 = vsel %vm1462_vm3, %v14374_v6, %v1425_v47  ;;  %v1449_v46 = vrot.slane %v14390_v49, %v14163_v63  ;;  %v1459_v53 = vrot.slane %v14377_v24, %v14163_v63  ;;  %v14435_v47 = vld [vmem:[#allocation2 + $0xc8] sm:$0xff]  ;;  %v17067_v49 = vand.u32 4294901760, %v14507_v39 }
 0x23f   :  { %17051 = vst [vmem:[#allocation38_spill] sm:$0xff] %v14393_v27  ;;  %17052 = vst [vmem:[#allocation39_spill] sm:$0xff] %v14401_v55  ;;  %v1466_v0 = vsel %vm1465_vm4, %v1463_v50, %v1435_v42  ;;  %v1439_v59 = vrot.slane %v14401_v55, %v14163_v63  ;;  %v1464_v35 = vsel %vm1462_vm3, %v14393_v27, %v1429_v43  ;;  %v14437_v42 = vld [vmem:[#allocation2 + $0xd0] sm:$0xff]  ;;  %v14547_v55 = vld [vmem:[#allocation2 + $0x98] sm:$0xff]  ;;  %vm6235_vm3 = vcmask 39936  }
 0x240   :  { %v1469_v34 = vsel %vm1468_vm5, %v1466_v0, %v1445_v13  ;;  %v14439_v13 = vld [vmem:[#allocation2 + $0x58] sm:$0xff]  ;;  %v14446_v50 = vpack.c.bf16 %v16869_v22, %v16870_v33  ;;  %v14454_v0 = vld [vmem:[#allocation2 + $0x60] sm:$0xff]  ;;  %v14481_v22 = vld [vmem:[#allocation2 + $0xe8] sm:$0xff] }
 0x241   :  { %v1472_v51 = vsel %vm1471_vm6, %v1469_v34, %v1455_v36  ;;  %v1467_v57 = vsel %vm1465_vm4, %v1464_v35, %v1439_v59  ;;  %v14452_v36 = vpack.c.bf16 %v16867_v30, %v16868_v26  ;;  %v16874_v34 = vand.u32 4294901760, %v14430_v31  ;;  %v14459_v35 = vld [vmem:[#allocation2 + $0xd8] sm:$0xff]  ;;  %v14477_v30 = vld [vmem:[#allocation2 + $0x68] sm:$0xff]  ;;  %v14479_v26 = vld [vmem:[#allocation2 + $0x70] sm:$0xff] }
 0x242   :  { %1556 = vrot.lane.b32.xlu1 %v1472_v51, %s13925_s0  ;;  %v1470_v52 = vsel %vm1468_vm5, %v1467_v57, %v1449_v46  ;;  %17053 = vst [vmem:[#allocation40_spill] sm:$0xff] %v14446_v50  ;;  %v16873_v59 = vand.u32 4294901760, %v14432_v56  ;;  %v14461_v51 = vld [vmem:[#allocation2 + $0xe0] sm:$0xff]  ;;  %12711 = vmatprep.subr.bf16.mxu1 %v14446_v50  ;;  %v16878_v46 = vand.u32 4294901760, %v14435_v47  ;;  %v16883_v57 = vand.u32 4294901760, %v14439_v13  ;;  %v14545_v27 = vld [vmem:[#allocation2 + $0x110] sm:$0xff] }
 0x243   :  { %v1473_v43 = vsel %vm1471_vm6, %v1470_v52, %v1459_v53  ;;  %17054 = vst [vmem:[#allocation41_spill] sm:$0xff] %v14452_v36  ;;  %12903 = vmatprep.subr.bf16.mxu0 %v14452_v36  ;;  %v16877_v53 = vand.u32 4294901760, %v14437_v42  ;;  %12713 = vmatpush3.bf16.msra.mxu1 %v14446_v50  ;;  %v16889_v8 = vand.u32 4294901760, %v14477_v30  ;;  %v17058_v60 = vand.u32 4294901760, %v14459_v35 }
 0x244   :  { %1558 = vrot.lane.b32.xlu0 %v1473_v43, %s13925_s0  ;;  %12905 = vmatpush3.bf16.msra.mxu0 %v14452_v36  ;;  %v14474_v52 = vpack.c.bf16 %v16873_v59, %v16874_v34  ;;  %v16882_v43 = vand.u32 4294901760, %v14454_v0  ;;  %v14491_v59 = vld [vmem:[#allocation2 + $0xf0] sm:$0xff]  ;;  %v14493_v34 = vld [vmem:[#allocation2 + $0x78] sm:$0xff]  ;;  %v17059_v28 = vand.u32 4294901760, %v14461_v51  ;;  %vm7007_vm4 = vcmask 1044480  }
 0x245   :  { %v14487_v33 = vpack.c.bf16 %v16877_v53, %v16878_v46  ;;  %v16888_v53 = vand.u32 4294901760, %v14479_v26  ;;  %v17064_v32 = vand.u32 4294901760, %v14493_v34  ;;  %vm8535_vm5 = vcmask 785408  }
 0x246   :  { %17055 = vst [vmem:[#allocation42_spill] sm:$0xff] %v14474_v52  ;;  %12715 = vmatprep.subr.bf16.mxu1 %v14474_v52  ;;  %v14500_v9 = vpack.c.bf16 %v16882_v43, %v16883_v57  ;;  %v14516_v43 = vpack.c.bf16 %v17059_v28, %v17058_v60  ;;  %v16895_v57 = vand.u32 4294901760, %v14491_v59  ;;  %v17062_v28 = vand.u32 4294901760, %v14481_v22 }
 0x247   :  { %17056 = vst [vmem:[#allocation43_spill] sm:$0xff] %v14487_v33  ;;  %12907 = vmatprep.subr.bf16.mxu0 %v14487_v33  ;;  %12717 = vmatpush3.bf16.msra.mxu1 %v14474_v52  ;;  %v14525_v46 = vpack.c.bf16 %v16888_v53, %v16889_v8  ;;  %v14541_v8 = vld [vmem:[#allocation2 + $0x90] sm:$0xff]  ;;  %v14567_v38 = vpack.c.bf16 %v17065_v41, %v17064_v32  ;;  %v17071_v32 = vand.u32 4294901760, %v14319_v4 }
 0x248   :  { %17057 = vst [vmem:[#allocation44_spill] sm:$0xff] %v14500_v9  ;;  %17060 = vst [vmem:[#allocation45_spill] sm:$0xff] %v14516_v43  ;;  %12909 = vmatpush3.bf16.msra.mxu0 %v14487_v33  ;;  %12719 = vmatprep.subr.bf16.mxu1 %v14500_v9  ;;  %v14536_v60 = vpack.c.bf16 %v16895_v57, %v17062_v28  ;;  %v14553_v28 = vld [vmem:[#allocation2 + $0x120] sm:$0xff]  ;;  %v17068_v57 = vand.u32 4294901760, %v14509_v25  ;;  %v14597_v53 = vsub.f32 %v14325_v11, %v17073_v17 }
 0x249   :  { %17061 = vst [vmem:[#allocation46_spill] sm:$0xff] %v14525_v46  ;;  %12911 = vmatprep.subr.bf16.mxu0 %v14516_v43  ;;  %17066 = vst [vmem:[#allocation48_spill] sm:$0xff] %v14567_v38  ;;  %v14587_v41 = vsub.f32 %v14319_v4, %v17071_v32  ;;  %v17076_v2 = vand.u32 4294901760, %v14541_v8  ;;  %v17078_v32 = vand.u32 4294901760, %v14543_v29  ;;  %v16916_v17 = vand.u32 4294901760, %v14582_v19 }
 0x24a   :  { %17063 = vst [vmem:[#allocation47_spill] sm:$0xff] %v14536_v60  ;;  %v14573_v21 = vpack.c.bf16 %v17068_v57, %v17067_v49  ;;  %v17072_v49 = vand.u32 4294901760, %v14321_v7  ;;  %17074 = vst [vmem:[#allocation50_spill] sm:$0xff] %v14597_v53 }
 0x24b   :  { %12721 = vmatpush3.bf16.msra.mxu1 %v14500_v9  ;;  %v14605_v4 = vpack.c.bf16 %v17076_v2, %v17075_v58  ;;  %v17081_v58 = vand.u32 4294901760, %v14547_v55  ;;  %v17082_v2 = vand.u32 4294901760, %v14549_v23  ;;  %v1837_v11 = vsub.f32 %v14582_v19, %v16916_v17 }
 0x24c   :  { %12913 = vmatpush3.bf16.msra.mxu0 %v14516_v43  ;;  %12723 = vmatprep.subr.bf16.mxu1 %v14525_v46  ;;  %17069 = vst [vmem:[#allocation49_spill] sm:$0xff] %v14573_v21  ;;  %v14592_v57 = vsub.f32 %v14321_v7, %v17072_v49  ;;  %v17079_v7 = vand.u32 4294901760, %v14545_v27  ;;  %v17087_v14 = vand.u32 4294901760, %v14587_v41  ;;  %v17091_v17 = vand.u32 4294901760, %v14408_v37 }
 0x24d   :  { %12915 = vmatprep.subr.bf16.mxu0 %v14536_v60  ;;  %17077 = vst [vmem:[#allocation51_spill] sm:$0xff] %v14605_v4  ;;  %v14623_v16 = vpack.c.bf16 %v17082_v2, %v17081_v58  ;;  %v17089_v58 = vand.u32 4294901760, %v14597_v53 }
 0x24e   :  { %v14611_v49 = vpack.c.bf16 %v17079_v7, %v17078_v32  ;;  %v17084_v32 = vand.u32 4294901760, %v14551_v45  ;;  %v17085_v7 = vand.u32 4294901760, %v14553_v28  ;;  %v1844_v18 = vsub.f32 %v14587_v41, %v17087_v14 }
 0x24f   :  { %12725 = vmatpush3.bf16.msra.mxu1 %v14525_v46  ;;  %17083 = vst [vmem:[#allocation53_spill] sm:$0xff] %v14623_v16  ;;  %v17088_v63 = vand.u32 4294901760, %v14592_v57  ;;  %v2567_v2 = vsub.f32 %v14597_v53, %v17089_v58  ;;  %v14653_v14 = vsub.f32 %v14408_v37, %v17091_v17  ;;  %v1838_v58 = vand.u32 4294901760, %v1837_v11 }
 0x250   :  { %12917 = vmatpush3.bf16.msra.mxu0 %v14536_v60  ;;  %17080 = vst [vmem:[#allocation52_spill] sm:$0xff] %v14611_v49  ;;  %12727 = vmatprep.subr.bf16.mxu1 %v14567_v38  ;;  %v14629_v12 = vpack.c.bf16 %v17085_v7, %v17084_v32  ;;  %v17090_v32 = vand.u32 4294901760, %v14403_v44  ;;  %v17094_v17 = vand.u32 4294901760, %v14412_v10  ;;  %v17095_v11 = vand.u32 4294901760, %v14430_v31 }
 0x251   :  { %12919 = vmatprep.subr.bf16.mxu0 %v14573_v21  ;;  %v2560_v60 = vsub.f32 %v14592_v57, %v17088_v63  ;;  %17092 = vst [vmem:[#allocation55_spill] sm:$0xff] %v14653_v14  ;;  %v17093_v63 = vand.u32 4294901760, %v14410_v61  ;;  %v2568_v43 = vand.u32 4294901760, %v2567_v2 }
 0x252   :  { %17086 = vst [vmem:[#allocation54_spill] sm:$0xff] %v14629_v12  ;;  %v14648_v7 = vsub.f32 %v14403_v44, %v17090_v32  ;;  %v16928_v32 = vand.u32 4294901760, %v14653_v14  ;;  %v14668_v9 = vsub.f32 %v14412_v10, %v17094_v17 }
 0x253   :  { %12729 = vmatpush3.bf16.msra.mxu1 %v14567_v38  ;;  %v14658_v46 = vsub.f32 %v14410_v61, %v17093_v63  ;;  %v2561_v38 = vand.u32 4294901760, %v2560_v60  ;;  %v17096_v60 = vand.u32 4294901760, %v14432_v56 }
 0x254   :  { %12921 = vmatpush3.bf16.msra.mxu0 %v14573_v21  ;;  %12731 = vmatprep.subr.bf16.mxu1 %v14605_v4  ;;  %v1845_v21 = vand.u32 4294901760, %v1844_v18  ;;  %v16929_v44 = vand.u32 4294901760, %v14648_v7  ;;  %v14677_v18 = vsub.f32 %v14430_v31, %v17095_v11  ;;  %v16935_v31 = vand.u32 4294901760, %v14668_v9 }
 0x255   :  { %12923 = vmatprep.subr.bf16.mxu0 %v14611_v49  ;;  %v16927_v37 = vand.u32 4294901760, %v14658_v46  ;;  %v14672_v63 = vpack.c.bf16 %v2568_v43, %v2561_v38  ;;  %v14682_v2 = vsub.f32 %v14432_v56, %v17096_v60  ;;  %v1858_v38 = vsub.f32 %v14653_v14, %v16928_v32 }
 0x256   :  { %v14670_v61 = vpack.c.bf16 %v1845_v21, %v1838_v58  ;;  %v1851_v21 = vsub.f32 %v14648_v7, %v16929_v44  ;;  %v16934_v56 = vand.u32 4294901760, %v14677_v18  ;;  %v17097_v58 = vand.u32 4294901760, %v14435_v47 }
 0x257   :  { %12733 = vmatpush3.bf16.msra.mxu1 %v14605_v4  ;;  %v2574_v10 = vsub.f32 %v14658_v46, %v16927_v37  ;;  %v17098_v11 = vand.u32 4294901760, %v14437_v42  ;;  %v1859_v32 = vand.u32 4294901760, %v1858_v38  ;;  %v17099_v4 = vand.u32 4294901760, %v14682_v2 }
 0x258   :  { %12925 = vmatpush3.bf16.msra.mxu0 %v14611_v49  ;;  %12735 = vmatprep.subr.bf16.mxu1 %v14623_v16  ;;  %v14703_v17 = vsub.f32 %v14435_v47, %v17097_v58  ;;  %v1852_v37 = vand.u32 4294901760, %v1851_v21  ;;  %v2581_v49 = vsub.f32 %v14668_v9, %v16935_v31  ;;  %v1865_v43 = vsub.f32 %v14677_v18, %v16934_v56 }
 0x259   :  { %12927 = vmatprep.subr.bf16.mxu0 %v14629_v12  ;;  %v14708_v60 = vsub.f32 %v14437_v42, %v17098_v11  ;;  %v2575_v44 = vand.u32 4294901760, %v2574_v10  ;;  %v1872_v47 = vsub.f32 %v14682_v2, %v17099_v4  ;;  %v17100_v10 = vand.u32 4294901760, %v14439_v13 }
 0x25a   :  { %v16940_v58 = vand.u32 4294901760, %v14703_v17  ;;  %v14723_v21 = vpack.c.bf16 %v1859_v32, %v1852_v37  ;;  %v2582_v38 = vand.u32 4294901760, %v2581_v49  ;;  %v17101_v56 = vand.u32 4294901760, %v14454_v0 }
 0x25b   :  { %12737 = vmatpush3.bf16.msra.mxu1 %v14623_v16  ;;  %v14728_v11 = vsub.f32 %v14439_v13, %v17100_v10  ;;  %v1866_v31 = vand.u32 4294901760, %v1865_v43  ;;  %v1873_v42 = vand.u32 4294901760, %v1872_v47  ;;  %v17102_v32 = vand.u32 4294901760, %v14708_v60 }
 0x25c   :  { %12929 = vmatpush3.bf16.msra.mxu0 %v14629_v12  ;;  %v14733_v4 = vsub.f32 %v14454_v0, %v17101_v56  ;;  %12739 = vmatprep.subr.bf16.mxu1 %v14670_v61  ;;  %v2588_v49 = vsub.f32 %v14703_v17, %v16940_v58  ;;  %v14743_v37 = vpack.c.bf16 %v2582_v38, %v2575_v44  ;;  %v17103_v56 = vand.u32 4294901760, %v14459_v35 }
 0x25d   :  { %12931 = vmatprep.subr.bf16.mxu0 %v14672_v63  ;;  %v2595_v13 = vsub.f32 %v14708_v60, %v17102_v32  ;;  %v16944_v10 = vand.u32 4294901760, %v14728_v11  ;;  %v14752_v43 = vpack.c.bf16 %v1873_v42, %v1866_v31  ;;  %v17104_v58 = vand.u32 4294901760, %v14461_v51 }
 0x25e   :  { %v16943_v0 = vand.u32 4294901760, %v14733_v4  ;;  %v14750_v12 = vsub.f32 %v14459_v35, %v17103_v56  ;;  %v2589_v47 = vand.u32 4294901760, %v2588_v49  ;;  %v17106_v31 = vand.u32 4294901760, %v14477_v30 }
 0x25f   :  { %v2596_v16 = vand.u32 4294901760, %v2595_v13  ;;  %v14757_v33 = vsub.f32 %v14461_v51, %v17104_v58  ;;  %v1879_v44 = vsub.f32 %v14728_v11, %v16944_v10  ;;  %v17108_v58 = vand.u32 4294901760, %v14479_v26 }
 0x260   :  { %v1886_v38 = vsub.f32 %v14733_v4, %v16943_v0  ;;  %v16945_v35 = vand.u32 4294901760, %v14750_v12  ;;  %v14769_v42 = vsub.f32 %v14477_v30, %v17106_v31  ;;  %v17110_v13 = vand.u32 4294901760, %v14481_v22 }
 0x261   :  { %17105 = vst [vmem:[#allocation56_spill] sm:$0xff] %v14757_v33  ;;  %v14771_v49 = vpack.c.bf16 %v2596_v16, %v2589_v47  ;;  %v16946_v51 = vand.u32 4294901760, %v14757_v33  ;;  %v14777_v32 = vsub.f32 %v14479_v26, %v17108_v58  ;;  %v1880_v0 = vand.u32 4294901760, %v1879_v44 }
 0x262   :  { %17107 = vst [vmem:[#allocation57_spill] sm:$0xff] %v14769_v42  ;;  %v14782_v56 = vsub.f32 %v14481_v22, %v17110_v13  ;;  %v1887_v10 = vand.u32 4294901760, %v1886_v38  ;;  %v2602_v30 = vsub.f32 %v14750_v12, %v16945_v35  ;;  %v16949_v16 = vand.u32 4294901760, %v14769_v42 }
 0x263   :  { %17109 = vst [vmem:[#allocation58_spill] sm:$0xff] %v14777_v32  ;;  %v2609_v47 = vsub.f32 %v14757_v33, %v16946_v51  ;;  %v17112_v58 = vand.u32 4294901760, %v14491_v59  ;;  %v17114_v35 = vand.u32 4294901760, %v14493_v34  ;;  %v17116_v31 = vand.u32 4294901760, %v14777_v32 }
 0x264   :  { %17111 = vst [vmem:[#allocation59_spill] sm:$0xff] %v14782_v56  ;;  %v14798_v44 = vpack.c.bf16 %v1887_v10, %v1880_v0  ;;  %v2603_v38 = vand.u32 4294901760, %v2602_v30  ;;  %v1893_v13 = vsub.f32 %v14769_v42, %v16949_v16  ;;  %v17118_v16 = vand.u32 4294901760, %v14505_v40 }
 0x265   :  { %v14796_v22 = vsub.f32 %v14491_v59, %v17112_v58  ;;  %v14806_v51 = vsub.f32 %v14493_v34, %v17114_v35  ;;  %v2610_v26 = vand.u32 4294901760, %v2609_v47  ;;  %v1900_v52 = vsub.f32 %v14777_v32, %v17116_v31 }
 0x266   :  { %v17117_v59 = vand.u32 4294901760, %v14782_v56  ;;  %v1894_v30 = vand.u32 4294901760, %v1893_v13  ;;  %v14819_v36 = vsub.f32 %v14505_v40, %v17118_v16  ;;  %v17120_v34 = vand.u32 4294901760, %v14507_v39 }
 0x267   :  { %17113 = vst [vmem:[#allocation60_spill] sm:$0xff] %v14796_v22  ;;  %17115 = vst [vmem:[#allocation61_spill] sm:$0xff] %v14806_v51  ;;  %v16957_v0 = vand.u32 4294901760, %v14796_v22  ;;  %v16956_v58 = vand.u32 4294901760, %v14806_v51  ;;  %v14826_v47 = vpack.c.bf16 %v2610_v26, %v2603_v38  ;;  %v1901_v31 = vand.u32 4294901760, %v1900_v52 }
 0x268   :  { %v2616_v10 = vsub.f32 %v14782_v56, %v17117_v59  ;;  %17119 = vst [vmem:[#allocation62_spill] sm:$0xff] %v14819_v36  ;;  %v14824_v35 = vsub.f32 %v14507_v39, %v17120_v34  ;;  %v16958_v40 = vand.u32 4294901760, %v14819_v36  ;;  %v14839_v39 = vsub.f32 %v14509_v25, %v17123_v1 }
 0x269   :  { %17122 = vst [vmem:[#allocation64_spill] sm:$0xff] %v14826_v47  ;;  %v2623_v13 = vsub.f32 %v14796_v22, %v16957_v0  ;;  %v1907_v59 = vsub.f32 %v14806_v51, %v16956_v58  ;;  %v14841_v26 = vpack.c.bf16 %v1901_v31, %v1894_v30  ;;  %v17126_v38 = vand.u32 4294901760, %v14528_v20 }
 0x26a   :  { %17121 = vst [vmem:[#allocation63_spill] sm:$0xff] %v14824_v35  ;;  %v2617_v50 = vand.u32 4294901760, %v2616_v10  ;;  %17124 = vst [vmem:[#allocation65_spill] sm:$0xff] %v14839_v39  ;;  %v17128_v34 = vand.u32 4294901760, %v14541_v8  ;;  %v1914_v16 = vsub.f32 %v14819_v36, %v16958_v40  ;;  %v17130_v25 = vand.u32 4294901760, %v14824_v35 }
 0x26b   :  { %17125 = vst [vmem:[#allocation66_spill] sm:$0xff] %v14841_v26  ;;  %v2624_v52 = vand.u32 4294901760, %v2623_v13  ;;  %v14846_v10 = vsub.f32 %v14528_v20, %v17126_v38  ;;  %v1908_v0 = vand.u32 4294901760, %v1907_v59  ;;  %v16959_v30 = vand.u32 4294901760, %v14839_v39 }
 0x26c   :  { %v14851_v58 = vsub.f32 %v14541_v8, %v17128_v34  ;;  %v2630_v1 = vsub.f32 %v14824_v35, %v17130_v25  ;;  %v17132_v8 = vand.u32 4294901760, %v14543_v29  ;;  %v1915_v38 = vand.u32 4294901760, %v1914_v16 }
 0x26d   :  { %17127 = vst [vmem:[#allocation67_spill] sm:$0xff] %v14846_v10  ;;  %v14860_v31 = vpack.c.bf16 %v2624_v52, %v2617_v50  ;;  %v16962_v20 = vand.u32 4294901760, %v14846_v10  ;;  %v2637_v40 = vsub.f32 %v14839_v39, %v16959_v30  ;;  %v17134_v25 = vand.u32 4294901760, %v14545_v27 }
 0x26e   :  { %17129 = vst [vmem:[#allocation68_spill] sm:$0xff] %v14851_v58  ;;  %v16965_v13 = vand.u32 4294901760, %v14851_v58  ;;  %v14867_v59 = vsub.f32 %v14543_v29, %v17132_v8  ;;  %v2631_v34 = vand.u32 4294901760, %v2630_v1  ;;  %v17136_v1 = vand.u32 4294901760, %v14547_v55 }
 0x26f   :  { %17131 = vst [vmem:[#allocation69_spill] sm:$0xff] %v14860_v31  ;;  %v14875_v50 = vsub.f32 %v14545_v27, %v17134_v25  ;;  %v1921_v52 = vsub.f32 %v14846_v10, %v16962_v20  ;;  %v14889_v30 = vpack.c.bf16 %v1915_v38, %v1908_v0  ;;  %v2638_v62 = vand.u32 4294901760, %v2637_v40 }
 0x270   :  { %17133 = vst [vmem:[#allocation70_spill] sm:$0xff] %v14867_v59  ;;  %v1928_v29 = vsub.f32 %v14851_v58, %v16965_v13  ;;  %v16970_v16 = vand.u32 4294901760, %v14867_v59  ;;  %v14887_v8 = vsub.f32 %v14547_v55, %v17136_v1  ;;  %v17138_v25 = vand.u32 4294901760, %v14549_v23 }
 0x271   :  { %17135 = vst [vmem:[#allocation71_spill] sm:$0xff] %v14875_v50  ;;  %v16967_v27 = vand.u32 4294901760, %v14875_v50  ;;  %v1922_v31 = vand.u32 4294901760, %v1921_v52  ;;  %v14901_v55 = vpack.c.bf16 %v2638_v62, %v2631_v34  ;;  %v17140_v38 = vand.u32 4294901760, %v14551_v45 }
 0x272   :  { %17137 = vst [vmem:[#allocation72_spill] sm:$0xff] %v14887_v8  ;;  %v14895_v20 = vsub.f32 %v14549_v23, %v17138_v25  ;;  %v1929_v26 = vand.u32 4294901760, %v1928_v29  ;;  %v2644_v13 = vsub.f32 %v14867_v59, %v16970_v16  ;;  %v16969_v47 = vand.u32 4294901760, %v14887_v8 }
 0x273   :  { %v2651_v0 = vsub.f32 %v14875_v50, %v16967_v27  ;;  %v14910_v23 = vsub.f32 %v14551_v45, %v17140_v38  ;;  %v17142_v62 = vand.u32 4294901760, %v14553_v28  ;;  %v14933_v38 = vpack.c.bf16 %v14597_v53, %v14592_v57 }
 0x274   :  { %17139 = vst [vmem:[#allocation73_spill] sm:$0xff] %v14895_v20  ;;  %v16968_v40 = vand.u32 4294901760, %v14895_v20  ;;  %v14912_v52 = vpack.c.bf16 %v1929_v26, %v1922_v31  ;;  %v2645_v29 = vand.u32 4294901760, %v2644_v13  ;;  %v1935_v1 = vsub.f32 %v14887_v8, %v16969_v47 }
 0x275   :  { %17141 = vst [vmem:[#allocation74_spill] sm:$0xff] %v14910_v23  ;;  %v14920_v34 = vsub.f32 %v14553_v28, %v17142_v62  ;;  %v2652_v25 = vand.u32 4294901760, %v2651_v0  ;;  %v16973_v45 = vand.u32 4294901760, %v14910_v23  ;;  %v14928_v26 = vpack.c.bf16 %v14587_v41, %v14582_v19 }
 0x276   :  { %v1942_v27 = vsub.f32 %v14895_v20, %v16968_v40  ;;  %v1936_v31 = vand.u32 4294901760, %v1935_v1  ;;  %v14937_v28 = vpack.c.bf16 %v14653_v14, %v14648_v7  ;;  %v14946_v1 = vpack.c.bf16 %v14668_v9, %v14658_v46 }
 0x277   :  { %17143 = vst [vmem:[#allocation75_spill] sm:$0xff] %v14920_v34  ;;  %v16974_v13 = vand.u32 4294901760, %v14920_v34  ;;  %v14939_v0 = vpack.c.bf16 %v2652_v25, %v2645_v29  ;;  %v2658_v40 = vsub.f32 %v14910_v23, %v16973_v45  ;;  %v14955_v29 = vpack.c.bf16 %v14682_v2, %v14677_v18 }
 0x278   :  { %v1943_v62 = vand.u32 4294901760, %v1942_v27  ;;  %v14959_v27 = vpack.c.bf16 %v14708_v60, %v14703_v17  ;;  %v14965_v45 = vpack.c.bf16 %v14733_v4, %v14728_v11 }
 0x279   :  { %v2665_v47 = vsub.f32 %v14920_v34, %v16974_v13  ;;  %v2659_v53 = vand.u32 4294901760, %v2658_v40  ;;  %v14977_v40 = vpack.c.bf16 %v14796_v22, %v14782_v56  ;;  %v14993_v13 = vpack.c.bf16 %v14875_v50, %v14867_v59 }
 0x27a   :  { %v14951_v16 = vpack.c.bf16 %v1943_v62, %v1936_v31  ;;  %v14969_v31 = vpack.c.bf16 %v14757_v33, %v14750_v12  ;;  %v14989_v62 = vpack.c.bf16 %v14851_v58, %v14846_v10  ;;  %v14997_v22 = vpack.c.bf16 %v14895_v20, %v14887_v8 }
 0x27b   :  { %v2666_v14 = vand.u32 4294901760, %v2665_v47  ;;  %v14973_v47 = vpack.c.bf16 %v14777_v32, %v14769_v42 }
 0x27d   :  { %v14961_v25 = vpack.c.bf16 %v2666_v14, %v2659_v53  ;;  %v14981_v53 = vpack.c.bf16 %v14819_v36, %v14806_v51  ;;  %v14985_v14 = vpack.c.bf16 %v14839_v39, %v14824_v35  ;;  %v15001_v36 = vpack.c.bf16 %v14920_v34, %v14910_v23 }
 0x27e   :  { %v1307_v39 = vrot.slane %v14345_v15, %v13958_v5  ;;  %v1364_v35 = vcombine.high %v14354_v48, %v14354_v48 }
 0x280   :  { %v1315_v58 = vcombine.high %v1307_v39, %v1307_v39  ;;  %v15008_v10 = vrot.slane %v1364_v35, %v13958_v5  ;;  %v15014_v20 = vrot.slane %v1307_v39, %v13958_v5  ;;  %v15026_v35 = vcombine.high %v14374_v6, %v14374_v6 }
 0x282   :  { %17144 = vst [vmem:[#allocation76_spill] sm:$0xff] %v15008_v10  ;;  %v15011_v50 = vrot.slane %v1315_v58, %v13958_v5  ;;  %17146 = vst [vmem:[#allocation78_spill] sm:$0xff] %v15014_v20  ;;  %v15018_v34 = vcombine.high %v15008_v10, %v15008_v10  ;;  %v1513_v8 = vcombine.low %v15008_v10, %v15026_v35 }
 0x283   :  { %17148 = vst [vmem:[#allocation80_spill] sm:$0xff] %v15026_v35 }
 0x284   :  { %17145 = vst [vmem:[#allocation77_spill] sm:$0xff] %v15011_v50  ;;  %17147 = vst [vmem:[#allocation79_spill] sm:$0xff] %v15018_v34  ;;  %v1474_v15 = vcombine.low %v15014_v20, %v15011_v50  ;;  %v10638_v48 = vcombine.high %v15014_v20, %v15011_v50  ;;  %v1514_v58 = vcombine.low %v15018_v34, %v14365_v3 }
 0x285   :  { %v1521_v56 = vrot.slane %v1513_v8, %v13958_v5  ;;  %v1496_v20 = vrot.slane %v14351_v54, %v13958_v5  ;;  %v1535_v34 = vrot.slane %v14377_v24, %v13958_v5 }
 0x286   :  { %v1482_v39 = vrot.slane %v1474_v15, %v13958_v5  ;;  %v1489_v23 = vrot.slane %v10638_v48, %v13958_v5  ;;  %v1528_v59 = vrot.slane %v1514_v58, %v13958_v5 }
 0x287   :  { %v1511_v15 = vrot.slane %v1496_v20, %v13958_v5 }
 0x288   :  { %v1497_v51 = vcombine.low %v1482_v39, %v1489_v23  ;;  %v1536_v6 = vcombine.low %v1521_v56, %v1528_v59  ;;  %v1550_v23 = vrot.slane %v1535_v34, %v13958_v5 }
 0x28a   :  { %v1504_v50 = vrot.slane %v1497_v51, %v13958_v5  ;;  %v1543_v48 = vrot.slane %v1536_v6, %v13958_v5 }
 0x28c   :  { %v1512_v10 = vcombine.low %v1504_v50, %v1511_v15  ;;  %v1551_v59 = vcombine.low %v1543_v48, %v1550_v23 }
 0x2b4   :  { %v1557_v3 = vpop.permute.xlu1 %1556 }
 0x2b5   :  { %v15045_v8 = vsel %vm1562_vm7, %v1512_v10, %v1557_v3 }
 0x2b6   :  { %17149 = vst [vmem:[#allocation81_spill] sm:$0xff] %v15045_v8  ;;  %v1567_v56 = vcombine.high %v15045_v8, %v15045_v8  ;;  %v1574_v51 = vrot.slane %v15045_v8, %v13958_v5  ;;  %v1559_v58 = vpop.permute.xlu0 %1558 }
 0x2b7   :  { %v15053_v6 = vsel %vm1562_vm7, %v1551_v59, %v1559_v58 }
 0x2b8   :  { %v1581_v20 = vrot.slane %v1567_v56, %v13958_v5  ;;  %v1582_v39 = vcombine.high %v1574_v51, %v1574_v51  ;;  %17150 = vst [vmem:[#allocation82_spill] sm:$0xff] %v15053_v6  ;;  %v1606_v50 = vcombine.high %v15053_v6, %v15053_v6  ;;  %v1613_v3 = vrot.slane %v15053_v6, %v13958_v5 }
 0x2b9   :  { %v1589_v10 = vrot.slane %v1574_v51, %v13958_v5 }
 0x2ba   :  { %v1596_v34 = vrot.slane %v1581_v20, %v13958_v5  ;;  %v1603_v15 = vrot.slane %v1582_v39, %v13958_v5  ;;  %v1620_v48 = vrot.slane %v1606_v50, %v13958_v5  ;;  %v1621_v23 = vcombine.high %v1613_v3, %v1613_v3 }
 0x2bb   :  { %v1628_v56 = vrot.slane %v1613_v3, %v13958_v5 }
 0x2bc   :  { %v1666_v24 = vcombine.low %v1589_v10, %v1603_v15  ;;  %v10640_v59 = vcombine.high %v1589_v10, %v1603_v15  ;;  %v1642_v58 = vrot.slane %v1621_v23, %v13958_v5  ;;  %v1635_v51 = vrot.slane %v1620_v48, %v13958_v5 }
 0x2bd   :  { %v1643_v54 = vcombine.high %v1628_v56, %v1628_v56  ;;  %v1668_v35 = vcombine.low %v1596_v34, %v1628_v56 }
 0x2be   :  { %v1676_v8 = vrot.slane %v1666_v24, %v13958_v5  ;;  %v1683_v6 = vrot.slane %v10640_v59, %v13958_v5  ;;  %v1644_v20 = vcombine.high %v1642_v58, %v1642_v58 }
 0x2bf   :  { %v1669_v32 = vcombine.low %v1642_v58, %v1643_v54  ;;  %v1690_v50 = vrot.slane %v1668_v35, %v13958_v5 }
 0x2c0   :  { %v1698_v39 = vcombine.low %v1676_v8, %v1683_v6  ;;  %v1715_v3 = vcombine.low %v1644_v20, %v1635_v51  ;;  %v17180_v51 = vand.u32 4294901760, %v14677_v18 }
 0x2c1   :  { %v1697_v42 = vrot.slane %v1669_v32, %v13958_v5 }
 0x2c2   :  { %v1722_v10 = vrot.slane %v1715_v3, %v13958_v5  ;;  %v1706_v15 = vrot.slane %v1698_v39, %v13958_v5  ;;  %v17182_v39 = vand.u32 4294901760, %v14703_v17  ;;  %v17185_v3 = vand.u32 4294901760, %v14733_v4  ;;  %v17189_v17 = vld [vmem:[#allocation57_spill] sm:$0xff] }
 0x2c3   :  { %v1699_v33 = vcombine.low %v1690_v50, %v1697_v42  ;;  %v17184_v50 = vand.u32 4294901760, %v14728_v11 }
 0x2c4   :  { %v15074_v24 = vrot.slane %v1722_v10, %v13958_v5  ;;  %v17187_v10 = vld [vmem:[#allocation56_spill] sm:$0xff] }
 0x2c5   :  { %v1713_v34 = vrot.slane %v1699_v33, %v13958_v5  ;;  %v12846_v18 = vpack.c.bf16 %v17185_v3, %v17184_v50  ;;  %v17219_v3 = vld [vmem:[#allocation75_spill] sm:$0xff] }
 0x2c6   :  { %v15077_v48 = vand.u32 4294901760, %v15074_v24 }
 0x2c7   :  { %v15079_v54 = vcombine.low %v1706_v15, %v1713_v34  ;;  %v17188_v15 = vand.u32 4294901760, %v17187_v10 }
 0x2c8   :  { %v15086_v42 = vsub.f32 %v15074_v24, %v15077_v48 }
 0x2c9   :  { %v15082_v35 = vand.u32 4294901760, %v15079_v54 }
 0x2ca   :  { %v15091_v33 = vand.u32 4294901760, %v15086_v42 }
 0x2cb   :  { %v1814_v32 = vsub.f32 %v15079_v54, %v15082_v35 }
 0x2cc   :  { %v1826_v6 = vsub.f32 %v15086_v42, %v15091_v33 }
 0x2cd   :  { %v15093_v8 = vand.u32 4294901760, %v1814_v32 }
 0x2ce   :  { %v1827_v59 = vand.u32 4294901760, %v1826_v6  ;;  %v17195_v6 = vld [vmem:[#allocation60_spill] sm:$0xff] }
 0x2cf   :  { %v1816_v23 = vsub.f32 %v1814_v32, %v15093_v8  ;;  %v17196_v4 = vand.u32 4294901760, %v17195_v6 }
 0x2d1   :  { %v1817_v56 = vand.u32 4294901760, %v1816_v23 }
 0x2d3   :  { %11460 = vmatprep.mubr.f32.mxu1 %v1817_v56  ;;  %11670 = vmatprep.mubr.f32.mxu0 %v1817_v56 }
 0x2d4   :  { %11461 = vmatmul.mubr.f32.vlgmr.msra.gmra.mrb[0].mxu1 %v1827_v59  ;;  %11671 = vmatmul.mubr.f32.vlgmr.msra.gmra.mrb[6].mxu0 %v1827_v59  ;;  %v17199_v59 = vld [vmem:[#allocation62_spill] sm:$0xff] }
 0x2d5   :  { %12741 = vmatpush3.bf16.msra.mxu1 %v14670_v61  ;;  %12933 = vmatpush3.bf16.msra.mxu0 %v14672_v63  ;;  %v17151_v61 = vld [vmem:[#allocation64_spill] sm:$0xff]  ;;  %v17152_v63 = vld [vmem:[#allocation66_spill] sm:$0xff] }
 0x2d6   :  { %11495 = vmatprep.mubr.f32.mxu1 %v15082_v35  ;;  %11705 = vmatprep.mubr.f32.mxu0 %v15082_v35 }
 0x2d7   :  { %12743 = vmatprep.subr.bf16.mxu1 %v14723_v21  ;;  %12935 = vmatprep.subr.bf16.mxu0 %v14743_v37 }
 0x2d9   :  { %12745 = vmatpush3.bf16.msra.mxu1 %v14723_v21  ;;  %12937 = vmatpush3.bf16.msra.mxu0 %v14743_v37  ;;  %v17153_v21 = vld [vmem:[#allocation69_spill] sm:$0xff]  ;;  %v17154_v37 = vld [vmem:[#allocation27_spill] sm:$0xff] }
 0x2da   :  { %12747 = vmatprep.subr.bf16.mxu1 %v14752_v43  ;;  %12939 = vmatprep.subr.bf16.mxu0 %v14771_v49 }
 0x2dd   :  { %12749 = vmatpush3.bf16.msra.mxu1 %v14752_v43  ;;  %12941 = vmatpush3.bf16.msra.mxu0 %v14771_v49  ;;  %v17155_v43 = vld [vmem:[#allocation28_spill] sm:$0xff] }
 0x2de   :  { %12751 = vmatprep.subr.bf16.mxu1 %v14798_v44  ;;  %12943 = vmatprep.subr.bf16.mxu0 %v17151_v61  ;;  %v17156_v49 = vld [vmem:[#allocation40_spill] sm:$0xff] }
 0x2e1   :  { %12753 = vmatpush3.bf16.msra.mxu1 %v14798_v44  ;;  %12945 = vmatpush3.bf16.msra.mxu0 %v17151_v61  ;;  %v17159_v44 = vld [vmem:[#allocation43_spill] sm:$0xff]  ;;  %v17200_v61 = vand.u32 4294901760, %v17199_v59 }
 0x2e2   :  { %12755 = vmatprep.subr.bf16.mxu1 %v17152_v63  ;;  %12947 = vmatprep.subr.bf16.mxu0 %v17153_v21 }
 0x2e5   :  { %12757 = vmatpush3.bf16.msra.mxu1 %v17152_v63  ;;  %12949 = vmatpush3.bf16.msra.mxu0 %v17153_v21  ;;  %v17201_v21 = vld [vmem:[#allocation63_spill] sm:$0xff] }
 0x2e6   :  { %12759 = vmatprep.subr.bf16.mxu1 %v14889_v30  ;;  %12951 = vmatprep.subr.bf16.mxu0 %v14901_v55 }
 0x2e9   :  { %12761 = vmatpush3.bf16.msra.mxu1 %v14889_v30  ;;  %12953 = vmatpush3.bf16.msra.mxu0 %v14901_v55  ;;  %v17160_v30 = vld [vmem:[#allocation44_spill] sm:$0xff]  ;;  %v17162_v55 = vld [vmem:[#allocation46_spill] sm:$0xff] }
 0x2ea   :  { %12763 = vmatprep.subr.bf16.mxu1 %v14912_v52  ;;  %12955 = vmatprep.subr.bf16.mxu0 %v14939_v0 }
 0x2ed   :  { %12765 = vmatpush3.bf16.msra.mxu1 %v14912_v52  ;;  %12957 = vmatpush3.bf16.msra.mxu0 %v14939_v0  ;;  %v17163_v52 = vld [vmem:[#allocation47_spill] sm:$0xff]  ;;  %v17169_v0 = vand.u32 4294901760, %v14582_v19 }
 0x2ee   :  { %12767 = vmatprep.subr.bf16.mxu1 %v14951_v16  ;;  %12959 = vmatprep.subr.bf16.mxu0 %v14961_v25 }
 0x2f1   :  { %12769 = vmatpush3.bf16.msra.mxu1 %v14951_v16  ;;  %12961 = vmatpush3.bf16.msra.mxu0 %v14961_v25  ;;  %v17161_v16 = vld [vmem:[#allocation45_spill] sm:$0xff]  ;;  %v17172_v25 = vand.u32 4294901760, %v14592_v57  ;;  %v17179_v57 = vand.u32 4294901760, %v14668_v9 }
 0x2f2   :  { %12771 = vmatprep.subr.bf16.mxu1 %v14928_v26  ;;  %12963 = vmatprep.subr.bf16.mxu0 %v14933_v38 }
 0x2f4   :  { %11496 = vmatmul.mubr.f32.vlgmr.msra.gmra.mrb[0].mxu1 %v15077_v48  ;;  %11706 = vmatmul.mubr.f32.vlgmr.msra.gmra.mrb[6].mxu0 %v15077_v48 }
 0x2f5   :  { %12773 = vmatpush3.bf16.msra.mxu1 %v14928_v26  ;;  %11530 = vmatprep.mubr.f32.mxu1 %v1814_v32  ;;  %v17165_v26 = vld [vmem:[#allocation49_spill] sm:$0xff] }
 0x2f6   :  { %12965 = vmatpush3.bf16.msra.mxu0 %v14933_v38  ;;  %11740 = vmatprep.mubr.f32.mxu0 %v1814_v32  ;;  %v17167_v38 = vld [vmem:[#allocation52_spill] sm:$0xff] }
 0x2f7   :  { %12775 = vmatprep.subr.bf16.mxu1 %v14937_v28  ;;  %12967 = vmatprep.subr.bf16.mxu0 %v14946_v1 }
 0x2f9   :  { %12777 = vmatpush3.bf16.msra.mxu1 %v14937_v28  ;;  %v17168_v28 = vld [vmem:[#allocation53_spill] sm:$0xff] }
 0x2fa   :  { %12969 = vmatpush3.bf16.msra.mxu0 %v14946_v1  ;;  %12779 = vmatprep.subr.bf16.mxu1 %v14955_v29  ;;  %v17170_v1 = vand.u32 4294901760, %v14587_v41  ;;  %v17178_v41 = vand.u32 4294901760, %v14658_v46  ;;  %v17183_v46 = vand.u32 4294901760, %v14708_v60  ;;  %v17190_v60 = vand.u32 4294901760, %v17189_v17 }
 0x2fb   :  { %12971 = vmatprep.subr.bf16.mxu0 %v14959_v27 }
 0x2fc   :  { %v13030_v58 = vpack.c.bf16 %v17179_v57, %v17178_v41  ;;  %v13034_v9 = vpack.c.bf16 %v17183_v46, %v17182_v39  ;;  %v17211_v41 = vld [vmem:[#allocation71_spill] sm:$0xff] }
 0x2fd   :  { %12781 = vmatpush3.bf16.msra.mxu1 %v14955_v29  ;;  %v12834_v29 = vpack.c.bf16 %v17170_v1, %v17169_v0  ;;  %v17202_v0 = vand.u32 4294901760, %v17201_v21  ;;  %v17203_v1 = vld [vmem:[#allocation65_spill] sm:$0xff]  ;;  %v17212_v57 = vand.u32 4294901760, %v17211_v41 }
 0x2fe   :  { %12973 = vmatpush3.bf16.msra.mxu0 %v14959_v27  ;;  %12783 = vmatprep.subr.bf16.mxu1 %v14965_v45  ;;  %v17171_v27 = vld [vmem:[#allocation54_spill] sm:$0xff] }
 0x2ff   :  { %12975 = vmatprep.subr.bf16.mxu0 %v14969_v31 }
 0x301   :  { %12785 = vmatpush3.bf16.msra.mxu1 %v14965_v45  ;;  %v17164_v45 = vld [vmem:[#allocation48_spill] sm:$0xff] }
 0x302   :  { %12977 = vmatpush3.bf16.msra.mxu0 %v14969_v31  ;;  %12787 = vmatprep.subr.bf16.mxu1 %v14973_v47  ;;  %v17173_v31 = vld [vmem:[#allocation50_spill] sm:$0xff] }
 0x303   :  { %12979 = vmatprep.subr.bf16.mxu0 %v14977_v40 }
 0x305   :  { %12789 = vmatpush3.bf16.msra.mxu1 %v14973_v47  ;;  %v17174_v47 = vand.u32 4294901760, %v17173_v31  ;;  %v17205_v31 = vld [vmem:[#allocation67_spill] sm:$0xff] }
 0x306   :  { %12981 = vmatpush3.bf16.msra.mxu0 %v14977_v40  ;;  %12791 = vmatprep.subr.bf16.mxu1 %v14981_v53 }
 0x307   :  { %12983 = vmatprep.subr.bf16.mxu0 %v14985_v14  ;;  %v13026_v40 = vpack.c.bf16 %v17174_v47, %v17172_v25  ;;  %v17206_v47 = vand.u32 4294901760, %v17205_v31 }
 0x309   :  { %12793 = vmatpush3.bf16.msra.mxu1 %v14981_v53  ;;  %v17175_v53 = vand.u32 4294901760, %v14648_v7  ;;  %v17181_v7 = vand.u32 4294901760, %v14682_v2  ;;  %v17186_v2 = vand.u32 4294901760, %v14750_v12  ;;  %v17197_v12 = vld [vmem:[#allocation61_spill] sm:$0xff] }
 0x30a   :  { %12985 = vmatpush3.bf16.msra.mxu0 %v14985_v14  ;;  %12795 = vmatprep.subr.bf16.mxu1 %v14989_v62  ;;  %v17176_v14 = vld [vmem:[#allocation55_spill] sm:$0xff]  ;;  %v17198_v56 = vand.u32 4294901760, %v17197_v12 }
 0x30b   :  { %12987 = vmatprep.subr.bf16.mxu0 %v14993_v13  ;;  %v17177_v19 = vand.u32 4294901760, %v17176_v14  ;;  %v12842_v20 = vpack.c.bf16 %v17181_v7, %v17180_v51  ;;  %v13038_v34 = vpack.c.bf16 %v17188_v15, %v17186_v2  ;;  %v17213_v51 = vld [vmem:[#allocation72_spill] sm:$0xff] }
 0x30c   :  { %v12854_v63 = vpack.c.bf16 %v17200_v61, %v17198_v56  ;;  %v17214_v7 = vand.u32 4294901760, %v17213_v51 }
 0x30d   :  { %12797 = vmatpush3.bf16.msra.mxu1 %v14989_v62  ;;  %v12838_v62 = vpack.c.bf16 %v17177_v19, %v17175_v53  ;;  %v17209_v19 = vld [vmem:[#allocation70_spill] sm:$0xff] }
 0x30e   :  { %12989 = vmatpush3.bf16.msra.mxu0 %v14993_v13  ;;  %12799 = vmatprep.subr.bf16.mxu1 %v14997_v22  ;;  %v17166_v13 = vld [vmem:[#allocation51_spill] sm:$0xff] }
 0x30f   :  { %12991 = vmatprep.subr.bf16.mxu0 %v15001_v36 }
 0x311   :  { %12801 = vmatpush3.bf16.msra.mxu1 %v14997_v22  ;;  %v17157_v22 = vld [vmem:[#allocation41_spill] sm:$0xff] }
 0x312   :  { %12993 = vmatpush3.bf16.msra.mxu0 %v15001_v36  ;;  %12803 = vmatprep.subr.bf16.mxu1 %v17154_v37  ;;  %v17158_v36 = vld [vmem:[#allocation42_spill] sm:$0xff] }
 0x313   :  { %12995 = vmatprep.subr.bf16.mxu0 %v17155_v43 }
 0x314   :  { %11531 = vmatmul.mubr.f32.vlgmr.msra.gmra.mrb[0].mxu1 %v15086_v42 }
 0x315   :  { %11741 = vmatmul.mubr.f32.vlgmr.msra.gmra.mrb[6].mxu0 %v15086_v42  ;;  %12805 = vmatpush3.bf16.msra.mxu1 %v17154_v37  ;;  %v17191_v42 = vld [vmem:[#allocation58_spill] sm:$0xff] }
 0x316   :  { %11565 = vmatprep.mubr.f32.mxu1 %v15093_v8  ;;  %12997 = vmatpush3.bf16.msra.mxu0 %v17155_v43  ;;  %v17192_v32 = vand.u32 4294901760, %v17191_v42 }
 0x317   :  { %11775 = vmatprep.mubr.f32.mxu0 %v15093_v8  ;;  %12807 = vmatprep.subr.bf16.mxu1 %v17156_v49  ;;  %v17193_v8 = vld [vmem:[#allocation59_spill] sm:$0xff] }
 0x318   :  { %12999 = vmatprep.subr.bf16.mxu0 %v17157_v22  ;;  %v17194_v11 = vand.u32 4294901760, %v17193_v8 }
 0x319   :  { %12809 = vmatpush3.bf16.msra.mxu1 %v17156_v49 }
 0x31a   :  { %13001 = vmatpush3.bf16.msra.mxu0 %v17157_v22  ;;  %12811 = vmatprep.subr.bf16.mxu1 %v17158_v36  ;;  %v13042_v23 = vpack.c.bf16 %v17196_v4, %v17194_v11 }
 0x31b   :  { %13003 = vmatprep.subr.bf16.mxu0 %v17159_v44 }
 0x31d   :  { %12813 = vmatpush3.bf16.msra.mxu1 %v17158_v36 }
 0x31e   :  { %13005 = vmatpush3.bf16.msra.mxu0 %v17159_v44  ;;  %12815 = vmatprep.subr.bf16.mxu1 %v17160_v30 }
 0x31f   :  { %13007 = vmatprep.subr.bf16.mxu0 %v17161_v16 }
 0x321   :  { %12817 = vmatpush3.bf16.msra.mxu1 %v17160_v30 }
 0x322   :  { %13009 = vmatpush3.bf16.msra.mxu0 %v17161_v16  ;;  %12819 = vmatprep.subr.bf16.mxu1 %v17162_v55 }
 0x323   :  { %13011 = vmatprep.subr.bf16.mxu0 %v17163_v52 }
 0x325   :  { %12821 = vmatpush3.bf16.msra.mxu1 %v17162_v55 }
 0x326   :  { %13013 = vmatpush3.bf16.msra.mxu0 %v17163_v52  ;;  %12823 = vmatprep.subr.bf16.mxu1 %v17164_v45 }
 0x327   :  { %13015 = vmatprep.subr.bf16.mxu0 %v17165_v26 }
 0x329   :  { %12825 = vmatpush3.bf16.msra.mxu1 %v17164_v45 }
 0x32a   :  { %13017 = vmatpush3.bf16.msra.mxu0 %v17165_v26  ;;  %12827 = vmatprep.subr.bf16.mxu1 %v17166_v13 }
 0x32b   :  { %13019 = vmatprep.subr.bf16.mxu0 %v17167_v38 }
 0x32d   :  { %12829 = vmatpush3.bf16.msra.mxu1 %v17166_v13 }
 0x32e   :  { %13021 = vmatpush3.bf16.msra.mxu0 %v17167_v38  ;;  %12831 = vmatprep.subr.bf16.mxu1 %v17168_v28 }
 0x32f   :  { %13023 = vmatprep.subr.bf16.mxu0 %v17171_v27 }
 0x331   :  { %12833 = vmatpush3.bf16.msra.mxu1 %v17168_v28 }
 0x332   :  { %13025 = vmatpush3.bf16.msra.mxu0 %v17171_v27  ;;  %12835 = vmatprep.subr.bf16.mxu1 %v12834_v29 }
 0x333   :  { %13027 = vmatprep.subr.bf16.mxu0 %v13026_v40 }
 0x334   :  { %11566 = vmatmul.mubr.f32.vlgmr.msra.gmra.mrb[0].mxu1 %v15091_v33 }
 0x335   :  { %11776 = vmatmul.mubr.f32.vlgmr.msra.gmra.mrb[6].mxu0 %v15091_v33  ;;  %12837 = vmatpush3.bf16.msra.mxu1 %v12834_v29  ;;  %v12850_v33 = vpack.c.bf16 %v17192_v32, %v17190_v60  ;;  %v17204_v29 = vand.u32 4294901760, %v17203_v1 }
 0x336   :  { %11600 = vmatprep.mubr.f32.mxu1 %v15082_v35  ;;  %13029 = vmatpush3.bf16.msra.mxu0 %v13026_v40  ;;  %v17207_v40 = vld [vmem:[#allocation68_spill] sm:$0xff] }
 0x337   :  { %11810 = vmatprep.mubr.f32.mxu0 %v15082_v35  ;;  %12839 = vmatprep.subr.bf16.mxu1 %v12838_v62  ;;  %v13046_v25 = vpack.c.bf16 %v17204_v29, %v17202_v0  ;;  %v17208_v53 = vand.u32 4294901760, %v17207_v40 }
 0x338   :  { %13031 = vmatprep.subr.bf16.mxu0 %v13030_v58 }
 0x339   :  { %12841 = vmatpush3.bf16.msra.mxu1 %v12838_v62  ;;  %v12858_v14 = vpack.c.bf16 %v17208_v53, %v17206_v47  ;;  %v17210_v62 = vand.u32 4294901760, %v17209_v19 }
 0x33a   :  { %13033 = vmatpush3.bf16.msra.mxu0 %v13030_v58  ;;  %12843 = vmatprep.subr.bf16.mxu1 %v12842_v20 }
 0x33b   :  { %13035 = vmatprep.subr.bf16.mxu0 %v13034_v9  ;;  %v13050_v58 = vpack.c.bf16 %v17212_v57, %v17210_v62 }
 0x33d   :  { %12845 = vmatpush3.bf16.msra.mxu1 %v12842_v20  ;;  %v17215_v20 = vld [vmem:[#allocation73_spill] sm:$0xff] }
 0x33e   :  { %13037 = vmatpush3.bf16.msra.mxu0 %v13034_v9  ;;  %12847 = vmatprep.subr.bf16.mxu1 %v12846_v18  ;;  %v17216_v39 = vand.u32 4294901760, %v17215_v20  ;;  %v17217_v9 = vld [vmem:[#allocation74_spill] sm:$0xff] }
 0x33f   :  { %13039 = vmatprep.subr.bf16.mxu0 %v13038_v34  ;;  %v17218_v50 = vand.u32 4294901760, %v17217_v9 }
 0x340   :  { %v12862_v46 = vpack.c.bf16 %v17216_v39, %v17214_v7 }
 0x341   :  { %12849 = vmatpush3.bf16.msra.mxu1 %v12846_v18  ;;  %v17220_v18 = vand.u32 4294901760, %v17219_v3 }
 0x342   :  { %13041 = vmatpush3.bf16.msra.mxu0 %v13038_v34  ;;  %12851 = vmatprep.subr.bf16.mxu1 %v12850_v33 }
 0x343   :  { %13043 = vmatprep.subr.bf16.mxu0 %v13042_v23  ;;  %v13054_v2 = vpack.c.bf16 %v17220_v18, %v17218_v50 }
 0x345   :  { %12853 = vmatpush3.bf16.msra.mxu1 %v12850_v33 }
 0x346   :  { %13045 = vmatpush3.bf16.msra.mxu0 %v13042_v23  ;;  %12855 = vmatprep.subr.bf16.mxu1 %v12854_v63 }
 0x347   :  { %13047 = vmatprep.subr.bf16.mxu0 %v13046_v25 }
 0x349   :  { %12857 = vmatpush3.bf16.msra.mxu1 %v12854_v63 }
 0x34a   :  { %13049 = vmatpush3.bf16.msra.mxu0 %v13046_v25  ;;  %12859 = vmatprep.subr.bf16.mxu1 %v12858_v14 }
 0x34b   :  { %13051 = vmatprep.subr.bf16.mxu0 %v13050_v58 }
 0x34d   :  { %12861 = vmatpush3.bf16.msra.mxu1 %v12858_v14 }
 0x34e   :  { %13053 = vmatpush3.bf16.msra.mxu0 %v13050_v58  ;;  %12863 = vmatprep.subr.bf16.mxu1 %v12862_v46 }
 0x34f   :  { %13055 = vmatprep.subr.bf16.mxu0 %v13054_v2 }
 0x351   :  { %12865 = vmatpush3.bf16.msra.mxu1 %v12862_v46  ;;  %v17221_v46 = vld [vmem:[#allocation23_spill] sm:$0xff] }
 0x352   :  { %13057 = vmatpush3.bf16.msra.mxu0 %v13054_v2  ;;  %12867 = vmatprep.subr.bf16.mxu1 %v17154_v37 }
 0x353   :  { %13059 = vmatprep.subr.bf16.mxu0 %v17155_v43 }
 0x354   :  { %11601 = vmatmul.mubr.f32.vlgmr.msra.gmra.mrb[0].mxu1 %v15077_v48 }
 0x355   :  { %11811 = vmatmul.mubr.f32.vlgmr.msra.gmra.mrb[6].mxu0 %v15077_v48  ;;  %12869 = vmatpush3.bf16.msra.mxu1 %v17154_v37  ;;  %v4201_v37 = vld [vmem:[#allocation2 + $0xb0] sm:$0xff] }
 0x356   :  { %11635 = vmatprep.mubr.f32.mxu1 %v15082_v35  ;;  %13061 = vmatpush3.bf16.msra.mxu0 %v17155_v43  ;;  %v4202_v43 = vld [vmem:[#allocation2 + $0xb8] sm:$0xff] }
 0x357   :  { %11845 = vmatprep.mubr.f32.mxu0 %v15082_v35  ;;  %12871 = vmatprep.subr.bf16.mxu1 %v17156_v49  ;;  %v4200_v35 = vld [vmem:[#allocation2 + $0xa8] sm:$0xff] }
 0x358   :  { %13063 = vmatprep.subr.bf16.mxu0 %v17157_v22  ;;  %4272 = vrot.lane.b32.xlu1 %v4200_v35, %s13925_s0 }
 0x359   :  { %12873 = vmatpush3.bf16.msra.mxu1 %v17156_v49  ;;  %4274 = vrot.lane.b32.xlu0 %v4201_v37, %s13925_s0  ;;  %v4203_v49 = vld [vmem:[#allocation2 + $0xc0] sm:$0xff] }
 0x35a   :  { %13065 = vmatpush3.bf16.msra.mxu0 %v17157_v22  ;;  %12875 = vmatprep.subr.bf16.mxu1 %v17158_v36  ;;  %v10641_v22 = vld [vmem:[#allocation2 + $0x4] ss:$0 sm:$0xff] }
 0x35b   :  { %13067 = vmatprep.subr.bf16.mxu0 %v17159_v44 }
 0x35c   :  { %4276 = vrot.lane.b32.xlu1 %v4202_v43, %s13925_s0 }
 0x35d   :  { %12877 = vmatpush3.bf16.msra.mxu1 %v17158_v36  ;;  %4278 = vrot.lane.b32.xlu0 %v4203_v49, %s13925_s0 }
 0x35e   :  { %13069 = vmatpush3.bf16.msra.mxu0 %v17159_v44  ;;  %12879 = vmatprep.subr.bf16.mxu1 %v17160_v30 }
 0x35f   :  { %13071 = vmatprep.subr.bf16.mxu0 %v17161_v16 }
 0x361   :  { %12881 = vmatpush3.bf16.msra.mxu1 %v17160_v30 }
 0x362   :  { %13073 = vmatpush3.bf16.msra.mxu0 %v17161_v16  ;;  %12883 = vmatprep.subr.bf16.mxu1 %v17162_v55 }
 0x363   :  { %13075 = vmatprep.subr.bf16.mxu0 %v17163_v52 }
 0x365   :  { %12885 = vmatpush3.bf16.msra.mxu1 %v17162_v55 }
 0x366   :  { %13077 = vmatpush3.bf16.msra.mxu0 %v17163_v52  ;;  %12887 = vmatprep.subr.bf16.mxu1 %v17164_v45 }
 0x367   :  { %13079 = vmatprep.subr.bf16.mxu0 %v17165_v26 }
 0x369   :  { %12889 = vmatpush3.bf16.msra.mxu1 %v17164_v45 }
 0x36a   :  { %13081 = vmatpush3.bf16.msra.mxu0 %v17165_v26  ;;  %12891 = vmatprep.subr.bf16.mxu1 %v17166_v13 }
 0x36b   :  { %13083 = vmatprep.subr.bf16.mxu0 %v17167_v38 }
 0x36d   :  { %12893 = vmatpush3.bf16.msra.mxu1 %v17166_v13 }
 0x36e   :  { %13085 = vmatpush3.bf16.msra.mxu0 %v17167_v38  ;;  %12895 = vmatprep.subr.bf16.mxu1 %v17168_v28 }
 0x36f   :  { %13087 = vmatprep.subr.bf16.mxu0 %v17171_v27 }
 0x371   :  { %12897 = vmatpush3.bf16.msra.mxu1 %v17168_v28 }
 0x372   :  { %13089 = vmatpush3.bf16.msra.mxu0 %v17171_v27 }
 0x374   :  { %11636 = vmatmul.mubr.f32.vlgmr.msra.gmra.mrb[0].mxu1 %v15077_v48 }
 0x375   :  { %11846 = vmatmul.mubr.f32.vlgmr.msra.gmra.mrb[6].mxu0 %v15077_v48 }
 0x3ca   :  { %v4273_v45 = vpop.permute.xlu1 %4272 }
 0x3cb   :  { %v4275_v26 = vpop.permute.xlu0 %4274  ;;  %v4325_v28 = vand.u32 4294901760, %v4273_v45 }
 0x3cc   :  { %v4328_v27 = vand.u32 4294901760, %v4275_v26 }
 0x3cd   :  { %v4427_v51 = vsub.f32 %v4273_v45, %v4325_v28 }
 0x3ce   :  { %v15317_v17 = vpack.c.bf16 %v4328_v27, %v4325_v28  ;;  %v4277_v23 = vpop.permute.xlu1 %4276  ;;  %v4434_v7 = vsub.f32 %v4275_v26, %v4328_v27 }
 0x3cf   :  { %v4279_v12 = vpop.permute.xlu0 %4278  ;;  %v4331_v29 = vand.u32 4294901760, %v4277_v23  ;;  %v4428_v18 = vand.u32 4294901760, %v4427_v51 }
 0x3d0   :  { %13091 = vmatprep.subr.bf16.mxu1 %v15317_v17  ;;  %v4334_v25 = vand.u32 4294901760, %v4279_v12  ;;  %v4435_v2 = vand.u32 4294901760, %v4434_v7 }
 0x3d1   :  { %13093 = vmatpush3.bf16.msra.mxu1 %v15317_v17  ;;  %v4441_v50 = vsub.f32 %v4277_v23, %v4331_v29  ;;  %v4429_v49 = vsub.f32 %v4427_v51, %v4428_v18 }
 0x3d2   :  { %v15331_v53 = vpack.c.bf16 %v4334_v25, %v4331_v29  ;;  %v4448_v35 = vsub.f32 %v4279_v12, %v4334_v25  ;;  %v15347_v45 = vpack.c.bf16 %v4435_v2, %v4428_v18 }
 0x3d3   :  { %v4442_v37 = vand.u32 4294901760, %v4441_v50 }
 0x3d4   :  { %13095 = vmatprep.subr.bf16.mxu1 %v15331_v53  ;;  %v4449_v43 = vand.u32 4294901760, %v4448_v35  ;;  %v15351_v28 = vpack.c.bf16 %v4448_v35, %v4441_v50 }
 0x3d5   :  { %13097 = vmatpush3.bf16.msra.mxu1 %v15331_v53 }
 0x447   :  { %v15310_v36 = vpop.f32.mrb[0].mxu1 }
 0x448   :  { %v11847_v44 = vpop.f32.mrb[6].mxu0  ;;  %v15312_v30 = vpop.f32.mrb[1].mxu1 }
 0x449   :  { %v13599_v16 = vadd.f32 %v11847_v44, %v10641_v22  ;;  %v3129_v48 = vpop.f32.mrb[7].mxu0  ;;  %v15344_v44 = vpack.c.bf16 %v4434_v7, %v4427_v51 }
 0x44a   :  { %v13600_v55 = vadd.f32 %v10641_v22, %v3129_v48  ;;  %v4436_v22 = vsub.f32 %v4434_v7, %v4435_v2 }
 0x44b   :  { %v3198_v52 = vrot.slane %v13599_v16, %v13958_v5  ;;  %v17222_v16 = vld [vmem:[#allocation24_spill] sm:$0xff] }
 0x44c   :  { %v3143_v13 = vcombine.high %v13600_v55, %v13600_v55  ;;  %v3150_v38 = vrot.slane %v13600_v55, %v13958_v5  ;;  %v4430_v55 = vand.u32 4294901760, %v4429_v49 }
 0x44d   :  { %v3199_v34 = vcombine.high %v3198_v52, %v3198_v52  ;;  %v3206_v56 = vrot.slane %v3198_v52, %v13958_v5  ;;  %v4437_v52 = vand.u32 4294901760, %v4436_v22 }
 0x44e   :  { %v3157_v10 = vrot.slane %v3143_v13, %v13958_v5  ;;  %v3158_v15 = vcombine.high %v3150_v38, %v3150_v38  ;;  %v3166_v42 = vrot.slane %v3150_v38, %v13958_v5  ;;  %v4443_v13 = vsub.f32 %v4441_v50, %v4442_v37  ;;  %v15407_v50 = vld [vmem:[#allocation2 + $0x130] sm:$0xff] }
 0x44f   :  { %v3213_v59 = vrot.slane %v3199_v34, %v13958_v5  ;;  %v15349_v26 = vpack.c.bf16 %v4437_v52, %v4430_v55  ;;  %v4450_v38 = vsub.f32 %v4448_v35, %v4449_v43 }
 0x450   :  { %v3159_v60 = vcombine.high %v3157_v10, %v3157_v10  ;;  %v3173_v32 = vrot.slane %v3157_v10, %v13958_v5  ;;  %v3180_v33 = vrot.slane %v3158_v15, %v13958_v5  ;;  %v4444_v27 = vand.u32 4294901760, %v4443_v13 }
 0x451   :  { %v3460_v40 = vrot.slane %v3213_v59, %v13958_v5  ;;  %v4451_v10 = vand.u32 4294901760, %v4450_v38  ;;  %v15353_v15 = vpack.c.bf16 %v4449_v43, %v4442_v37 }
 0x452   :  { %v3187_v8 = vrot.slane %v3159_v60, %v13958_v5  ;;  %v3189_v11 = vcombine.high %v3173_v32, %v3173_v32  ;;  %v3399_v6 = vcombine.low %v3166_v42, %v3180_v33  ;;  %v10642_v4 = vcombine.high %v3166_v42, %v3180_v33  ;;  %v17223_v60 = vld [vmem:[#allocation25_spill] sm:$0xff] }
 0x453   :  { %v3421_v61 = vrot.slane %v3173_v32, %v13958_v5  ;;  %v3475_v20 = vrot.slane %v3460_v40, %v13958_v5  ;;  %v15355_v34 = vpack.c.bf16 %v4451_v10, %v4444_v27  ;;  %v17224_v32 = vld [vmem:[#allocation26_spill] sm:$0xff] }
 0x454   :  { %v3191_v63 = vcombine.high %v3187_v8, %v3187_v8  ;;  %v3407_v21 = vrot.slane %v3399_v6, %v13958_v5  ;;  %v3414_v0 = vrot.slane %v10642_v4, %v13958_v5  ;;  %v3438_v1 = vcombine.low %v3187_v8, %v3189_v11  ;;  %v17225_v8 = vld [vmem:[#allocation22_spill] sm:$0xff]  ;;  %v10639_v6 = vld [vmem:[#allocation2 + $0x1] ss:$0 sm:$0xff] }
 0x455   :  { %v3436_v19 = vrot.slane %v3421_v61, %v13958_v5  ;;  %v13598_v4 = vadd.f32 %v10639_v6, %v15312_v30 }
 0x456   :  { %v3422_v31 = vcombine.low %v3407_v21, %v3414_v0  ;;  %v3439_v47 = vcombine.low %v3191_v63, %v3206_v56  ;;  %v3446_v62 = vrot.slane %v3438_v1, %v13958_v5 }
 0x457   :  { %v2418_v23 = vand.u32 2147483647, %v13598_v4  ;;  %v2416_v25 = vmax.f32 %v13598_v4, 0.0 }
 0x458   :  { %v3429_v14 = vrot.slane %v3422_v31, %v13958_v5  ;;  %v3453_v41 = vrot.slane %v3439_v47, %v13958_v5 }
 0x459   :  { %v2420_v12 = vsub.f32 0.0, %v2418_v23 }
 0x45a   :  { %v3437_v57 = vcombine.low %v3429_v14, %v3436_v19  ;;  %v3461_v58 = vcombine.low %v3446_v62, %v3453_v41  ;;  %v15398_v62 = vadd.f32 %v15310_v36, %v10639_v6 }
 0x45b   :  { %v2422_v56 = vmul.f32 1.442695, %v2420_v12 }
 0x45c   :  { %v3468_v39 = vrot.slane %v3461_v58, %v13958_v5  ;;  %v3482_v9 = vrot.slane %v3437_v57, %v17221_v46  ;;  %v3493_v48 = vrot.slane %v3437_v57, %v17222_v16  ;;  %v3504_v42 = vrot.slane %v3437_v57, %v17223_v60 }
 0x45d   :  { %v3515_v33 = vrot.slane %v3437_v57, %v17224_v32  ;;  %v3526_v11 = vrot.slane %v3437_v57, %v17225_v8  ;;  %13799 = vpow2.f32 %v2422_v56  ;;  %v2419_v51 = vand.u32 2147483647, %v15398_v62 }
 0x45e   :  { %v15342_v3 = vcombine.low %v3468_v39, %v3475_v20  ;;  %3488 = vbcast.lane.b32.xlu0 %v3482_v9, 264  ;;  %3484 = vbcast.lane.b32.xlu1 %v3482_v9, 256 }
 0x45f   :  { %v2421_v36 = vsub.f32 0.0, %v2419_v51 }
 0x460   :  { %v3537_v59 = vrot.slane %v15342_v3, %v17221_v46  ;;  %v3548_v30 = vrot.slane %v15342_v3, %v17222_v16  ;;  %v15367_v21 = vrot.slane %v15342_v3, %v17223_v60  ;;  %v15375_v0 = vrot.slane %v15342_v3, %v17224_v32 }
 0x461   :  { %v15383_v31 = vrot.slane %v15342_v3, %v17225_v8  ;;  %v15409_v3 = vld [vmem:[#allocation2 + $0x128] sm:$0xff]  ;;  %v2424_v49 = vmul.f32 1.442695, %v2421_v36 }
 0x462   :  { %3595 = vbcast.lane.b32.xlu0 %v3482_v9, 280  ;;  %3591 = vbcast.lane.b32.xlu1 %v3482_v9, 272 }
 0x466   :  { %3499 = vbcast.lane.b32.xlu0 %v3493_v48, 264  ;;  %3495 = vbcast.lane.b32.xlu1 %v3493_v48, 256 }
 0x467   :  { %v13800_v61 = vpop.eup %13799 }
 0x468   :  { %v2426_v63 = vadd.f32 1.0, %v13800_v61 }
 0x46a   :  { %3603 = vbcast.lane.b32.xlu0 %v3493_v48, 280  ;;  %3599 = vbcast.lane.b32.xlu1 %v3493_v48, 272  ;;  %13801 = vlog2.f32 %v2426_v63 }
 0x46b   :  { %13803 = vpow2.f32 %v2424_v49 }
 0x46e   :  { %3510 = vbcast.lane.b32.xlu0 %v3504_v42, 264  ;;  %3506 = vbcast.lane.b32.xlu1 %v3504_v42, 256 }
 0x472   :  { %3611 = vbcast.lane.b32.xlu0 %v3504_v42, 280  ;;  %3607 = vbcast.lane.b32.xlu1 %v3504_v42, 272 }
 0x474   :  { %v13802_v1 = vpop.eup %13801 }
 0x475   :  { %v2429_v29 = vmul.f32 0.6931472, %v13802_v1  ;;  %v13804_v56 = vpop.eup %13803 }
 0x476   :  { %3521 = vbcast.lane.b32.xlu0 %v3515_v33, 264  ;;  %3517 = vbcast.lane.b32.xlu1 %v3515_v33, 256  ;;  %v2427_v51 = vadd.f32 1.0, %v13804_v56  ;;  %v4205_v56 = vld [vmem:[#allocation2 + $0xd0] sm:$0xff] }
 0x477   :  { %v15385_v47 = vadd.f32 %v2429_v29, %v2416_v25 }
 0x479   :  { %v3225_v19 = vrot.slane %v15385_v47, %v13958_v5  ;;  %v15428_v13 = vmul.f32 %v15385_v47, %v15079_v54 }
 0x47a   :  { %3619 = vbcast.lane.b32.xlu0 %v3515_v33, 280  ;;  %3615 = vbcast.lane.b32.xlu1 %v3515_v33, 272 }
 0x47b   :  { %v3241_v58 = vrot.slane %v3225_v19, %v13958_v5  ;;  %v3233_v39 = vcombine.high %v3225_v19, %v3225_v19  ;;  %v3878_v32 = vrot.slane %v15428_v13, %v13958_v5 }
 0x47d   :  { %v15416_v35 = vrot.slane %v3233_v39, %v13958_v5  ;;  %v3263_v10 = vcombine.high %v3241_v58, %v3241_v58  ;;  %v15448_v4 = vrot.slane %v3878_v32, %v13958_v5 }
 0x47e   :  { %3532 = vbcast.lane.b32.xlu0 %v3526_v11, 264  ;;  %3528 = vbcast.lane.b32.xlu1 %v3526_v11, 256 }
 0x47f   :  { %v3300_v8 = vrot.slane %v3263_v10, %v17221_v46  ;;  %v3945_v29 = vrot.slane %v15448_v4, %v17221_v46 }
 0x481   :  { %v3343_v61 = vmul.f32 %v3300_v8, %v15409_v3 }
 0x482   :  { %3627 = vbcast.lane.b32.xlu0 %v3526_v11, 280  ;;  %3623 = vbcast.lane.b32.xlu1 %v3526_v11, 272 }
 0x486   :  { %3703 = vbcast.lane.b32.xlu0 %v3493_v48, 296  ;;  %3699 = vbcast.lane.b32.xlu1 %v3493_v48, 288 }
 0x48a   :  { %3783 = vbcast.lane.b32.xlu0 %v3493_v48, 312  ;;  %3779 = vbcast.lane.b32.xlu1 %v3493_v48, 304  ;;  %v3296_v48 = vrot.slane %v15416_v35, %v17221_v46 }
 0x48c   :  { %v3342_v60 = vmul.f32 %v3296_v48, %v15407_v50 }
 0x48e   :  { %3711 = vbcast.lane.b32.xlu0 %v3504_v42, 296  ;;  %3707 = vbcast.lane.b32.xlu1 %v3504_v42, 288 }
 0x492   :  { %3791 = vbcast.lane.b32.xlu0 %v3504_v42, 312  ;;  %3787 = vbcast.lane.b32.xlu1 %v3504_v42, 304  ;;  %v3341_v42 = vmul.f32 %v3296_v48, %v15409_v3 }
 0x494   :  { %v3363_v6 = vmul.f32 1.442695, %v3341_v42 }
 0x496   :  { %3695 = vbcast.lane.b32.xlu0 %v3482_v9, 296  ;;  %3691 = vbcast.lane.b32.xlu1 %v3482_v9, 288 }
 0x49a   :  { %3719 = vbcast.lane.b32.xlu0 %v3515_v33, 296  ;;  %3715 = vbcast.lane.b32.xlu1 %v3515_v33, 288 }
 0x49e   :  { %3775 = vbcast.lane.b32.xlu0 %v3482_v9, 312  ;;  %3771 = vbcast.lane.b32.xlu1 %v3482_v9, 304  ;;  %v3292_v9 = vrot.slane %v3241_v58, %v17221_v46 }
 0x4a0   :  { %v3340_v37 = vmul.f32 %v3292_v9, %v15407_v50  ;;  %v3339_v43 = vmul.f32 %v3292_v9, %v15409_v3 }
 0x4a2   :  { %3799 = vbcast.lane.b32.xlu0 %v3515_v33, 312  ;;  %3795 = vbcast.lane.b32.xlu1 %v3515_v33, 304  ;;  %v3361_v55 = vmul.f32 1.442695, %v3340_v37  ;;  %v3359_v52 = vmul.f32 1.442695, %v3339_v43 }
 0x4a4   :  { %13805 = vpow2.f32 %v3361_v55 }
 0x4a5   :  { %13807 = vpow2.f32 %v3359_v52 }
 0x4a6   :  { %3727 = vbcast.lane.b32.xlu0 %v3526_v11, 296  ;;  %3723 = vbcast.lane.b32.xlu1 %v3526_v11, 288 }
 0x4aa   :  { %3807 = vbcast.lane.b32.xlu0 %v3526_v11, 312  ;;  %3803 = vbcast.lane.b32.xlu1 %v3526_v11, 304  ;;  %v3365_v11 = vmul.f32 1.442695, %v3342_v60 }
 0x4ac   :  { %13809 = vpow2.f32 %v3365_v11 }
 0x4ad   :  { %13811 = vpow2.f32 %v3363_v6 }
 0x4ae   :  { %3543 = vbcast.lane.b32.xlu0 %v3537_v59, 264  ;;  %3539 = vbcast.lane.b32.xlu1 %v3537_v59, 256  ;;  %v13806_v1 = vpop.eup %13805  ;;  %13813 = vlog2.f32 %v2427_v51 }
 0x4af   :  { %v13808_v58 = vpop.eup %13807 }
 0x4b0   :  { %v4012_v43 = vmul.f32 0.0, %v13808_v58 }
 0x4b2   :  { %3635 = vbcast.lane.b32.xlu0 %v3537_v59, 280  ;;  %3631 = vbcast.lane.b32.xlu1 %v3537_v59, 272 }
 0x4b6   :  { %3554 = vbcast.lane.b32.xlu0 %v3548_v30, 264  ;;  %3550 = vbcast.lane.b32.xlu1 %v3548_v30, 256  ;;  %v13810_v10 = vpop.eup %13809 }
 0x4ba   :  { %3643 = vbcast.lane.b32.xlu0 %v3548_v30, 280  ;;  %3639 = vbcast.lane.b32.xlu1 %v3548_v30, 272 }
 0x4be   :  { %3565 = vbcast.lane.b32.xlu0 %v15367_v21, 264  ;;  %3561 = vbcast.lane.b32.xlu1 %v15367_v21, 256 }
 0x4c2   :  { %3651 = vbcast.lane.b32.xlu0 %v15367_v21, 280  ;;  %3647 = vbcast.lane.b32.xlu1 %v15367_v21, 272 }
 0x4c6   :  { %3576 = vbcast.lane.b32.xlu0 %v15375_v0, 264  ;;  %3572 = vbcast.lane.b32.xlu1 %v15375_v0, 256 }
 0x4ca   :  { %3659 = vbcast.lane.b32.xlu0 %v15375_v0, 280  ;;  %3655 = vbcast.lane.b32.xlu1 %v15375_v0, 272 }
 0x4ce   :  { %3587 = vbcast.lane.b32.xlu0 %v15383_v31, 264  ;;  %3583 = vbcast.lane.b32.xlu1 %v15383_v31, 256 }
 0x4d0   :  { %v15389_v40 = vpop.permute.xlu0 %3488  ;;  %v15391_v14 = vpop.permute.xlu1 %3484 }
 0x4d2   :  { %3667 = vbcast.lane.b32.xlu0 %v15383_v31, 280  ;;  %3663 = vbcast.lane.b32.xlu1 %v15383_v31, 272 }
 0x4d4   :  { %v3596_v41 = vpop.permute.xlu0 %3595  ;;  %v3592_v57 = vpop.permute.xlu1 %3591 }
 0x4d5   :  { %v3670_v63 = vsel %vm1562_vm7, %v15389_v40, %v3596_v41  ;;  %v3367_v40 = vmul.f32 1.442695, %v3343_v61  ;;  %v3265_v41 = vcombine.high %v15416_v35, %v15416_v35 }
 0x4d6   :  { %3735 = vbcast.lane.b32.xlu0 %v3537_v59, 296  ;;  %3731 = vbcast.lane.b32.xlu1 %v3537_v59, 288  ;;  %v3993_v9 = vmul.f32 %v3945_v29, %v3670_v63 }
 0x4d8   :  { %v15402_v7 = vpop.permute.xlu0 %3499  ;;  %v15404_v20 = vpop.permute.xlu1 %3495 }
 0x4da   :  { %3815 = vbcast.lane.b32.xlu0 %v3537_v59, 312  ;;  %3811 = vbcast.lane.b32.xlu1 %v3537_v59, 304  ;;  %v3344_v59 = vmul.f32 %v3300_v8, %v15407_v50  ;;  %v3916_v8 = vcombine.high %v15448_v4, %v15448_v4 }
 0x4dc   :  { %v15411_v18 = vpop.permute.xlu0 %3603  ;;  %v15413_v2 = vpop.permute.xlu1 %3599  ;;  %v3369_v39 = vmul.f32 1.442695, %v3344_v59  ;;  %v4204_v59 = vld [vmem:[#allocation2 + $0xc8] sm:$0xff] }
 0x4dd   :  { %v3672_v55 = vsel %vm1562_vm7, %v15402_v7, %v15411_v18  ;;  %v3304_v18 = vrot.slane %v3265_v41, %v17221_v46  ;;  %v4206_v41 = vld [vmem:[#allocation2 + $0xd8] sm:$0xff] }
 0x4de   :  { %3743 = vbcast.lane.b32.xlu0 %v3548_v30, 296  ;;  %3739 = vbcast.lane.b32.xlu1 %v3548_v30, 288  ;;  %13815 = vpow2.f32 %v3369_v39  ;;  %v3953_v39 = vrot.slane %v3916_v8, %v17221_v46  ;;  %v2417_v8 = vmax.f32 %v15398_v62, 0.0 }
 0x4df   :  { %13817 = vpow2.f32 %v3367_v40  ;;  %v3346_v4 = vmul.f32 %v3304_v18, %v15407_v50 }
 0x4e0   :  { %v15420_v22 = vpop.permute.xlu0 %3510  ;;  %v15422_v16 = vpop.permute.xlu1 %3506 }
 0x4e2   :  { %3823 = vbcast.lane.b32.xlu0 %v3548_v30, 312  ;;  %3819 = vbcast.lane.b32.xlu1 %v3548_v30, 304  ;;  %v3886_v30 = vcombine.high %v3878_v32, %v3878_v32  ;;  %v13812_v32 = vpop.eup %13811 }
 0x4e3   :  { %v13814_v40 = vpop.eup %13813 }
 0x4e4   :  { %v15430_v38 = vpop.permute.xlu0 %3611  ;;  %v15432_v27 = vpop.permute.xlu1 %3607  ;;  %v15469_v37 = vrot.slane %v3886_v30, %v13958_v5 }
 0x4e6   :  { %3751 = vbcast.lane.b32.xlu0 %v15367_v21, 296  ;;  %3747 = vbcast.lane.b32.xlu1 %v15367_v21, 288  ;;  %v3949_v35 = vrot.slane %v15469_v37, %v17221_v46 }
 0x4e8   :  { %v15440_v54 = vpop.permute.xlu0 %3521  ;;  %v15442_v33 = vpop.permute.xlu1 %3517 }
 0x4ea   :  { %3831 = vbcast.lane.b32.xlu0 %v15367_v21, 312  ;;  %3827 = vbcast.lane.b32.xlu1 %v15367_v21, 304  ;;  %v3669_v21 = vsel %vm1562_vm7, %v15391_v14, %v3592_v57  ;;  %v3218_v14 = vcombine.high %v15385_v47, %v15385_v47  ;;  %v4013_v57 = vmul.f32 0.0, %v13806_v1 }
 0x4eb   :  { %v3992_v36 = vmul.f32 %v3945_v29, %v3669_v21  ;;  %v3673_v29 = vsel %vm1562_vm7, %v15422_v16, %v15432_v27 }
 0x4ec   :  { %v15450_v23 = vpop.permute.xlu0 %3619  ;;  %v15452_v12 = vpop.permute.xlu1 %3615  ;;  %v15487_v52 = vadd.f32 %v4013_v57, %v3993_v9  ;;  %v15496_v7 = vrot.slane %v3218_v14, %v13958_v5  ;;  %v4207_v14 = vld [vmem:[#allocation2 + $0xe0] sm:$0xff]  ;;  %v3996_v16 = vmul.f32 %v3953_v39, %v3673_v29 }
 0x4ed   :  { %v15489_v47 = vadd.f32 %v4012_v43, %v3992_v36 }
 0x4ee   :  { %3767 = vbcast.lane.b32.xlu0 %v15383_v31, 296  ;;  %3763 = vbcast.lane.b32.xlu1 %v15383_v31, 288  ;;  %v4021_v11 = vmul.f32 %v13810_v10, %v15487_v52  ;;  %v15507_v30 = vrot.slane %v15496_v7, %v13958_v5 }
 0x4ef   :  { %v4020_v6 = vmul.f32 %v13812_v32, %v15489_v47 }
 0x4f0   :  { %v15464_v25 = vpop.permute.xlu0 %3532  ;;  %v15466_v19 = vpop.permute.xlu1 %3528 }
 0x4f2   :  { %3847 = vbcast.lane.b32.xlu0 %v15383_v31, 312  ;;  %3843 = vbcast.lane.b32.xlu1 %v15383_v31, 304  ;;  %v3671_v31 = vsel %vm1562_vm7, %v15404_v20, %v15413_v2  ;;  %v3995_v20 = vmul.f32 %v3949_v35, %v3672_v55 }
 0x4f3   :  { %v3994_v2 = vmul.f32 %v3949_v35, %v3671_v31  ;;  %v3308_v35 = vrot.slane %v15507_v30, %v17221_v46 }
 0x4f4   :  { %v15477_v49 = vpop.permute.xlu0 %3627  ;;  %v15479_v48 = vpop.permute.xlu1 %3623  ;;  %v4025_v61 = vadd.f32 %v4021_v11, %v3995_v20 }
 0x4f5   :  { %v4024_v21 = vadd.f32 %v4020_v6, %v3994_v2  ;;  %v3348_v29 = vmul.f32 %v3308_v35, %v15407_v50 }
 0x4f6   :  { %3759 = vbcast.lane.b32.xlu0 %v15375_v0, 296  ;;  %3755 = vbcast.lane.b32.xlu1 %v15375_v0, 288 }
 0x4f8   :  { %v3704_v60 = vpop.permute.xlu0 %3703  ;;  %v3700_v42 = vpop.permute.xlu1 %3699 }
 0x4fa   :  { %3839 = vbcast.lane.b32.xlu0 %v15375_v0, 312  ;;  %3835 = vbcast.lane.b32.xlu1 %v15375_v0, 304  ;;  %v3674_v0 = vsel %vm1562_vm7, %v15420_v22, %v15430_v38  ;;  %v3345_v22 = vmul.f32 %v3304_v18, %v15409_v3  ;;  %v13816_v38 = vpop.eup %13815  ;;  %v4208_v18 = vld [vmem:[#allocation2 + $0xe8] sm:$0xff] }
 0x4fb   :  { %v3997_v57 = vmul.f32 %v3953_v39, %v3674_v0  ;;  %v13818_v31 = vpop.eup %13817  ;;  %v4029_v20 = vmul.f32 %v13816_v38, %v4025_v61  ;;  %v2431_v0 = vmul.f32 0.6931472, %v13814_v40  ;;  %v3347_v39 = vmul.f32 %v3308_v35, %v15409_v3  ;;  %v4210_v40 = vld [vmem:[#allocation2 + $0xf8] sm:$0xff] }
 0x4fc   :  { %v3784_v63 = vpop.permute.xlu0 %3783  ;;  %v3780_v1 = vpop.permute.xlu1 %3779  ;;  %v4028_v2 = vmul.f32 %v13818_v31, %v4024_v21  ;;  %v3371_v32 = vmul.f32 1.442695, %v3345_v22 }
 0x4fd   :  { %v3852_v58 = vsel %vm1562_vm7, %v3704_v60, %v3784_v63  ;;  %v3851_v51 = vsel %vm1562_vm7, %v3700_v42, %v3780_v1  ;;  %v3373_v60 = vmul.f32 1.442695, %v3346_v4  ;;  %v4209_v42 = vld [vmem:[#allocation2 + $0xf0] sm:$0xff]  ;;  %v15527_v6 = vadd.f32 %v4029_v20, %v3997_v57  ;;  %v15531_v1 = vld [vmem:[#allocation2 + $0x2] ss:$0 sm:$0xff]  ;;  %v4212_v20 = vld [vmem:[#allocation2 + $0x108] sm:$0xff] }
 0x4fe   :  { %v4055_v9 = vmul.f32 %v4025_v61, %v3852_v58  ;;  %v4054_v36 = vmul.f32 %v4024_v21, %v3851_v51  ;;  %4282 = vrot.lane.b32.xlu0 %v4205_v56, %s13925_s0  ;;  %4280 = vrot.lane.b32.xlu1 %v4204_v59, %s13925_s0  ;;  %v15529_v59 = vadd.f32 %v4028_v2, %v3996_v16 }
 0x4ff   :  { %13819 = vpow2.f32 %v3373_v60  ;;  %v3234_v51 = vcombine.high %v15496_v7, %v15496_v7  ;;  %v3918_v7 = vcombine.high %v15469_v37, %v15469_v37 }
 0x500   :  { %v4079_v27 = vadd.f32 %v4055_v9, %v4054_v36  ;;  %v3712_v43 = vpop.permute.xlu0 %3711  ;;  %v3708_v55 = vpop.permute.xlu1 %3707  ;;  %v3871_v9 = vcombine.high %v15428_v13, %v15428_v13  ;;  %v4211_v36 = vld [vmem:[#allocation2 + $0x100] sm:$0xff]  ;;  %13821 = vpow2.f32 %v3371_v32  ;;  %v3375_v13 = vmul.f32 1.442695, %v3347_v39 }
 0x501   :  { %v15559_v2 = vrot.slane %v3234_v51, %v13958_v5 }
 0x502   :  { %v4080_v10 = vrot.slane %v4079_v27, 4  ;;  %4286 = vrot.lane.b32.xlu0 %v4207_v14, %s13925_s0  ;;  %4284 = vrot.lane.b32.xlu1 %v4206_v41, %s13925_s0  ;;  %v17226_v14 = vld [vmem:[#allocation81_spill] sm:$0xff]  ;;  %v15556_v35 = vrot.slane %v3871_v9, %v13958_v5 }
 0x503   :  { %v15547_v41 = vmul.f32 %v15531_v1, %v17226_v14 }
 0x504   :  { %v4081_v11 = vadd.f32 %v4080_v10, %v4079_v27  ;;  %v3792_v56 = vpop.permute.xlu0 %3791  ;;  %v3788_v63 = vpop.permute.xlu1 %3787  ;;  %v15549_v27 = vadd.f32 %v2431_v0, %v2417_v8  ;;  %v4213_v10 = vld [vmem:[#allocation2 + $0x110] sm:$0xff]  ;;  %v3957_v0 = vrot.slane %v3918_v7, %v17221_v46 }
 0x505   :  { %v3854_v61 = vsel %vm1562_vm7, %v3712_v43, %v3792_v56  ;;  %v3853_v21 = vsel %vm1562_vm7, %v3708_v55, %v3788_v63  ;;  %v3377_v43 = vmul.f32 1.442695, %v3348_v29  ;;  %v4151_v60 = vrot.slane %v15547_v41, 1 }
 0x506   :  { %v4082_v4 = vrot.slane %v4081_v11, 2  ;;  %v4057_v58 = vmul.f32 %v15527_v6, %v3854_v61  ;;  %v4056_v62 = vmul.f32 %v15529_v59, %v3853_v21  ;;  %4290 = vrot.lane.b32.xlu0 %v4209_v42, %s13925_s0  ;;  %4288 = vrot.lane.b32.xlu1 %v4208_v18, %s13925_s0  ;;  %v15564_v8 = vrot.slane %v15549_v27, %v13958_v5 }
 0x507   :  { %v3675_v56 = vsel %vm1562_vm7, %v15442_v33, %v15452_v12  ;;  %v4152_v63 = vrot.slane %v15547_v41, 2  ;;  %13823 = vpow2.f32 %v3377_v43  ;;  %v3264_v21 = vcombine.high %v15507_v30, %v15507_v30  ;;  %v4215_v33 = vld [vmem:[#allocation2 + $0x120] sm:$0xff] }
 0x508   :  { %v4083_v22 = vadd.f32 %v4082_v4, %v4081_v11  ;;  %v4086_v38 = vadd.f32 %v4057_v58, %v4056_v62  ;;  %v3696_v57 = vpop.permute.xlu0 %3695  ;;  %v3692_v16 = vpop.permute.xlu1 %3691  ;;  %v3676_v11 = vsel %vm1562_vm7, %v15440_v54, %v15450_v23  ;;  %v15582_v54 = vrot.slane %v15556_v35, %v13958_v5  ;;  %v4214_v23 = vld [vmem:[#allocation2 + $0x118] sm:$0xff] }
 0x509   :  { %13825 = vpow2.f32 %v3375_v13  ;;  %v3312_v12 = vrot.slane %v15559_v2, %v17221_v46  ;;  %v13820_v4 = vpop.eup %13819  ;;  %v3999_v58 = vmul.f32 %v3957_v0, %v3676_v11  ;;  %v3998_v62 = vmul.f32 %v3957_v0, %v3675_v56  ;;  %v15610_v0 = vld [vmem:[#allocation2 + $0x138] sm:$0x1f] }
 0x50a   :  { %v4084_v55 = vrot.slane %v4083_v22, 1  ;;  %v4087_v31 = vrot.slane %v4086_v38, 4  ;;  %4294 = vrot.lane.b32.xlu0 %v4211_v36, %s13925_s0  ;;  %4292 = vrot.lane.b32.xlu1 %v4210_v40, %s13925_s0  ;;  %v4153_v36 = vrot.slane %v15547_v41, 3  ;;  %v13822_v40 = vpop.eup %13821  ;;  %v3281_v30 = vrot.slane %v15564_v8, %v13958_v5 }
 0x50b   :  { %v3316_v13 = vrot.slane %v3264_v21, %v17221_v46 }
 0x50c   :  { %v4085_v42 = vadd.f32 %v4084_v55, %v4083_v22  ;;  %v4088_v18 = vadd.f32 %v4087_v31, %v4086_v38  ;;  %v3720_v37 = vpop.permute.xlu0 %3719  ;;  %v3716_v32 = vpop.permute.xlu1 %3715  ;;  %v4037_v38 = vmul.f32 %v13820_v4, %v15527_v6  ;;  %v4036_v31 = vmul.f32 %v13822_v40, %v15529_v59 }
 0x50d   :  { %v3349_v6 = vmul.f32 %v3312_v12, %v15409_v3  ;;  %v3677_v59 = vsel %vm1562_vm7, %v15466_v19, %v15479_v48  ;;  %v3352_v4 = vmul.f32 %v3316_v13, %v15407_v50 }
 0x50e   :  { %v15574_v29 = vadd.f32 %v4151_v60, %v4085_v42  ;;  %v4089_v61 = vrot.slane %v4088_v18, 2  ;;  %4298 = vrot.lane.b32.xlu0 %v4213_v10, %s13925_s0  ;;  %4296 = vrot.lane.b32.xlu1 %v4212_v20, %s13925_s0 }
 0x510   :  { %v4090_v51 = vadd.f32 %v4089_v61, %v4088_v18  ;;  %v3776_v39 = vpop.permute.xlu0 %3775  ;;  %v3772_v9 = vpop.permute.xlu1 %3771  ;;  %v3678_v18 = vsel %vm1562_vm7, %v15464_v25, %v15477_v49  ;;  %v3266_v25 = vcombine.high %v15559_v2, %v15559_v2  ;;  %v3379_v2 = vmul.f32 1.442695, %v3349_v6 }
 0x511   :  { %v3850_v14 = vsel %vm1562_vm7, %v3696_v57, %v3776_v39  ;;  %v3849_v22 = vsel %vm1562_vm7, %v3692_v16, %v3772_v9  ;;  %v3961_v57 = vrot.slane %v15582_v54, %v17221_v46  ;;  %v3350_v16 = vmul.f32 %v3312_v12, %v15407_v50  ;;  %v13824_v19 = vpop.eup %13823 }
 0x512   :  { %v4091_v43 = vrot.slane %v4090_v51, 1  ;;  %v4053_v7 = vmul.f32 %v15487_v52, %v3850_v14  ;;  %v4052_v55 = vmul.f32 %v15489_v47, %v3849_v22  ;;  %4302 = vrot.lane.b32.xlu0 %v4215_v33, %s13925_s0  ;;  %4300 = vrot.lane.b32.xlu1 %v4214_v23, %s13925_s0  ;;  %v4041_v52 = vadd.f32 %v4037_v38, %v3999_v58 }
 0x513   :  { %v4040_v47 = vadd.f32 %v4036_v31, %v3998_v62  ;;  %v3274_v12 = vcombine.high %v15564_v8, %v15564_v8  ;;  %v3381_v49 = vmul.f32 1.442695, %v3350_v16  ;;  %v4001_v48 = vmul.f32 %v3961_v57, %v3678_v18 }
 0x514   :  { %v4092_v10 = vadd.f32 %v4091_v43, %v4090_v51  ;;  %v4072_v20 = vadd.f32 %v4053_v7, %v4052_v55  ;;  %v3800_v60 = vpop.permute.xlu0 %3799  ;;  %v3796_v42 = vpop.permute.xlu1 %3795  ;;  %v15618_v39 = vrot.slane %v3281_v30, %v17221_v46  ;;  %v4181_v9 = vrot.slane %v15610_v0, 1 }
 0x515   :  { %v3856_v11 = vsel %vm1562_vm7, %v3720_v37, %v3800_v60  ;;  %v3855_v56 = vsel %vm1562_vm7, %v3716_v32, %v3796_v42  ;;  %v4000_v37 = vmul.f32 %v3961_v57, %v3677_v59  ;;  %v3887_v8 = vcombine.high %v15556_v35, %v15556_v35 }
 0x516   :  { %v4171_v61 = vadd.f32 %v4152_v63, %v4092_v10  ;;  %v4073_v21 = vrot.slane %v4072_v20, 4  ;;  %v4059_v33 = vmul.f32 %v4041_v52, %v3856_v11  ;;  %v4058_v23 = vmul.f32 %v4040_v47, %v3855_v56  ;;  %v13826_v63 = vpop.eup %13825 }
 0x517   :  { %v4045_v22 = vmul.f32 %v13824_v19, %v4041_v52  ;;  %v4044_v38 = vmul.f32 %v13826_v63, %v4040_v47  ;;  %v3320_v43 = vrot.slane %v3266_v25, %v17221_v46  ;;  %13827 = vpow2.f32 %v3381_v49 }
 0x518   :  { %v4074_v58 = vadd.f32 %v4073_v21, %v4072_v20  ;;  %v4093_v32 = vadd.f32 %v4059_v33, %v4058_v23  ;;  %v3728_v62 = vpop.permute.xlu0 %3727  ;;  %v3724_v51 = vpop.permute.xlu1 %3723  ;;  %v3385_v7 = vmul.f32 1.442695, %v3352_v4  ;;  %v3351_v55 = vmul.f32 %v3316_v13, %v15409_v3 }
 0x519   :  { %v4049_v30 = vadd.f32 %v4045_v22, %v4001_v48  ;;  %v4048_v10 = vadd.f32 %v4044_v38, %v4000_v37  ;;  %v4182_v60 = vrot.slane %v15610_v0, 2  ;;  %13829 = vpow2.f32 %v3379_v2 }
 0x51a   :  { %v4075_v40 = vrot.slane %v4074_v58, 2  ;;  %v4094_v14 = vrot.slane %v4093_v32, 4  ;;  %v3288_v59 = vrot.slane %v3274_v12, %v13958_v5  ;;  %v3355_v13 = vmul.f32 %v15618_v39, %v15409_v3 }
 0x51b   :  { %v4154_v11 = vrot.slane %v15547_v41, 4  ;;  %v3354_v56 = vmul.f32 %v3320_v43, %v15407_v50  ;;  %v4191_v21 = vmul.f32 %v4181_v9, %v15574_v29  ;;  %v4192_v19 = vmul.f32 %v4182_v60, %v4171_v61 }
 0x51c   :  { %v4076_v31 = vadd.f32 %v4075_v40, %v4074_v58  ;;  %v4095_v57 = vadd.f32 %v4094_v14, %v4093_v32  ;;  %v3808_v16 = vpop.permute.xlu0 %3807  ;;  %v3804_v20 = vpop.permute.xlu1 %3803  ;;  %v15639_v12 = vrot.slane %v3887_v8, %v13958_v5  ;;  %v3383_v48 = vmul.f32 1.442695, %v3351_v55 }
 0x51d   :  { %v3858_v35 = vsel %vm1562_vm7, %v3728_v62, %v3808_v16  ;;  %v3857_v6 = vsel %vm1562_vm7, %v3724_v51, %v3804_v20  ;;  %v3353_v37 = vmul.f32 %v3320_v43, %v15409_v3  ;;  %13831 = vpow2.f32 %v3385_v7 }
 0x51e   :  { %v4077_v52 = vrot.slane %v4076_v31, 1  ;;  %v4096_v47 = vrot.slane %v4095_v57, 2  ;;  %v4061_v42 = vmul.f32 %v4049_v30, %v3858_v35  ;;  %v4060_v18 = vmul.f32 %v4048_v10, %v3857_v6 }
 0x51f   :  { %v4183_v29 = vrot.slane %v15610_v0, 3  ;;  %v3389_v51 = vmul.f32 1.442695, %v3354_v56  ;;  %v4231_v63 = vrot.slane %v4191_v21, 7  ;;  %v4234_v38 = vrot.slane %v4192_v19, 6 }
 0x520   :  { %v4078_v33 = vadd.f32 %v4077_v52, %v4076_v31  ;;  %v4097_v23 = vadd.f32 %v4096_v47, %v4095_v57  ;;  %v4100_v25 = vadd.f32 %v4061_v42, %v4060_v18  ;;  %v3544_v49 = vpop.permute.xlu0 %3543  ;;  %v3540_v4 = vpop.permute.xlu1 %3539  ;;  %13833 = vpow2.f32 %v3383_v48 }
 0x521   :  { %v13828_v22 = vpop.eup %13827  ;;  %v3965_v30 = vrot.slane %v15639_v12, %v17221_v46  ;;  %v3356_v10 = vmul.f32 %v15618_v39, %v15407_v50  ;;  %v3917_v20 = vcombine.high %v15582_v54, %v15582_v54  ;;  %v3387_v35 = vmul.f32 1.442695, %v3353_v37 }
 0x522   :  { %v4169_v58 = vadd.f32 %v15547_v41, %v4078_v33  ;;  %v4098_v32 = vrot.slane %v4097_v23, 1  ;;  %v4101_v62 = vrot.slane %v4100_v25, 4  ;;  %v3328_v21 = vrot.slane %v3288_v59, %v17221_v46 }
 0x523   :  { %v13830_v16 = vpop.eup %13829  ;;  %v3391_v33 = vmul.f32 1.442695, %v3355_v13  ;;  %13835 = vpow2.f32 %v3389_v51  ;;  %v3969_v19 = vrot.slane %v3917_v20, %v17221_v46  ;;  %v3919_v41 = vcombine.high %v15639_v12, %v15639_v12 }
 0x524   :  { %v4190_v2 = vmul.f32 %v15610_v0, %v4169_v58  ;;  %v4099_v61 = vadd.f32 %v4098_v32, %v4097_v23  ;;  %v4102_v40 = vadd.f32 %v4101_v62, %v4100_v25  ;;  %v3636_v8 = vpop.permute.xlu0 %3635  ;;  %v3632_v14 = vpop.permute.xlu1 %3631  ;;  %v4015_v25 = vmul.f32 0.0, %v13828_v22 }
 0x525   :  { %v3680_v43 = vsel %vm1562_vm7, %v3544_v49, %v3636_v8  ;;  %v3679_v55 = vsel %vm1562_vm7, %v3540_v4, %v3632_v14  ;;  %v4014_v54 = vmul.f32 0.0, %v13830_v16  ;;  %v3393_v49 = vmul.f32 1.442695, %v3356_v10 }
 0x526   :  { %v4233_v7 = vsel %vm4232_vm8, %v4231_v63, %v4190_v2  ;;  %v4172_v31 = vadd.f32 %v4153_v36, %v4099_v61  ;;  %v4103_v57 = vrot.slane %v4102_v40, 2  ;;  %v4003_v42 = vmul.f32 %v3965_v30, %v3680_v43 }
 0x527   :  { %v4236_v6 = vsel %vm4235_vm9, %v4234_v38, %v4233_v7  ;;  %v4002_v36 = vmul.f32 %v3965_v30, %v3679_v55  ;;  %v4184_v4 = vrot.slane %v15610_v0, 4  ;;  %13837 = vpow2.f32 %v3387_v35  ;;  %v13832_v48 = vpop.eup %13831 }
 0x528   :  { %v4193_v52 = vmul.f32 %v4183_v29, %v4172_v31  ;;  %v4104_v47 = vadd.f32 %v4103_v57, %v4102_v40  ;;  %v3555_v18 = vpop.permute.xlu0 %3554  ;;  %v3551_v56 = vpop.permute.xlu1 %3550  ;;  %v15662_v58 = vadd.f32 %v4015_v25, %v4003_v42  ;;  %v3357_v51 = vmul.f32 %v3328_v21, %v15409_v3 }
 0x529   :  { %v15664_v32 = vadd.f32 %v4014_v54, %v4002_v36  ;;  %13839 = vpow2.f32 %v3391_v33  ;;  %v3140_v22 = vmul.f32 %v15549_v27, %v15074_v24  ;;  %v3358_v38 = vmul.f32 %v3328_v21, %v15407_v50 }
 0x52a   :  { %v4237_v39 = vrot.slane %v4193_v52, 5  ;;  %v4105_v23 = vrot.slane %v4104_v47, 1  ;;  %v13834_v14 = vpop.eup %13833  ;;  %13841 = vpow2.f32 %v3393_v49  ;;  %v4023_v43 = vmul.f32 %v13832_v48, %v15662_v58 }
 0x52b   :  { %v4022_v55 = vmul.f32 %v13834_v14, %v15664_v32  ;;  %v3397_v27 = vmul.f32 1.442695, %v3358_v38  ;;  %v3926_v16 = vrot.slane %v3140_v22, %v13958_v5  ;;  %v3973_v10 = vrot.slane %v3919_v41, %v17221_v46 }
 0x52c   :  { %v4106_v37 = vadd.f32 %v4105_v23, %v4104_v47  ;;  %v3644_v59 = vpop.permute.xlu0 %3643  ;;  %v3640_v13 = vpop.permute.xlu1 %3639  ;;  %v4239_v62 = vsel %vm4238_vm10, %v4237_v39, %v4236_v6 }
 0x52d   :  { %v3682_v63 = vsel %vm1562_vm7, %v3555_v18, %v3644_v59  ;;  %v3681_v2 = vsel %vm1562_vm7, %v3551_v56, %v3640_v13  ;;  %v13836_v50 = vpop.eup %13835  ;;  %v3934_v54 = vrot.slane %v3926_v16, %v13958_v5 }
 0x52e   :  { %v4173_v61 = vadd.f32 %v4154_v11, %v4106_v37  ;;  %v4005_v40 = vmul.f32 %v3969_v19, %v3682_v63  ;;  %v4004_v8 = vmul.f32 %v3969_v19, %v3681_v2  ;;  %v3395_v11 = vmul.f32 1.442695, %v3357_v51 }
 0x52f   :  { %v3977_v37 = vrot.slane %v3934_v54, %v17221_v46 }
 0x530   :  { %v4194_v3 = vmul.f32 %v4184_v4, %v4173_v61  ;;  %v3566_v7 = vpop.permute.xlu0 %3565  ;;  %v3562_v31 = vpop.permute.xlu1 %3561  ;;  %v15680_v30 = vadd.f32 %v4023_v43, %v4005_v40  ;;  %v15682_v24 = vadd.f32 %v4022_v55, %v4004_v8  ;;  %13843 = vpow2.f32 %v3395_v11 }
 0x531   :  { %v13838_v52 = vpop.eup %13837  ;;  %13845 = vpow2.f32 %v3397_v27 }
 0x532   :  { %v4240_v57 = vrot.slane %v4194_v3, 4  ;;  %v4031_v42 = vmul.f32 %v13836_v50, %v15680_v30  ;;  %v4030_v18 = vmul.f32 %v13838_v52, %v15682_v24 }
 0x533   :  { %v13840_v21 = vpop.eup %13839 }
 0x534   :  { %v3652_v20 = vpop.permute.xlu0 %3651  ;;  %v3648_v35 = vpop.permute.xlu1 %3647  ;;  %v15686_v6 = vsel %vm4241_vm11, %v4240_v57, %v4239_v62  ;;  %v3927_v62 = vcombine.high %v3926_v16, %v3926_v16 }
 0x535   :  { %v3684_v12 = vsel %vm1562_vm7, %v3566_v7, %v3652_v20  ;;  %v3683_v47 = vsel %vm1562_vm7, %v3562_v31, %v3648_v35  ;;  %v13842_v49 = vpop.eup %13841 }
 0x536   :  { %v4007_v36 = vmul.f32 %v3973_v10, %v3684_v12  ;;  %v4006_v56 = vmul.f32 %v3973_v10, %v3683_v47  ;;  %v3941_v3 = vrot.slane %v3927_v62, %v13958_v5 }
 0x538   :  { %v15692_v33 = vadd.f32 %v4031_v42, %v4007_v36  ;;  %v15694_v39 = vadd.f32 %v4030_v18, %v4006_v56  ;;  %v3577_v23 = vpop.permute.xlu0 %3576  ;;  %v3573_v25 = vpop.permute.xlu1 %3572  ;;  %v3981_v31 = vrot.slane %v3941_v3, %v17221_v46 }
 0x53a   :  { %v4039_v19 = vmul.f32 %v13842_v49, %v15692_v33  ;;  %v4038_v48 = vmul.f32 %v13840_v21, %v15694_v39  ;;  %v13844_v40 = vpop.eup %13843 }
 0x53b   :  { %v13846_v43 = vpop.eup %13845 }
 0x53c   :  { %v3660_v59 = vpop.permute.xlu0 %3659  ;;  %v3656_v13 = vpop.permute.xlu1 %3655 }
 0x53d   :  { %v3686_v51 = vsel %vm1562_vm7, %v3577_v23, %v3660_v59  ;;  %v3685_v63 = vsel %vm1562_vm7, %v3573_v25, %v3656_v13 }
 0x53e   :  { %v4009_v2 = vmul.f32 %v3977_v37, %v3686_v51  ;;  %v4008_v61 = vmul.f32 %v3977_v37, %v3685_v63 }
 0x540   :  { %v15702_v8 = vadd.f32 %v4039_v19, %v4009_v2  ;;  %v15704_v14 = vadd.f32 %v4038_v48, %v4008_v61  ;;  %v3588_v22 = vpop.permute.xlu0 %3587  ;;  %v3584_v38 = vpop.permute.xlu1 %3583 }
 0x542   :  { %v4047_v55 = vmul.f32 %v13846_v43, %v15702_v8  ;;  %v4046_v7 = vmul.f32 %v13844_v40, %v15704_v14  ;;  %v17227_v40 = vld [vmem:[#allocation82_spill] sm:$0xff] }
 0x544   :  { %v3668_v41 = vpop.permute.xlu0 %3667  ;;  %v3664_v11 = vpop.permute.xlu1 %3663 }
 0x545   :  { %v3688_v57 = vsel %vm1562_vm7, %v3588_v22, %v3668_v41  ;;  %v3687_v50 = vsel %vm1562_vm7, %v3584_v38, %v3664_v11  ;;  %v15722_v22 = vmul.f32 %v15531_v1, %v17227_v40 }
 0x546   :  { %v4011_v27 = vmul.f32 %v3981_v31, %v3688_v57  ;;  %v4010_v16 = vmul.f32 %v3981_v31, %v3687_v50 }
 0x548   :  { %v3736_v10 = vpop.permute.xlu0 %3735  ;;  %v3732_v20 = vpop.permute.xlu1 %3731  ;;  %v4051_v35 = vadd.f32 %v4047_v55, %v4011_v27  ;;  %v4050_v52 = vadd.f32 %v4046_v7, %v4010_v16 }
 0x54c   :  { %v3816_v12 = vpop.permute.xlu0 %3815  ;;  %v3812_v47 = vpop.permute.xlu1 %3811 }
 0x54d   :  { %v3860_v42 = vsel %vm1562_vm7, %v3736_v10, %v3816_v12  ;;  %v3859_v36 = vsel %vm1562_vm7, %v3732_v20, %v3812_v47  ;;  %v4155_v47 = vrot.slane %v15722_v22, 1 }
 0x54e   :  { %v4063_v46 = vmul.f32 %v15662_v58, %v3860_v42  ;;  %v4062_v18 = vmul.f32 %v15664_v32, %v3859_v36 }
 0x550   :  { %v4107_v56 = vadd.f32 %v4063_v46, %v4062_v18  ;;  %v3744_v21 = vpop.permute.xlu0 %3743  ;;  %v3740_v23 = vpop.permute.xlu1 %3739 }
 0x552   :  { %v4108_v25 = vrot.slane %v4107_v56, 4 }
 0x554   :  { %v4109_v54 = vadd.f32 %v4108_v25, %v4107_v56  ;;  %v3824_v49 = vpop.permute.xlu0 %3823  ;;  %v3820_v19 = vpop.permute.xlu1 %3819 }
 0x555   :  { %v3862_v48 = vsel %vm1562_vm7, %v3744_v21, %v3824_v49  ;;  %v3861_v37 = vsel %vm1562_vm7, %v3740_v23, %v3820_v19 }
 0x556   :  { %v4110_v59 = vrot.slane %v4109_v54, 2  ;;  %v4065_v13 = vmul.f32 %v15680_v30, %v3862_v48  ;;  %v4064_v62 = vmul.f32 %v15682_v24, %v3861_v37 }
 0x558   :  { %v4111_v51 = vadd.f32 %v4110_v59, %v4109_v54  ;;  %v4114_v58 = vadd.f32 %v4065_v13, %v4064_v62  ;;  %v3752_v63 = vpop.permute.xlu0 %3751  ;;  %v3748_v32 = vpop.permute.xlu1 %3747 }
 0x55a   :  { %v4112_v2 = vrot.slane %v4111_v51, 1  ;;  %v4115_v61 = vrot.slane %v4114_v58, 4 }
 0x55c   :  { %v4113_v38 = vadd.f32 %v4112_v2, %v4111_v51  ;;  %v4116_v3 = vadd.f32 %v4115_v61, %v4114_v58  ;;  %v3832_v43 = vpop.permute.xlu0 %3831  ;;  %v3828_v55 = vpop.permute.xlu1 %3827 }
 0x55d   :  { %v3864_v7 = vsel %vm1562_vm7, %v3752_v63, %v3832_v43  ;;  %v3863_v30 = vsel %vm1562_vm7, %v3748_v32, %v3828_v55 }
 0x55e   :  { %v4174_v24 = vadd.f32 %v15722_v22, %v4113_v38  ;;  %v4117_v31 = vrot.slane %v4116_v3, 2  ;;  %v4067_v41 = vmul.f32 %v15692_v33, %v3864_v7  ;;  %v4066_v11 = vmul.f32 %v15694_v39, %v3863_v30 }
 0x560   :  { %v4195_v57 = vmul.f32 %v15610_v0, %v4174_v24  ;;  %v4118_v50 = vadd.f32 %v4117_v31, %v4116_v3  ;;  %v4121_v1 = vadd.f32 %v4067_v41, %v4066_v11  ;;  %v3768_v27 = vpop.permute.xlu0 %3767  ;;  %v3764_v16 = vpop.permute.xlu1 %3763 }
 0x562   :  { %v4243_v10 = vrot.slane %v4195_v57, 3  ;;  %v4119_v20 = vrot.slane %v4118_v50, 1  ;;  %v4122_v12 = vrot.slane %v4121_v1, 4 }
 0x564   :  { %v4120_v42 = vadd.f32 %v4119_v20, %v4118_v50  ;;  %v4123_v36 = vadd.f32 %v4122_v12, %v4121_v1  ;;  %v3848_v46 = vpop.permute.xlu0 %3847  ;;  %v3844_v18 = vpop.permute.xlu1 %3843  ;;  %v4245_v33 = vsel %vm4244_vm12, %v4243_v10, %v15686_v6  ;;  %v4156_v6 = vrot.slane %v15722_v22, 2 }
 0x565   :  { %v3868_v39 = vsel %vm1562_vm7, %v3768_v27, %v3848_v46  ;;  %v3867_v56 = vsel %vm1562_vm7, %v3764_v16, %v3844_v18  ;;  %v4158_v27 = vrot.slane %v15722_v22, 4 }
 0x566   :  { %v4175_v21 = vadd.f32 %v4155_v47, %v4120_v42  ;;  %v4124_v23 = vrot.slane %v4123_v36, 2  ;;  %v4071_v25 = vmul.f32 %v4051_v35, %v3868_v39  ;;  %v4070_v54 = vmul.f32 %v4050_v52, %v3867_v56 }
 0x568   :  { %v4196_v49 = vmul.f32 %v4181_v9, %v4175_v21  ;;  %v4125_v19 = vadd.f32 %v4124_v23, %v4123_v36  ;;  %v4135_v48 = vadd.f32 %v4071_v25, %v4070_v54  ;;  %v3760_v37 = vpop.permute.xlu0 %3759  ;;  %v3756_v59 = vpop.permute.xlu1 %3755 }
 0x56a   :  { %v4246_v13 = vrot.slane %v4196_v49, 2  ;;  %v4126_v62 = vrot.slane %v4125_v19, 1  ;;  %v4136_v51 = vrot.slane %v4135_v48, 4 }
 0x56c   :  { %v4127_v58 = vadd.f32 %v4126_v62, %v4125_v19  ;;  %v4137_v63 = vadd.f32 %v4136_v51, %v4135_v48  ;;  %v3840_v32 = vpop.permute.xlu0 %3839  ;;  %v3836_v2 = vpop.permute.xlu1 %3835  ;;  %v4248_v61 = vsel %vm4247_vm13, %v4246_v13, %v4245_v33  ;;  %v4157_v48 = vrot.slane %v15722_v22, 3 }
 0x56d   :  { %v3866_v35 = vsel %vm1562_vm7, %v3760_v37, %v3840_v32  ;;  %v3865_v52 = vsel %vm1562_vm7, %v3756_v59, %v3836_v2 }
 0x56e   :  { %v4176_v9 = vadd.f32 %v4156_v6, %v4127_v58  ;;  %v4138_v40 = vrot.slane %v4137_v63, 2  ;;  %v4069_v38 = vmul.f32 %v15702_v8, %v3866_v35  ;;  %v4068_v3 = vmul.f32 %v15704_v14, %v3865_v52 }
 0x570   :  { %v4197_v43 = vmul.f32 %v4182_v60, %v4176_v9  ;;  %v4139_v55 = vadd.f32 %v4138_v40, %v4137_v63  ;;  %v4128_v7 = vadd.f32 %v4069_v38, %v4068_v3  ;;  %v4283_v30 = vpop.permute.xlu0 %4282  ;;  %v4281_v24 = vpop.permute.xlu1 %4280 }
 0x571   :  { %v4340_v31 = vand.u32 4294901760, %v4283_v30  ;;  %v4337_v41 = vand.u32 4294901760, %v4281_v24 }
 0x572   :  { %v4140_v11 = vrot.slane %v4139_v55, 1  ;;  %v4129_v57 = vrot.slane %v4128_v7, 4  ;;  %v4249_v50 = vrot.slane %v4197_v43, 1 }
 0x573   :  { %v15743_v1 = vpack.c.bf16 %v4340_v31, %v4337_v41  ;;  %v15772_v2 = vsub.f32 %v4283_v30, %v4340_v31  ;;  %v15774_v52 = vsub.f32 %v4281_v24, %v4337_v41 }
 0x574   :  { %v4141_v8 = vadd.f32 %v4140_v11, %v4139_v55  ;;  %v4130_v16 = vadd.f32 %v4129_v57, %v4128_v7  ;;  %v4287_v14 = vpop.permute.xlu0 %4286  ;;  %v4285_v10 = vpop.permute.xlu1 %4284  ;;  %v4251_v20 = vsel %vm4250_vm14, %v4249_v50, %v4248_v61 }
 0x575   :  { %v4346_v60 = vand.u32 4294901760, %v4287_v14  ;;  %v4343_v12 = vand.u32 4294901760, %v4285_v10  ;;  %13099 = vmatprep.subr.bf16.mxu1 %v15743_v1  ;;  %v15748_v36 = vand.u32 4294901760, %v4251_v20  ;;  %v4463_v31 = vand.u32 4294901760, %v15772_v2 }
 0x576   :  { %v4178_v47 = vadd.f32 %v4158_v27, %v4141_v8  ;;  %v4131_v42 = vrot.slane %v4130_v16, 2  ;;  %13101 = vmatpush3.bf16.msra.mxu1 %v15743_v1  ;;  %v4456_v8 = vand.u32 4294901760, %v15774_v52 }
 0x577   :  { %v15750_v46 = vpack.c.bf16 %v4346_v60, %v4343_v12  ;;  %v15753_v56 = vsub.f32 %v4251_v20, %v15748_v36  ;;  %v15776_v9 = vsub.f32 %v4287_v14, %v4346_v60  ;;  %v15779_v3 = vsub.f32 %v4285_v10, %v4343_v12 }
 0x578   :  { %v4132_v18 = vadd.f32 %v4131_v42, %v4130_v16  ;;  %v4291_v33 = vpop.permute.xlu0 %4290  ;;  %v4289_v39 = vpop.permute.xlu1 %4288  ;;  %v4199_v19 = vmul.f32 %v4184_v4, %v4178_v47 }
 0x579   :  { %v4352_v21 = vand.u32 4294901760, %v4291_v33  ;;  %v4349_v23 = vand.u32 4294901760, %v4289_v39  ;;  %13103 = vmatprep.subr.bf16.mxu1 %v15750_v46  ;;  %v4407_v54 = vand.u32 4294901760, %v15753_v56  ;;  %v4477_v16 = vand.u32 4294901760, %v15776_v9 }
 0x57a   :  { %v4133_v25 = vrot.slane %v4132_v18, 1  ;;  %13105 = vmatpush3.bf16.msra.mxu1 %v15750_v46  ;;  %v4252_v4 = vrot.slane %v4199_v19, 7  ;;  %v4470_v20 = vand.u32 4294901760, %v15779_v3 }
 0x57b   :  { %v15758_v49 = vpack.c.bf16 %v4352_v21, %v4349_v23  ;;  %v4408_v62 = vsub.f32 %v15753_v56, %v4407_v54  ;;  %v15781_v43 = vsub.f32 %v4291_v33, %v4352_v21  ;;  %v15783_v55 = vsub.f32 %v4289_v39, %v4349_v23 }
 0x57c   :  { %v4134_v37 = vadd.f32 %v4133_v25, %v4132_v18  ;;  %v4295_v59 = vpop.permute.xlu0 %4294  ;;  %v4293_v13 = vpop.permute.xlu1 %4292 }
 0x57d   :  { %v4358_v51 = vand.u32 4294901760, %v4295_v59  ;;  %v4355_v6 = vand.u32 4294901760, %v4293_v13  ;;  %13107 = vmatprep.subr.bf16.mxu1 %v15758_v49  ;;  %v4409_v63 = vand.u32 4294901760, %v4408_v62  ;;  %v4491_v60 = vand.u32 4294901760, %v15781_v43 }
 0x57e   :  { %v4177_v58 = vadd.f32 %v4157_v48, %v4134_v37  ;;  %13109 = vmatpush3.bf16.msra.mxu1 %v15758_v49  ;;  %v4484_v12 = vand.u32 4294901760, %v15783_v55  ;;  %v4464_v48 = vsub.f32 %v15772_v2, %v4463_v31  ;;  %v4457_v37 = vsub.f32 %v15774_v52, %v4456_v8 }
 0x57f   :  { %v15768_v32 = vpack.c.bf16 %v4358_v51, %v4355_v6  ;;  %11880 = vmatprep.mubr.f32.mxu1 %v4409_v63  ;;  %v15787_v7 = vsub.f32 %v4295_v59, %v4358_v51  ;;  %v15789_v30 = vsub.f32 %v4293_v13, %v4355_v6  ;;  %v15825_v13 = vpack.c.bf16 %v4463_v31, %v4456_v8 }
 0x580   :  { %v4198_v22 = vmul.f32 %v4183_v29, %v4177_v58  ;;  %v4299_v61 = vpop.permute.xlu0 %4298  ;;  %v4297_v35 = vpop.permute.xlu1 %4296  ;;  %v15832_v6 = vpack.c.bf16 %v4477_v16, %v4470_v20  ;;  %v15835_v58 = vpack.c.bf16 %v4491_v60, %v4484_v12 }
 0x581   :  { %v4364_v40 = vand.u32 4294901760, %v4299_v61  ;;  %v4361_v38 = vand.u32 4294901760, %v4297_v35  ;;  %13111 = vmatprep.subr.bf16.mxu1 %v15768_v32  ;;  %v4505_v42 = vand.u32 4294901760, %v15787_v7  ;;  %v4498_v18 = vand.u32 4294901760, %v15789_v30 }
 0x582   :  { %13113 = vmatpush3.bf16.msra.mxu1 %v15768_v32  ;;  %v4253_v29 = vsel %vm4232_vm8, %v4252_v4, %v4198_v22 }
 0x583   :  { %v15791_v24 = vpack.c.bf16 %v4364_v40, %v4361_v38  ;;  %v15794_v41 = vsub.f32 %v4299_v61, %v4364_v40  ;;  %v15796_v11 = vsub.f32 %v4297_v35, %v4361_v38  ;;  %v15798_v27 = vand.u32 4294901760, %v4253_v29 }
 0x584   :  { %v4303_v57 = vpop.permute.xlu0 %4302  ;;  %v4301_v50 = vpop.permute.xlu1 %4300  ;;  %v15837_v63 = vpack.c.bf16 %v4505_v42, %v4498_v18  ;;  %v4458_v35 = vand.u32 4294901760, %v4457_v37  ;;  %v4465_v40 = vand.u32 4294901760, %v4464_v48  ;;  %v4478_v38 = vsub.f32 %v15776_v9, %v4477_v16 }
 0x585   :  { %v4370_v14 = vand.u32 4294901760, %v4303_v57  ;;  %v4367_v10 = vand.u32 4294901760, %v4301_v50  ;;  %13115 = vmatprep.subr.bf16.mxu1 %v15791_v24  ;;  %v15808_v47 = vsub.f32 %v4253_v29, %v15798_v27  ;;  %v4519_v21 = vand.u32 4294901760, %v15794_v41 }
 0x586   :  { %13117 = vmatpush3.bf16.msra.mxu1 %v15791_v24  ;;  %v4512_v23 = vand.u32 4294901760, %v15796_v11  ;;  %v4471_v29 = vsub.f32 %v15779_v3, %v4470_v20  ;;  %v13130_v31 = vpack.c.bf16 %v4465_v40, %v4458_v35  ;;  %v4506_v16 = vsub.f32 %v15787_v7, %v4505_v42 }
 0x587   :  { %v15812_v33 = vsub.f32 %v4303_v57, %v4370_v14  ;;  %v15814_v39 = vpack.c.bf16 %v4370_v14, %v4367_v10  ;;  %v15818_v25 = vsub.f32 %v4301_v50, %v4367_v10  ;;  %v4417_v19 = vand.u32 4294901760, %v15808_v47 }
 0x588   :  { %v15839_v22 = vpack.c.bf16 %v4519_v21, %v4512_v23  ;;  %v4492_v57 = vsub.f32 %v15781_v43, %v4491_v60  ;;  %v4485_v50 = vsub.f32 %v15783_v55, %v4484_v12  ;;  %v4472_v8 = vand.u32 4294901760, %v4471_v29 }
 0x589   :  { %v4533_v59 = vand.u32 4294901760, %v15812_v33  ;;  %13119 = vmatprep.subr.bf16.mxu1 %v15814_v39  ;;  %v4526_v62 = vand.u32 4294901760, %v15818_v25  ;;  %v4418_v51 = vsub.f32 %v15808_v47, %v4417_v19  ;;  %v4479_v14 = vand.u32 4294901760, %v4478_v38 }
 0x58a   :  { %13121 = vmatpush3.bf16.msra.mxu1 %v15814_v39  ;;  %v4499_v10 = vsub.f32 %v15789_v30, %v4498_v18  ;;  %v4493_v48 = vand.u32 4294901760, %v4492_v57  ;;  %v4520_v60 = vsub.f32 %v15794_v41, %v4519_v21  ;;  %v4513_v12 = vsub.f32 %v15796_v11, %v4512_v23  ;;  %v10644_v23 = vld [vmem:[#allocation2 + $0x4] ss:$0 sm:$0xff] }
 0x58b   :  { %13123 = vmatprep.subr.bf16.mxu1 %v15349_v26  ;;  %v4419_v4 = vand.u32 4294901760, %v4418_v51  ;;  %v15841_v61 = vpack.c.bf16 %v4533_v59, %v4526_v62  ;;  %v13134_v20 = vpack.c.bf16 %v4479_v14, %v4472_v8  ;;  %v4507_v51 = vand.u32 4294901760, %v4506_v16  ;;  %4321 = vrot.lane.b32.xlu1 %v10644_v23, %s13925_s0 }
 0x58c   :  { %v4500_v37 = vand.u32 4294901760, %v4499_v10  ;;  %v4534_v35 = vsub.f32 %v15812_v33, %v4533_v59  ;;  %v4527_v42 = vsub.f32 %v15818_v25, %v4526_v62  ;;  %v4514_v18 = vand.u32 4294901760, %v4513_v12  ;;  %v15859_v59 = vld [vmem:[#allocation2 + $0x140] sm:$0xff]  ;;  %v5146_v62 = vld [vmem:[#allocation2 + $0x148] sm:$0x1] }
 0x58d   :  { %11881 = vmatmul.mubr.f32.vlgmr.msra.gmra.mrb[2].mxu1 %v4419_v4  ;;  %v4521_v40 = vand.u32 4294901760, %v4520_v60  ;;  %5149 = vrot.lane.b32.xlu0 %v15859_v59, %s13925_s0  ;;  %v13162_v57 = vpack.c.bf16 %v15772_v2, %v15774_v52  ;;  %v13174_v8 = vpack.c.bf16 %v15787_v7, %v15789_v30  ;;  %v13182_v2 = vpack.c.bf16 %v15812_v33, %v15818_v25 }
 0x58e   :  { %13125 = vmatpush3.bf16.msra.mxu1 %v15349_v26  ;;  %11915 = vmatprep.mubr.f32.mxu1 %v15748_v36  ;;  %v4486_v26 = vand.u32 4294901760, %v4485_v50  ;;  %v4528_v29 = vand.u32 4294901760, %v4527_v42  ;;  %v13170_v50 = vpack.c.bf16 %v15781_v43, %v15783_v55 }
 0x58f   :  { %13127 = vmatprep.subr.bf16.mxu1 %v15355_v34  ;;  %v13146_v38 = vpack.c.bf16 %v4521_v40, %v4514_v18  ;;  %5151 = vrot.lane.b32.xlu1 %v5146_v62, %s13925_s0 }
 0x590   :  { %v13138_v4 = vpack.c.bf16 %v4493_v48, %v4486_v26 }
 0x592   :  { %13129 = vmatpush3.bf16.msra.mxu1 %v15355_v34  ;;  %v13142_v34 = vpack.c.bf16 %v4507_v51, %v4500_v37 }
 0x593   :  { %13131 = vmatprep.subr.bf16.mxu1 %v13130_v31 }
 0x596   :  { %13133 = vmatpush3.bf16.msra.mxu1 %v13130_v31  ;;  %v4535_v31 = vand.u32 4294901760, %v4534_v35 }
 0x597   :  { %13135 = vmatprep.subr.bf16.mxu1 %v13134_v20 }
 0x598   :  { %v13150_v21 = vpack.c.bf16 %v4535_v31, %v4528_v29 }
 0x59a   :  { %13137 = vmatpush3.bf16.msra.mxu1 %v13134_v20 }
 0x59b   :  { %13139 = vmatprep.subr.bf16.mxu1 %v13138_v4 }
 0x59e   :  { %13141 = vmatpush3.bf16.msra.mxu1 %v13138_v4 }
 0x59f   :  { %13143 = vmatprep.subr.bf16.mxu1 %v13142_v34 }
 0x5a2   :  { %13145 = vmatpush3.bf16.msra.mxu1 %v13142_v34 }
 0x5a3   :  { %13147 = vmatprep.subr.bf16.mxu1 %v13146_v38 }
 0x5a6   :  { %13149 = vmatpush3.bf16.msra.mxu1 %v13146_v38 }
 0x5a7   :  { %13151 = vmatprep.subr.bf16.mxu1 %v13150_v21 }
 0x5aa   :  { %13153 = vmatpush3.bf16.msra.mxu1 %v13150_v21 }
 0x5ab   :  { %13155 = vmatprep.subr.bf16.mxu1 %v15344_v44 }
 0x5ad   :  { %11916 = vmatmul.mubr.f32.vlgmr.msra.gmra.mrb[2].mxu1 %v15798_v27 }
 0x5ae   :  { %13157 = vmatpush3.bf16.msra.mxu1 %v15344_v44  ;;  %11950 = vmatprep.mubr.f32.mxu1 %v15753_v56  ;;  %v13166_v44 = vpack.c.bf16 %v15776_v9, %v15779_v3  ;;  %v5098_v56 = vrot.slane %v15610_v0, %v13958_v5 }
 0x5af   :  { %13159 = vmatprep.subr.bf16.mxu1 %v15351_v28 }
 0x5b0   :  { %v5106_v52 = vcombine.high %v5098_v56, %v5098_v56  ;;  %v5113_v30 = vrot.slane %v5098_v56, %v13958_v5 }
 0x5b2   :  { %13161 = vmatpush3.bf16.msra.mxu1 %v15351_v28  ;;  %v13178_v28 = vpack.c.bf16 %v15794_v41, %v15796_v11  ;;  %v5127_v11 = vrot.slane %v5106_v52, %v13958_v5 }
 0x5b3   :  { %13163 = vmatprep.subr.bf16.mxu1 %v13162_v57 }
 0x5b6   :  { %13165 = vmatpush3.bf16.msra.mxu1 %v13162_v57 }
 0x5b7   :  { %13167 = vmatprep.subr.bf16.mxu1 %v13166_v44 }
 0x5ba   :  { %13169 = vmatpush3.bf16.msra.mxu1 %v13166_v44 }
 0x5bb   :  { %13171 = vmatprep.subr.bf16.mxu1 %v13170_v50 }
 0x5be   :  { %13173 = vmatpush3.bf16.msra.mxu1 %v13170_v50 }
 0x5bf   :  { %13175 = vmatprep.subr.bf16.mxu1 %v13174_v8 }
 0x5c2   :  { %13177 = vmatpush3.bf16.msra.mxu1 %v13174_v8 }
 0x5c3   :  { %13179 = vmatprep.subr.bf16.mxu1 %v13178_v28 }
 0x5c6   :  { %13181 = vmatpush3.bf16.msra.mxu1 %v13178_v28 }
 0x5c7   :  { %13183 = vmatprep.subr.bf16.mxu1 %v13182_v2 }
 0x5ca   :  { %13185 = vmatpush3.bf16.msra.mxu1 %v13182_v2 }
 0x5cb   :  { %13187 = vmatprep.subr.bf16.mxu1 %v15317_v17 }
 0x5cd   :  { %11951 = vmatmul.mubr.f32.vlgmr.msra.gmra.mrb[2].mxu1 %v15808_v47 }
 0x5ce   :  { %13189 = vmatpush3.bf16.msra.mxu1 %v15317_v17  ;;  %11985 = vmatprep.mubr.f32.mxu1 %v4407_v54 }
 0x5cf   :  { %13191 = vmatprep.subr.bf16.mxu1 %v15331_v53 }
 0x5d2   :  { %13193 = vmatpush3.bf16.msra.mxu1 %v15331_v53 }
 0x5d3   :  { %13195 = vmatprep.subr.bf16.mxu1 %v15743_v1 }
 0x5d6   :  { %13197 = vmatpush3.bf16.msra.mxu1 %v15743_v1 }
 0x5d7   :  { %13199 = vmatprep.subr.bf16.mxu1 %v15750_v46 }
 0x5da   :  { %13201 = vmatpush3.bf16.msra.mxu1 %v15750_v46 }
 0x5db   :  { %13203 = vmatprep.subr.bf16.mxu1 %v15758_v49 }
 0x5de   :  { %13205 = vmatpush3.bf16.msra.mxu1 %v15758_v49 }
 0x5df   :  { %13207 = vmatprep.subr.bf16.mxu1 %v15768_v32 }
 0x5e2   :  { %13209 = vmatpush3.bf16.msra.mxu1 %v15768_v32 }
 0x5e3   :  { %13211 = vmatprep.subr.bf16.mxu1 %v15791_v24 }
 0x5e6   :  { %13213 = vmatpush3.bf16.msra.mxu1 %v15791_v24 }
 0x5e7   :  { %13215 = vmatprep.subr.bf16.mxu1 %v15814_v39 }
 0x5ea   :  { %13217 = vmatpush3.bf16.msra.mxu1 %v15814_v39 }
 0x5eb   :  { %13219 = vmatprep.subr.bf16.mxu1 %v15347_v45 }
 0x5ed   :  { %11986 = vmatmul.mubr.f32.vlgmr.msra.gmra.mrb[2].mxu1 %v4417_v19  ;;  %v5128_v19 = vcombine.high %v5113_v30, %v5113_v30 }
 0x5ee   :  { %13221 = vmatpush3.bf16.msra.mxu1 %v15347_v45  ;;  %12020 = vmatprep.mubr.f32.mxu1 %v15748_v36 }
 0x5ef   :  { %13223 = vmatprep.subr.bf16.mxu1 %v15353_v15 }
 0x5f2   :  { %13225 = vmatpush3.bf16.msra.mxu1 %v15353_v15 }
 0x5f3   :  { %13227 = vmatprep.subr.bf16.mxu1 %v15825_v13 }
 0x5f6   :  { %13229 = vmatpush3.bf16.msra.mxu1 %v15825_v13 }
 0x5f7   :  { %13231 = vmatprep.subr.bf16.mxu1 %v15832_v6 }
 0x5fa   :  { %13233 = vmatpush3.bf16.msra.mxu1 %v15832_v6 }
 0x5fb   :  { %13235 = vmatprep.subr.bf16.mxu1 %v15835_v58 }
 0x5fd   :  { %v4322_v54 = vpop.permute.xlu1 %4321 }
 0x5fe   :  { %13237 = vmatpush3.bf16.msra.mxu1 %v15835_v58 }
 0x5ff   :  { %13239 = vmatprep.subr.bf16.mxu1 %v15837_v63 }
 0x602   :  { %13241 = vmatpush3.bf16.msra.mxu1 %v15837_v63 }
 0x603   :  { %13243 = vmatprep.subr.bf16.mxu1 %v15839_v22 }
 0x606   :  { %13245 = vmatpush3.bf16.msra.mxu1 %v15839_v22  ;;  %v5129_v22 = vcombine.high %v5127_v11, %v5127_v11 }
 0x607   :  { %13247 = vmatprep.subr.bf16.mxu1 %v15841_v61 }
 0x60a   :  { %13249 = vmatpush3.bf16.msra.mxu1 %v15841_v61 }
 0x60b   :  { %13251 = vmatprep.subr.bf16.mxu1 %v15317_v17 }
 0x60d   :  { %12021 = vmatmul.mubr.f32.vlgmr.msra.gmra.mrb[2].mxu1 %v15798_v27 }
 0x60e   :  { %13253 = vmatpush3.bf16.msra.mxu1 %v15317_v17  ;;  %12055 = vmatprep.mubr.f32.mxu1 %v15748_v36  ;;  %v5150_v17 = vpop.permute.xlu0 %5149 }
 0x60f   :  { %13255 = vmatprep.subr.bf16.mxu1 %v15331_v53 }
 0x612   :  { %13257 = vmatpush3.bf16.msra.mxu1 %v15331_v53  ;;  %v5197_v53 = vsel %vm1562_vm7, %v5150_v17, 0 }
 0x613   :  { %13259 = vmatprep.subr.bf16.mxu1 %v15743_v1  ;;  %v15939_v45 = vand.u32 4294901760, %v5197_v53 }
 0x615   :  { %v15942_v15 = vsub.f32 %v5197_v53, %v15939_v45 }
 0x616   :  { %13261 = vmatpush3.bf16.msra.mxu1 %v15743_v1 }
 0x617   :  { %13263 = vmatprep.subr.bf16.mxu1 %v15750_v46  ;;  %v15945_v1 = vand.u32 4294901760, %v15942_v15 }
 0x619   :  { %v5272_v36 = vsub.f32 %v15942_v15, %v15945_v1 }
 0x61a   :  { %13265 = vmatpush3.bf16.msra.mxu1 %v15750_v46 }
 0x61b   :  { %13267 = vmatprep.subr.bf16.mxu1 %v15758_v49  ;;  %v15949_v46 = vand.u32 4294901760, %v5272_v36 }
 0x61d   :  { %12060 = vmatprep.mubr.f32.mxu0 %v15949_v46 }
 0x61e   :  { %13269 = vmatpush3.bf16.msra.mxu1 %v15758_v49  ;;  %v5091_v49 = vcombine.high %v15610_v0, %v15610_v0 }
 0x61f   :  { %13271 = vmatprep.subr.bf16.mxu1 %v15768_v32 }
 0x620   :  { %v5105_v55 = vrot.slane %v5091_v49, %v13958_v5 }
 0x622   :  { %13273 = vmatpush3.bf16.msra.mxu1 %v15768_v32  ;;  %v5120_v25 = vrot.slane %v5105_v55, %v13958_v5 }
 0x623   :  { %13275 = vmatprep.subr.bf16.mxu1 %v15791_v24 }
 0x626   :  { %13277 = vmatpush3.bf16.msra.mxu1 %v15791_v24 }
 0x627   :  { %13279 = vmatprep.subr.bf16.mxu1 %v15814_v39 }
 0x62a   :  { %13281 = vmatpush3.bf16.msra.mxu1 %v15814_v39  ;;  %v5152_v39 = vpop.permute.xlu1 %5151 }
 0x62b   :  { %v5199_v16 = vsel %vm1562_vm7, %v5152_v39, 0 }
 0x62c   :  { %v15974_v38 = vand.u32 4294901760, %v5199_v16 }
 0x62d   :  { %12056 = vmatmul.mubr.f32.vlgmr.msra.gmra.mrb[2].mxu1 %v15798_v27 }
 0x62e   :  { %v15984_v17 = vsub.f32 %v5199_v16, %v15974_v38  ;;  %v6258_v16 = vld [vmem:[#allocation2 + $0x148] sm:$0xff] }
 0x700   :  { %v12057_v32 = vpop.f32.mrb[2].mxu1 }
 0x701   :  { %v13601_v9 = vadd.f32 %v12057_v32, %v4322_v54  ;;  %v4998_v3 = vpop.f32.mrb[3].mxu1 }
 0x702   :  { %v13602_v43 = vadd.f32 %v4998_v3, %v4322_v54  ;;  %v15994_v3 = vand.u32 4294901760, %v15984_v17 }
 0x703   :  { %v5065_v7 = vrot.slane %v13601_v9, %v13958_v5 }
 0x704   :  { %v5010_v24 = vcombine.high %v13602_v43, %v13602_v43  ;;  %v5017_v41 = vrot.slane %v13602_v43, %v13958_v5 }
 0x705   :  { %v5066_v27 = vcombine.high %v5065_v7, %v5065_v7  ;;  %v5073_v61 = vrot.slane %v5065_v7, %v13958_v5 }
 0x706   :  { %v5024_v47 = vrot.slane %v5010_v24, %v13958_v5  ;;  %v5025_v0 = vcombine.high %v5017_v41, %v5017_v41  ;;  %v5033_v33 = vrot.slane %v5017_v41, %v13958_v5 }
 0x707   :  { %v5080_v14 = vrot.slane %v5066_v27, %v13958_v5  ;;  %v15970_v42 = vmul.f32 %v5129_v22, %v5073_v61 }
 0x708   :  { %v5026_v13 = vcombine.high %v5024_v47, %v5024_v47  ;;  %v5040_v6 = vrot.slane %v5024_v47, %v13958_v5  ;;  %v5047_v58 = vrot.slane %v5025_v0, %v13958_v5  ;;  %v5055_v63 = vcombine.high %v5033_v33, %v5033_v33 }
 0x709   :  { %v5135_v37 = vmul.f32 %v5113_v30, %v5033_v33  ;;  %v15972_v18 = vmul.f32 %v5120_v25, %v5080_v14  ;;  %v5282_v47 = vsub.f32 %v15984_v17, %v15994_v3 }
 0x70a   :  { %v5054_v10 = vrot.slane %v5026_v13, %v13958_v5  ;;  %v5056_v20 = vcombine.high %v5040_v6, %v5040_v6  ;;  %v5057_v26 = vcombine.high %v5047_v58, %v5047_v58  ;;  %v5136_v48 = vmul.f32 %v5127_v11, %v5047_v58 }
 0x70b   :  { %v5137_v51 = vmul.f32 %v5128_v19, %v5055_v63  ;;  %v5139_v60 = vmul.f32 %v5120_v25, %v5040_v6  ;;  %v5719_v28 = vrot.slane %v15972_v18, %v13958_v5  ;;  %v5283_v33 = vand.u32 4294901760, %v5282_v47 }
 0x70c   :  { %v5058_v12 = vcombine.high %v5054_v10, %v5054_v10  ;;  %v5138_v4 = vmul.f32 %v5129_v22, %v5057_v26  ;;  %v5140_v34 = vmul.f32 %v5113_v30, %v5054_v10  ;;  %v5141_v35 = vmul.f32 %v5127_v11, %v5056_v20 }
 0x70d   :  { %v5158_v40 = vcombine.low %v5135_v37, %v5136_v48  ;;  %v5180_v62 = vrot.slane %v5139_v60, %v13958_v5  ;;  %v5734_v43 = vrot.slane %v5719_v28, %v13958_v5  ;;  %v6290_v14 = vcombine.low %v15970_v42, %v15972_v18 }
 0x70e   :  { %v5142_v29 = vmul.f32 %v5128_v19, %v5058_v12  ;;  %v5159_v31 = vcombine.low %v5137_v51, %v5138_v4  ;;  %v5697_v21 = vcombine.low %v5140_v34, %v5141_v35  ;;  %v6265_v23 = vcombine.low %v5139_v60, %v5140_v34  ;;  %v6259_v60 = vld [vmem:[#allocation2 + $0x150] sm:$0xff]  ;;  %v6260_v12 = vld [vmem:[#allocation2 + $0x158] sm:$0xff] }
 0x70f   :  { %v5166_v57 = vrot.slane %v5158_v40, %v13958_v5  ;;  %v5195_v32 = vrot.slane %v5180_v62, %v13958_v5  ;;  %v6313_v20 = vand.u32 4294901760, %v6258_v16  ;;  %v6261_v40 = vld [vmem:[#allocation2 + $0x160] sm:$0xff] }
 0x710   :  { %v5173_v44 = vrot.slane %v5159_v31, %v13958_v5  ;;  %v5698_v50 = vcombine.low %v5142_v29, %v15970_v42  ;;  %v6266_v8 = vcombine.low %v5141_v35, %v5142_v29  ;;  %v5705_v2 = vrot.slane %v5697_v21, %v13958_v5  ;;  %v6262_v29 = vld [vmem:[#allocation2 + $0x168] sm:$0xff]  ;;  %v6263_v21 = vld [vmem:[#allocation2 + $0x170] sm:$0xff] }
 0x711   :  { %v6273_v56 = vrot.slane %v6265_v23, %v13958_v5  ;;  %v16042_v34 = vsub.f32 %v6258_v16, %v6313_v20  ;;  %v6316_v35 = vand.u32 4294901760, %v6259_v60  ;;  %v6319_v42 = vand.u32 4294901760, %v6260_v12  ;;  %v6264_v23 = vld [vmem:[#allocation2 + $0x178] sm:$0xff] }
 0x712   :  { %v5181_v53 = vcombine.low %v5166_v57, %v5173_v44  ;;  %v5712_v36 = vrot.slane %v5698_v50, %v13958_v5  ;;  %v6280_v54 = vrot.slane %v6266_v8, %v13958_v5  ;;  %v6322_v50 = vand.u32 4294901760, %v6261_v40 }
 0x713   :  { %v16051_v62 = vsub.f32 %v6259_v60, %v6316_v35  ;;  %v16053_v57 = vsub.f32 %v6260_v12, %v6319_v42  ;;  %v16055_v44 = vpack.c.bf16 %v6319_v42, %v6316_v35  ;;  %v6325_v8 = vand.u32 4294901760, %v6262_v29 }
 0x714   :  { %v15990_v49 = vrot.slane %v5181_v53, %v13958_v5  ;;  %v5720_v52 = vcombine.low %v5705_v2, %v5712_v36  ;;  %v6281_v9 = vcombine.low %v6273_v56, %v6280_v54  ;;  %v6331_v53 = vand.u32 4294901760, %v6264_v23 }
 0x715   :  { %v6419_v54 = vand.u32 4294901760, %v16051_v62  ;;  %v13318_v12 = vpack.c.bf16 %v16053_v57, %v16051_v62 }
 0x716   :  { %v5196_v55 = vcombine.low %v15990_v49, %v5195_v32  ;;  %v5727_v7 = vrot.slane %v5720_v52, %v13958_v5  ;;  %v6288_v30 = vrot.slane %v6281_v9, %v13958_v5  ;;  %v16069_v32 = vsub.f32 %v6261_v40, %v6322_v50 }
 0x717   :  { %v16077_v9 = vsub.f32 %v6262_v29, %v6325_v8  ;;  %v16094_v47 = vsub.f32 %v6264_v23, %v6331_v53  ;;  %v17228_v23 = vld [vmem:[#allocation77_spill] sm:$0xff] }
 0x718   :  { %v5201_v24 = vsel %vm1562_vm7, %v5196_v55, 0  ;;  %v5735_v41 = vcombine.low %v5727_v7, %v5734_v43  ;;  %v6289_v11 = vcombine.low %v15990_v49, %v6288_v30  ;;  %v6426_v49 = vand.u32 4294901760, %v16053_v57 }
 0x719   :  { %v5204_v27 = vand.u32 4294901760, %v5201_v24  ;;  %v6420_v7 = vsub.f32 %v16051_v62, %v6419_v54  ;;  %v13322_v35 = vpack.c.bf16 %v16077_v9, %v16069_v32 }
 0x71a   :  { %v5736_v13 = vsel %vm1562_vm7, %v5735_v41, 0  ;;  %v6427_v30 = vsub.f32 %v16053_v57, %v6426_v49  ;;  %v1347_v57 = vcombine.high %v17228_v23, %v17228_v23 }
 0x71b   :  { %12058 = vmatprep.subr.mxu0 %v5204_v27  ;;  %v5291_v0 = vsub.f32 %v5201_v24, %v5204_v27  ;;  %v5739_v6 = vand.u32 4294901760, %v5736_v13  ;;  %v6433_v24 = vand.u32 4294901760, %v16069_v32 }
 0x71c   :  { %12059 = vmatpush3.xpose.msra.mxu0 %v5204_v27 }
 0x71d   :  { %v5292_v39 = vand.u32 4294901760, %v5291_v0  ;;  %v5826_v58 = vsub.f32 %v5736_v13, %v5739_v6 }
 0x71f   :  { %12061 = vmatmul.mubr.f32.vlgmr.msra.gmra.mrb[8].mxu0 %v5283_v33  ;;  %v5293_v25 = vsub.f32 %v5291_v0, %v5292_v39  ;;  %v5827_v63 = vand.u32 4294901760, %v5826_v58 }
 0x720   :  { %12065 = vmatprep.mubr.f32.mxu0 %v15939_v45 }
 0x721   :  { %v5294_v19 = vand.u32 4294901760, %v5293_v25  ;;  %v5828_v22 = vsub.f32 %v5826_v58, %v5827_v63  ;;  %v6434_v25 = vsub.f32 %v16069_v32, %v6433_v24  ;;  %v17234_v32 = vld [vmem:[#allocation32_spill] sm:$0xff] }
 0x723   :  { %12063 = vmatprep.subr.mxu0 %v5294_v19  ;;  %v5829_v61 = vand.u32 4294901760, %v5828_v22  ;;  %v6435_v22 = vand.u32 4294901760, %v6434_v25 }
 0x724   :  { %12064 = vmatpush3.xpose.msra.mxu0 %v5294_v19 }
 0x725   :  { %12068 = vmatprep.subr.mxu0 %v5291_v0 }
 0x727   :  { %12066 = vmatmul.mubr.f32.vlgmr.msra.gmra.mrb[8].mxu0 %v15974_v38 }
 0x728   :  { %12069 = vmatpush3.xpose.msra.mxu0 %v5291_v0  ;;  %12070 = vmatprep.mubr.f32.mxu0 %v15942_v15 }
 0x729   :  { %12073 = vmatprep.subr.mxu0 %v5204_v27 }
 0x72f   :  { %12071 = vmatmul.mubr.f32.vlgmr.msra.gmra.mrb[8].mxu0 %v15984_v17 }
 0x730   :  { %12074 = vmatpush3.xpose.msra.mxu0 %v5204_v27  ;;  %12075 = vmatprep.mubr.f32.mxu0 %v15945_v1 }
 0x731   :  { %12078 = vmatprep.subr.mxu0 %v5292_v39 }
 0x737   :  { %12076 = vmatmul.mubr.f32.vlgmr.msra.gmra.mrb[8].mxu0 %v15994_v3 }
 0x738   :  { %12079 = vmatpush3.xpose.msra.mxu0 %v5292_v39  ;;  %12080 = vmatprep.mubr.f32.mxu0 %v15939_v45  ;;  %v6428_v39 = vand.u32 4294901760, %v6427_v30  ;;  %v17239_v30 = vld [vmem:[#allocation19_spill] sm:$0xff] }
 0x739   :  { %12083 = vmatprep.subr.mxu0 %v5204_v27 }
 0x73f   :  { %12081 = vmatmul.mubr.f32.vlgmr.msra.gmra.mrb[8].mxu0 %v15974_v38 }
 0x740   :  { %12084 = vmatpush3.xpose.msra.mxu0 %v5204_v27  ;;  %12085 = vmatprep.mubr.f32.mxu0 %v15939_v45 }
 0x741   :  { %12088 = vmatprep.subr.mxu0 %v5739_v6 }
 0x747   :  { %12086 = vmatmul.mubr.f32.vlgmr.msra.gmra.mrb[8].mxu0 %v15974_v38 }
 0x748   :  { %12089 = vmatpush3.xpose.msra.mxu0 %v5739_v6  ;;  %12090 = vmatprep.mubr.f32.mxu0 %v15949_v46  ;;  %v6305_v46 = vsel %vm1562_vm7, %v6289_v11, 0  ;;  %v6440_v11 = vand.u32 4294901760, %v16077_v9 }
 0x749   :  { %12093 = vmatprep.subr.mxu0 %v5829_v61  ;;  %v16024_v10 = vand.u32 4294901760, %v6305_v46 }
 0x74a   :  { %v6441_v13 = vsub.f32 %v16077_v9, %v6440_v11  ;;  %v17236_v9 = vld [vmem:[#allocation36_spill] sm:$0xff] }
 0x74b   :  { %12091 = vmatmul.mubr.f32.vlgmr.msra.gmra.mrb[10].mxu0 %v5283_v33  ;;  %v16031_v26 = vsub.f32 %v6305_v46, %v16024_v10  ;;  %v6421_v33 = vand.u32 4294901760, %v6420_v7 }
 0x74c   :  { %12094 = vmatpush3.xpose.msra.mxu0 %v5829_v61  ;;  %12095 = vmatprep.mubr.f32.mxu0 %v15939_v45  ;;  %v6442_v46 = vand.u32 4294901760, %v6441_v13 }
 0x74d   :  { %12098 = vmatprep.subr.mxu0 %v5826_v58  ;;  %v6384_v51 = vand.u32 4294901760, %v16031_v26 }
 0x74f   :  { %v6385_v18 = vsub.f32 %v16031_v26, %v6384_v51 }
 0x751   :  { %v6386_v2 = vand.u32 4294901760, %v6385_v18 }
 0x753   :  { %12096 = vmatmul.mubr.f32.vlgmr.msra.gmra.mrb[10].mxu0 %v15974_v38 }
 0x754   :  { %12099 = vmatpush3.xpose.msra.mxu0 %v5826_v58  ;;  %12100 = vmatprep.mubr.f32.mxu0 %v15942_v15  ;;  %v6310_v15 = vand.u32 4294901760, %v15859_v59  ;;  %v6454_v58 = vand.u32 4294901760, %v16094_v47 }
 0x755   :  { %12103 = vmatprep.subr.mxu0 %v5739_v6 }
 0x756   :  { %v16033_v48 = vpack.c.bf16 %v6313_v20, %v6310_v15  ;;  %v16039_v4 = vsub.f32 %v15859_v59, %v6310_v15  ;;  %v6455_v16 = vsub.f32 %v16094_v47, %v6454_v58  ;;  %v13306_v15 = vpack.c.bf16 %v6442_v46, %v6435_v22  ;;  %v17243_v22 = vld [vmem:[#allocation76_spill] sm:$0xff]  ;;  %v17245_v46 = vld [vmem:[#allocation35_spill] sm:$0xff] }
 0x758   :  { %v6405_v59 = vand.u32 4294901760, %v16039_v4  ;;  %v13314_v60 = vpack.c.bf16 %v16042_v34, %v16039_v4 }
 0x75a   :  { %v6406_v36 = vsub.f32 %v16039_v4, %v6405_v59 }
 0x75b   :  { %12101 = vmatmul.mubr.f32.vlgmr.msra.gmra.mrb[10].mxu0 %v15984_v17  ;;  %v6328_v17 = vand.u32 4294901760, %v6263_v21 }
 0x75c   :  { %12104 = vmatpush3.xpose.msra.mxu0 %v5739_v6  ;;  %12105 = vmatprep.mubr.f32.mxu0 %v15945_v1  ;;  %v6297_v1 = vrot.slane %v6290_v14, %v13958_v5  ;;  %v6407_v43 = vand.u32 4294901760, %v6406_v36  ;;  %v17233_v36 = vld [vmem:[#allocation80_spill] sm:$0xff] }
 0x75d   :  { %12108 = vmatprep.subr.mxu0 %v5827_v63  ;;  %v16092_v27 = vsub.f32 %v6263_v21, %v6328_v17 }
 0x75e   :  { %v6304_v37 = vrot.slane %v6297_v1, %v13958_v5  ;;  %v6456_v1 = vand.u32 4294901760, %v6455_v16  ;;  %v17247_v16 = vld [vmem:[#allocation38_spill] sm:$0xff] }
 0x75f   :  { %v13326_v42 = vpack.c.bf16 %v16094_v47, %v16092_v27 }
 0x760   :  { %v6307_v31 = vsel %vm1562_vm7, %v6304_v37, 0 }
 0x761   :  { %v16057_v28 = vand.u32 4294901760, %v6307_v31 }
 0x763   :  { %12106 = vmatmul.mubr.f32.vlgmr.msra.gmra.mrb[10].mxu0 %v15994_v3  ;;  %v16075_v52 = vsub.f32 %v6307_v31, %v16057_v28  ;;  %v16079_v3 = vpack.c.bf16 %v6331_v53, %v6328_v17  ;;  %v17231_v17 = vld [vmem:[#allocation33_spill] sm:$0xff]  ;;  %v17232_v53 = vld [vmem:[#allocation34_spill] sm:$0xff] }
 0x764   :  { %12109 = vmatpush3.xpose.msra.mxu0 %v5827_v63  ;;  %12110 = vmatprep.mubr.f32.mxu0 %v15939_v45  ;;  %v13302_v63 = vpack.c.bf16 %v6428_v39, %v6421_v33 }
 0x765   :  { %12113 = vmatprep.subr.mxu0 %v5739_v6  ;;  %v6394_v41 = vand.u32 4294901760, %v16075_v52 }
 0x767   :  { %v6395_v19 = vsub.f32 %v16075_v52, %v6394_v41 }
 0x769   :  { %v6396_v61 = vand.u32 4294901760, %v6395_v19  ;;  %v17241_v19 = vld [vmem:[#allocation29_spill] sm:$0xff] }
 0x76b   :  { %12111 = vmatmul.mubr.f32.vlgmr.msra.gmra.mrb[10].mxu0 %v15974_v38 }
 0x76c   :  { %12114 = vmatpush3.xpose.msra.mxu0 %v5739_v6  ;;  %12115 = vmatprep.mubr.f32.mxu0 %v15939_v45  ;;  %v6412_v45 = vand.u32 4294901760, %v16042_v34  ;;  %v6447_v6 = vand.u32 4294901760, %v16092_v27 }
 0x76d   :  { %13283 = vmatprep.subr.bf16.mxu0 %v16033_v48 }
 0x76e   :  { %v6413_v56 = vsub.f32 %v16042_v34, %v6412_v45  ;;  %v6448_v14 = vsub.f32 %v16092_v27, %v6447_v6  ;;  %v13346_v18 = vpack.c.bf16 %v6412_v45, %v6405_v59  ;;  %v13358_v4 = vpack.c.bf16 %v6454_v58, %v6447_v6  ;;  %v17229_v45 = vld [vmem:[#allocation78_spill] sm:$0xff]  ;;  %v17242_v58 = vld [vmem:[#allocation31_spill] sm:$0xff] }
 0x76f   :  { %v1345_v62 = vcombine.high %v17229_v45, %v17229_v45 }
 0x770   :  { %v6414_v55 = vand.u32 4294901760, %v6413_v56  ;;  %v6449_v20 = vand.u32 4294901760, %v6448_v14  ;;  %v17246_v14 = vld [vmem:[#allocation39_spill] sm:$0xff] }
 0x772   :  { %v13298_v0 = vpack.c.bf16 %v6414_v55, %v6407_v43  ;;  %v13310_v37 = vpack.c.bf16 %v6456_v1, %v6449_v20  ;;  %v17238_v43 = vld [vmem:[#allocation13_spill] sm:$0xff] }
 0x773   :  { %12116 = vmatmul.mubr.f32.vlgmr.msra.gmra.mrb[10].mxu0 %v15974_v38  ;;  %v16072_v38 = vpack.c.bf16 %v6325_v8, %v6322_v50 }
 0x774   :  { %13285 = vmatpush3.bf16.msra.mxu0 %v16033_v48  ;;  %12134 = vmatprep.mubr.f32.mxu0 %v6386_v2 }
 0x775   :  { %13287 = vmatprep.subr.bf16.mxu0 %v16055_v44 }
 0x778   :  { %13289 = vmatpush3.bf16.msra.mxu0 %v16055_v44 }
 0x779   :  { %13291 = vmatprep.subr.bf16.mxu0 %v16072_v38 }
 0x77c   :  { %13293 = vmatpush3.bf16.msra.mxu0 %v16072_v38 }
 0x77d   :  { %13295 = vmatprep.subr.bf16.mxu0 %v16079_v3 }
 0x780   :  { %13297 = vmatpush3.bf16.msra.mxu0 %v16079_v3 }
 0x781   :  { %13299 = vmatprep.subr.bf16.mxu0 %v13298_v0 }
 0x783   :  { %12135 = vmatmul.mubr.f32.vlgmr.msra.gmra.mrb[12].mxu0 %v6396_v61  ;;  %v17244_v61 = vld [vmem:[#allocation79_spill] sm:$0xff] }
 0x784   :  { %13301 = vmatpush3.bf16.msra.mxu0 %v13298_v0  ;;  %12153 = vmatprep.mubr.f32.mxu0 %v16024_v10 }
 0x785   :  { %13303 = vmatprep.subr.bf16.mxu0 %v13302_v63 }
 0x788   :  { %13305 = vmatpush3.bf16.msra.mxu0 %v13302_v63 }
 0x789   :  { %13307 = vmatprep.subr.bf16.mxu0 %v13306_v15 }
 0x78c   :  { %13309 = vmatpush3.bf16.msra.mxu0 %v13306_v15 }
 0x78d   :  { %13311 = vmatprep.subr.bf16.mxu0 %v13310_v37 }
 0x790   :  { %13313 = vmatpush3.bf16.msra.mxu0 %v13310_v37 }
 0x791   :  { %13315 = vmatprep.subr.bf16.mxu0 %v13314_v60 }
 0x793   :  { %12154 = vmatmul.mubr.f32.vlgmr.msra.gmra.mrb[12].mxu0 %v16057_v28 }
 0x794   :  { %13317 = vmatpush3.bf16.msra.mxu0 %v13314_v60  ;;  %12172 = vmatprep.mubr.f32.mxu0 %v16031_v26  ;;  %v13350_v26 = vpack.c.bf16 %v6426_v49, %v6419_v54 }
 0x795   :  { %13319 = vmatprep.subr.bf16.mxu0 %v13318_v12 }
 0x798   :  { %13321 = vmatpush3.bf16.msra.mxu0 %v13318_v12  ;;  %v17248_v12 = vld [vmem:[#allocation21_spill] sm:$0xff] }
 0x799   :  { %13323 = vmatprep.subr.bf16.mxu0 %v13322_v35 }
 0x79c   :  { %13325 = vmatpush3.bf16.msra.mxu0 %v13322_v35  ;;  %v17249_v35 = vld [vmem:[#allocation20_spill] sm:$0xff] }
 0x79d   :  { %13327 = vmatprep.subr.bf16.mxu0 %v13326_v42 }
 0x7a0   :  { %13329 = vmatpush3.bf16.msra.mxu0 %v13326_v42  ;;  %v8487_v42 = vcombine.low %v17249_v35, %v17248_v12 }
 0x7a1   :  { %13331 = vmatprep.subr.bf16.mxu0 %v16033_v48 }
 0x7a3   :  { %12173 = vmatmul.mubr.f32.vlgmr.msra.gmra.mrb[12].mxu0 %v16075_v52  ;;  %v17235_v52 = vld [vmem:[#allocation37_spill] sm:$0xff] }
 0x7a4   :  { %13333 = vmatpush3.bf16.msra.mxu0 %v16033_v48  ;;  %12191 = vmatprep.mubr.f32.mxu0 %v6384_v51  ;;  %v13354_v51 = vpack.c.bf16 %v6440_v11, %v6433_v24  ;;  %v17240_v24 = vld [vmem:[#allocation14_spill] sm:$0xff] }
 0x7a5   :  { %13335 = vmatprep.subr.bf16.mxu0 %v16055_v44  ;;  %v10647_v11 = vcombine.high %v17240_v24, %v17239_v30 }
 0x7a7   :  { %v8420_v33 = vrot.slane %v10647_v11, %v13958_v5 }
 0x7a8   :  { %13337 = vmatpush3.bf16.msra.mxu0 %v16055_v44 }
 0x7a9   :  { %13339 = vmatprep.subr.bf16.mxu0 %v16072_v38 }
 0x7ac   :  { %13341 = vmatpush3.bf16.msra.mxu0 %v16072_v38 }
 0x7ad   :  { %13343 = vmatprep.subr.bf16.mxu0 %v16079_v3 }
 0x7b0   :  { %13345 = vmatpush3.bf16.msra.mxu0 %v16079_v3 }
 0x7b1   :  { %13347 = vmatprep.subr.bf16.mxu0 %v13346_v18 }
 0x7b3   :  { %12192 = vmatmul.mubr.f32.vlgmr.msra.gmra.mrb[12].mxu0 %v6394_v41  ;;  %v8391_v41 = vcombine.low %v17240_v24, %v17239_v30 }
 0x7b4   :  { %13349 = vmatpush3.bf16.msra.mxu0 %v13346_v18  ;;  %12210 = vmatprep.mubr.f32.mxu0 %v16024_v10  ;;  %v17250_v18 = vld [vmem:[#allocation9_spill] sm:$0xff] }
 0x7b5   :  { %13351 = vmatprep.subr.bf16.mxu0 %v13350_v26  ;;  %v8413_v0 = vrot.slane %v8391_v41, %v13958_v5 }
 0x7b7   :  { %v8422_v25 = vcombine.low %v8413_v0, %v8420_v33 }
 0x7b8   :  { %13353 = vmatpush3.bf16.msra.mxu0 %v13350_v26  ;;  %v17251_v26 = vld [vmem:[#allocation8_spill] sm:$0xff] }
 0x7b9   :  { %13355 = vmatprep.subr.bf16.mxu0 %v13354_v51  ;;  %v8436_v6 = vrot.slane %v8422_v25, %v13958_v5 }
 0x7bc   :  { %13357 = vmatpush3.bf16.msra.mxu0 %v13354_v51  ;;  %v8438_v51 = vcombine.low %v17251_v26, %v17250_v18 }
 0x7bd   :  { %13359 = vmatprep.subr.bf16.mxu0 %v13358_v4 }
 0x7c0   :  { %13361 = vmatpush3.bf16.msra.mxu0 %v13358_v4  ;;  %v17252_v4 = vld [vmem:[#allocation12_spill] sm:$0xff] }
 0x7c1   :  { %13363 = vmatprep.subr.bf16.mxu0 %v16033_v48 }
 0x7c3   :  { %12211 = vmatmul.mubr.f32.vlgmr.msra.gmra.mrb[12].mxu0 %v16057_v28 }
 0x7c4   :  { %13365 = vmatpush3.bf16.msra.mxu0 %v16033_v48  ;;  %12229 = vmatprep.mubr.f32.mxu0 %v16024_v10 }
 0x7c5   :  { %13367 = vmatprep.subr.bf16.mxu0 %v16055_v44 }
 0x7c8   :  { %13369 = vmatpush3.bf16.msra.mxu0 %v16055_v44  ;;  %v17230_v44 = vld [vmem:[#allocation30_spill] sm:$0xff] }
 0x7c9   :  { %13371 = vmatprep.subr.bf16.mxu0 %v16072_v38 }
 0x7cc   :  { %13373 = vmatpush3.bf16.msra.mxu0 %v16072_v38 }
 0x7cd   :  { %13375 = vmatprep.subr.bf16.mxu0 %v16079_v3 }
 0x7d0   :  { %13377 = vmatpush3.bf16.msra.mxu0 %v16079_v3  ;;  %v17237_v3 = vld [vmem:[#allocation18_spill] sm:$0xff] }
 0x7d1   :  { %v8389_v55 = vcombine.low %v17238_v43, %v17237_v3  ;;  %v10646_v7 = vcombine.high %v17238_v43, %v17237_v3 }
 0x7d3   :  { %12230 = vmatmul.mubr.f32.vlgmr.msra.gmra.mrb[12].mxu0 %v16057_v28  ;;  %v8399_v27 = vrot.slane %v8389_v55, %v13958_v5  ;;  %v8406_v47 = vrot.slane %v10646_v7, %v13958_v5 }
 0x7d5   :  { %v8421_v39 = vcombine.low %v8399_v27, %v8406_v47 }
 0x7d7   :  { %v8429_v13 = vrot.slane %v8421_v39, %v13958_v5 }
 0x7d9   :  { %v8437_v63 = vcombine.low %v8429_v13, %v8436_v6 }
 0x81a   :  { %v12087_v34 = vpop.f32.mrb[8].mxu0 }
 0x81b   :  { %v6229_v40 = vmul.f32 1.442695, %v12087_v34  ;;  %v5682_v29 = vpop.f32.mrb[9].mxu0  ;;  %v17253_v34 = vld [vmem:[#allocation11_spill] sm:$0xff] }
 0x81c   :  { %v6227_v48 = vmul.f32 1.442695, %v5682_v29  ;;  %v17254_v29 = vld [vmem:[#allocation10_spill] sm:$0xff] }
 0x81d   :  { %13847 = vpow2.f32 %v6229_v40  ;;  %v8439_v40 = vcombine.low %v17253_v34, %v17252_v4 }
 0x81e   :  { %13849 = vpow2.f32 %v6227_v48  ;;  %v17255_v48 = vld [vmem:[#allocation17_spill] sm:$0xff] }
 0x827   :  { %v16156_v10 = vpop.eup %13847 }
 0x828   :  { %v16158_v31 = vpop.eup %13849  ;;  %v6240_v59 = vsel %vm6239_vm15, %v16156_v10, 0.0 }
 0x829   :  { %6241 = vadd.xlane.f32.xlu1 %v6240_v59  ;;  %v6236_v21 = vsel %vm6235_vm3, %v16158_v31, 0.0  ;;  %v8440_v59 = vcombine.low %v17255_v48, %v17254_v29 }
 0x82a   :  { %6237 = vadd.xlane.f32.xlu0 %v6236_v21 }
 0x83a   :  { %8185 = vrot.lane.b32.xlu1 %v17228_v23, %s13925_s0 }
 0x83e   :  { %8187 = vrot.lane.b32.xlu1 %v1345_v62, %s13925_s0  ;;  %v8494_v62 = vrot.slane %v8487_v42, %v13958_v5 }
 0x842   :  { %8189 = vrot.lane.b32.xlu1 %v1347_v57, %s13925_s0 }
 0x846   :  { %8193 = vrot.lane.b32.xlu1 %v17230_v44, %s13925_s0  ;;  %v12117_v50 = vpop.f32.mrb[10].mxu0  ;;  %v17256_v44 = vld [vmem:[#allocation16_spill] sm:$0xff] }
 0x847   :  { %v6217_v8 = vpop.f32.mrb[11].mxu0  ;;  %v6233_v28 = vmul.f32 1.442695, %v12117_v50  ;;  %v17257_v50 = vld [vmem:[#allocation15_spill] sm:$0xff] }
 0x848   :  { %v6231_v2 = vmul.f32 1.442695, %v6217_v8  ;;  %v8441_v8 = vcombine.low %v17257_v50, %v17256_v44 }
 0x84a   :  { %13851 = vpow2.f32 %v6231_v2  ;;  %8197 = vrot.lane.b32.xlu1 %v17231_v17, %s13925_s0  ;;  %v8455_v2 = vrot.slane %v8439_v40, %v13958_v5 }
 0x84b   :  { %13853 = vpow2.f32 %v6233_v28  ;;  %v8448_v28 = vrot.slane %v8438_v51, %v13958_v5 }
 0x84e   :  { %8199 = vrot.lane.b32.xlu1 %v17232_v53, %s13925_s0 }
 0x852   :  { %8203 = vrot.lane.b32.xlu1 %v17233_v36, %s13925_s0 }
 0x854   :  { %v16180_v56 = vpop.eup %13851 }
 0x855   :  { %v6243_v54 = vsel %vm6235_vm3, %v16180_v56, 0.0  ;;  %v16184_v49 = vpop.eup %13853 }
 0x856   :  { %8207 = vrot.lane.b32.xlu1 %v17234_v32, %s13925_s0  ;;  %6244 = vadd.xlane.f32.xlu0 %v6243_v54  ;;  %v6246_v38 = vsel %vm6239_vm15, %v16184_v49, 0.0  ;;  %v8501_v54 = vrot.slane %v8494_v62, %v13958_v5 }
 0x85a   :  { %8211 = vrot.lane.b32.xlu1 %v17235_v52, %s13925_s0  ;;  %6247 = vadd.xlane.f32.xlu0 %v6246_v38  ;;  %v8462_v38 = vrot.slane %v8440_v59, %v13958_v5  ;;  %v8469_v52 = vrot.slane %v8441_v8, %v13958_v5 }
 0x85c   :  { %v8471_v41 = vcombine.low %v8462_v38, %v8469_v52 }
 0x85e   :  { %8215 = vrot.lane.b32.xlu1 %v17236_v9, %s13925_s0  ;;  %v8470_v9 = vcombine.low %v8448_v28, %v8455_v2  ;;  %v8485_v39 = vrot.slane %v8471_v41, %v13958_v5 }
 0x860   :  { %v8478_v11 = vrot.slane %v8470_v9, %v13958_v5 }
 0x862   :  { %v8486_v6 = vcombine.low %v8478_v11, %v8485_v39 }
 0x864   :  { %8504 = vrot.lane.b32.xlu1 %v8486_v6, %s13925_s0 }
 0x870   :  { %8183 = vrot.lane.b32.xlu0 %v17229_v45, %s13925_s0 }
 0x874   :  { %8191 = vrot.lane.b32.xlu0 %v17241_v19, %s13925_s0 }
 0x878   :  { %8195 = vrot.lane.b32.xlu0 %v17242_v58, %s13925_s0 }
 0x87c   :  { %8502 = vrot.lane.b32.xlu0 %v8437_v63, %s13925_s0 }
 0x880   :  { %8201 = vrot.lane.b32.xlu0 %v17243_v22, %s13925_s0 }
 0x884   :  { %8205 = vrot.lane.b32.xlu0 %v17244_v61, %s13925_s0 }
 0x888   :  { %8209 = vrot.lane.b32.xlu0 %v17245_v46, %s13925_s0 }
 0x88c   :  { %8213 = vrot.lane.b32.xlu0 %v17246_v14, %s13925_s0 }
 0x890   :  { %8217 = vrot.lane.b32.xlu0 %v17247_v16, %s13925_s0 }
 0x894   :  { %8506 = vrot.lane.b32.xlu0 %v8501_v54, %s13925_s0 }
 0x8a6   :  { %v12231_v15 = vpop.f32.mrb[12].mxu0 }
 0x8a7   :  { %v6946_v20 = vrot.slane %v12231_v15, %v13958_v5  ;;  %v6879_v1 = vpop.f32.mrb[13].mxu0 }
 0x8a8   :  { %v6891_v37 = vcombine.high %v6879_v1, %v6879_v1  ;;  %v6898_v60 = vrot.slane %v6879_v1, %v13958_v5 }
 0x8a9   :  { %v6947_v21 = vcombine.high %v6946_v20, %v6946_v20  ;;  %v6954_v32 = vrot.slane %v6946_v20, %v13958_v5 }
 0x8aa   :  { %v6905_v23 = vrot.slane %v6891_v37, %v13958_v5  ;;  %v6906_v45 = vcombine.high %v6898_v60, %v6898_v60  ;;  %v6914_v57 = vrot.slane %v6898_v60, %v13958_v5 }
 0x8ab   :  { %v6961_v30 = vrot.slane %v6947_v21, %v13958_v5 }
 0x8ac   :  { %v6907_v17 = vcombine.high %v6905_v23, %v6905_v23  ;;  %v6921_v53 = vrot.slane %v6905_v23, %v13958_v5  ;;  %v6928_v36 = vrot.slane %v6906_v45, %v13958_v5 }
 0x8ad   :  { %v7521_v13 = vrot.slane %v6961_v30, %v13958_v5 }
 0x8ae   :  { %v6935_v3 = vrot.slane %v6907_v17, %v13958_v5  ;;  %v6937_v43 = vcombine.high %v6921_v53, %v6921_v53  ;;  %v6962_v55 = vcombine.low %v6914_v57, %v6928_v36  ;;  %v10645_v7 = vcombine.high %v6914_v57, %v6928_v36 }
 0x8af   :  { %v6984_v24 = vrot.slane %v6921_v53, %v13958_v5  ;;  %v7536_v20 = vrot.slane %v7521_v13, %v13958_v5  ;;  %v16302_v13 = vld [vmem:[#allocation2 + $0x190] sm:$0xff] }
 0x8b0   :  { %v6939_v27 = vcombine.high %v6935_v3, %v6935_v3  ;;  %v6970_v47 = vrot.slane %v6962_v55, %v13958_v5  ;;  %v6977_v0 = vrot.slane %v10645_v7, %v13958_v5  ;;  %v7499_v33 = vcombine.low %v6935_v3, %v6937_v43 }
 0x8b1   :  { %v6999_v63 = vrot.slane %v6984_v24, %v13958_v5  ;;  %v17258_v7 = vmov 0.0|0.0  }
 0x8b2   :  { %v6985_v25 = vcombine.low %v6970_v47, %v6977_v0  ;;  %v7500_v19 = vcombine.low %v6939_v27, %v6954_v32  ;;  %v7507_v22 = vrot.slane %v7499_v33, %v13958_v5  ;;  %v17259_v33 = vmov 0.0  }
 0x8b4   :  { %v6992_v58 = vrot.slane %v6985_v25, %v13958_v5  ;;  %v7514_v61 = vrot.slane %v7500_v19, %v13958_v5  ;;  %v16300_v19 = vld [vmem:[#allocation2 + $0x188] sm:$0xff] }
 0x8b6   :  { %v7000_v46 = vcombine.low %v6992_v58, %v6999_v63  ;;  %v7522_v14 = vcombine.low %v7507_v22, %v7514_v61  ;;  %v6242_v16 = vpop.xlane.xlu1 %6241  ;;  %v8549_v58 = vand.u32 4294901760, %v16300_v19  ;;  %v16306_v63 = vld [vmem:[#allocation2 + $0x198] sm:$0xff]  ;;  %v8552_v22 = vand.u32 4294901760, %v16302_v13  ;;  %v8518_v61 = vld [vmem:[#allocation2 + $0x1a0] sm:$0xff] }
 0x8b7   :  { %13855 = vrcp.f32 %v6242_v16  ;;  %v6238_v15 = vpop.xlane.xlu0 %6237  ;;  %v8558_v16 = vand.u32 4294901760, %v8518_v61 }
 0x8b8   :  { %v7008_v1 = vsel %vm7007_vm4, %v7000_v46, 0  ;;  %v7529_v37 = vrot.slane %v7522_v14, %v13958_v5  ;;  %13857 = vrcp.f32 %v6238_v15  ;;  %v8519_v46 = vld [vmem:[#allocation2 + $0x1a8] sm:$0xff]  ;;  %v8555_v14 = vand.u32 4294901760, %v16306_v63  ;;  %v8520_v15 = vld [vmem:[#allocation2 + $0x1b0] sm:$0xff] }
 0x8b9   :  { %v7011_v60 = vand.u32 4294901760, %v7008_v1 }
 0x8ba   :  { %v7537_v12 = vcombine.low %v7529_v37, %v7536_v20  ;;  %v8521_v20 = vld [vmem:[#allocation2 + $0x1b8] sm:$0xff] }
 0x8bb   :  { %12232 = vmatprep.subr.mxu1 %v7011_v60  ;;  %v7098_v35 = vsub.f32 %v7008_v1, %v7011_v60  ;;  %v8522_v1 = vld [vmem:[#allocation2 + $0x1c0] sm:$0xff] }
 0x8bc   :  { %v7544_v42 = vsel %vm7007_vm4, %v7537_v12, 0  ;;  %12233 = vmatpush3.msra.mxu1 %v7011_v60  ;;  %v8523_v12 = vld [vmem:[#allocation2 + $0x1c8] sm:$0xff] }
 0x8bd   :  { %v16264_v18 = vand.u32 4294901760, %v7544_v42  ;;  %v7099_v26 = vand.u32 4294901760, %v7098_v35 }
 0x8bf   :  { %12262 = vmatprep.subr.mxu0 %v16264_v18  ;;  %v7100_v51 = vsub.f32 %v7098_v35, %v7099_v26  ;;  %v16268_v4 = vsub.f32 %v7544_v42, %v16264_v18  ;;  %v16312_v42 = vpack.c.bf16 %v8555_v14, %v8552_v22 }
 0x8c0   :  { %12263 = vmatpush3.msra.mxu0 %v16264_v18 }
 0x8c1   :  { %v13856_v34 = vpop.eup %13855  ;;  %v7101_v40 = vand.u32 4294901760, %v7100_v51  ;;  %v16272_v29 = vand.u32 4294901760, %v16268_v4 }
 0x8c2   :  { %v13858_v48 = vpop.eup %13857  ;;  %v6252_v59 = vmul.f32 %v13856_v34, %v16156_v10  ;;  %v8567_v34 = vand.u32 4294901760, %v8521_v20 }
 0x8c3   :  { %v6250_v21 = vmul.f32 %v13858_v48, %v16158_v31  ;;  %12237 = vmatprep.subr.mxu1 %v7101_v40  ;;  %v7636_v23 = vsub.f32 %v16268_v4, %v16272_v29 }
 0x8c4   :  { %v7005_v45 = vsel %vm6235_vm3, %v6252_v59, 0 }
 0x8c5   :  { %v7637_v62 = vand.u32 4294901760, %v7636_v23  ;;  %v7002_v57 = vsel %vm6235_vm3, %v6250_v21, 0  ;;  %v7086_v44 = vand.u32 4294901760, %v7005_v45  ;;  %v16322_v21 = vsub.f32 %v8521_v20, %v8567_v34 }
 0x8c6   :  { %v7076_v50 = vand.u32 4294901760, %v7002_v57 }
 0x8c7   :  { %12267 = vmatprep.subr.mxu0 %v7637_v62  ;;  %v7087_v8 = vsub.f32 %v7005_v45, %v7086_v44 }
 0x8c8   :  { %v7077_v28 = vsub.f32 %v7002_v57, %v7076_v50 }
 0x8c9   :  { %v7088_v2 = vand.u32 4294901760, %v7087_v8 }
 0x8ca   :  { %v7078_v17 = vand.u32 4294901760, %v7077_v28 }
 0x8cb   :  { %v7089_v53 = vsub.f32 %v7087_v8, %v7088_v2 }
 0x8cc   :  { %v7079_v10 = vsub.f32 %v7077_v28, %v7078_v17 }
 0x8cd   :  { %v7090_v31 = vand.u32 4294901760, %v7089_v53  ;;  %v16354_v53 = vsub.f32 %v16300_v19, %v8549_v58 }
 0x8ce   :  { %v7080_v36 = vand.u32 4294901760, %v7079_v10 }
 0x8d0   :  { %12234 = vmatprep.mubr.f32.mxu1 %v7080_v36  ;;  %v17015_v36 = vand.u32 4294901760, %v16354_v53 }
 0x8d1   :  { %12235 = vmatmul.mubr.f32.vlgmr.msra.gmra.mrb[4].mxu1 %v7090_v31 }
 0x8d2   :  { %12238 = vmatpush3.msra.mxu1 %v7101_v40  ;;  %12239 = vmatprep.mubr.f32.mxu1 %v7076_v50  ;;  %v8570_v40 = vand.u32 4294901760, %v8522_v1 }
 0x8d3   :  { %12242 = vmatprep.subr.mxu1 %v7098_v35 }
 0x8d4   :  { %v16324_v23 = vsub.f32 %v8522_v1, %v8570_v40 }
 0x8d6   :  { %v17008_v1 = vand.u32 4294901760, %v16324_v23 }
 0x8d9   :  { %12240 = vmatmul.mubr.f32.vlgmr.msra.gmra.mrb[4].mxu1 %v7086_v44 }
 0x8da   :  { %12243 = vmatpush3.msra.mxu1 %v7098_v35  ;;  %12244 = vmatprep.mubr.f32.mxu1 %v7077_v28  ;;  %v8524_v35 = vld [vmem:[#allocation2 + $0x1d0] sm:$0xff] }
 0x8db   :  { %12247 = vmatprep.subr.mxu1 %v7011_v60  ;;  %v8576_v48 = vand.u32 4294901760, %v8524_v35 }
 0x8dd   :  { %v16328_v57 = vsub.f32 %v8524_v35, %v8576_v48 }
 0x8e1   :  { %12245 = vmatmul.mubr.f32.vlgmr.msra.gmra.mrb[4].mxu1 %v7087_v8 }
 0x8e2   :  { %12248 = vmatpush3.msra.mxu1 %v7011_v60  ;;  %12249 = vmatprep.mubr.f32.mxu1 %v7078_v17 }
 0x8e3   :  { %12252 = vmatprep.subr.mxu1 %v7099_v26  ;;  %v6245_v54 = vpop.xlane.xlu0 %6244 }
 0x8e4   :  { %13859 = vrcp.f32 %v6245_v54  ;;  %v8663_v54 = vsub.f32 %v16354_v53, %v17015_v36 }
 0x8e7   :  { %v6248_v32 = vpop.xlane.xlu0 %6247 }
 0x8e8   :  { %13861 = vrcp.f32 %v6248_v32 }
 0x8e9   :  { %12250 = vmatmul.mubr.f32.vlgmr.msra.gmra.mrb[4].mxu1 %v7088_v2 }
 0x8ea   :  { %12253 = vmatpush3.msra.mxu1 %v7099_v26  ;;  %12254 = vmatprep.mubr.f32.mxu1 %v7076_v50  ;;  %v8525_v26 = vld [vmem:[#allocation2 + $0x1d8] sm:$0xff] }
 0x8eb   :  { %12257 = vmatprep.subr.mxu1 %v7011_v60  ;;  %v8579_v45 = vand.u32 4294901760, %v8525_v26 }
 0x8ed   :  { %v16345_v2 = vpack.c.bf16 %v8579_v45, %v8576_v48 }
 0x8ee   :  { %v13860_v38 = vpop.eup %13859 }
 0x8ef   :  { %v6254_v52 = vmul.f32 %v13860_v38, %v16180_v56  ;;  %v8664_v38 = vand.u32 4294901760, %v8663_v54 }
 0x8f1   :  { %12255 = vmatmul.mubr.f32.vlgmr.msra.gmra.mrb[4].mxu1 %v7086_v44  ;;  %v7539_v9 = vsel %vm6235_vm3, %v6254_v52, 0 }
 0x8f2   :  { %v13862_v3 = vpop.eup %13861  ;;  %12258 = vmatpush3.msra.mxu1 %v7011_v60  ;;  %12259 = vmatprep.mubr.f32.mxu1 %v7076_v50  ;;  %v7612_v43 = vand.u32 4294901760, %v7539_v9  ;;  %v8561_v60 = vand.u32 4294901760, %v8519_v46  ;;  %v16333_v50 = vsub.f32 %v8525_v26, %v8579_v45 }
 0x8f3   :  { %v6256_v55 = vmul.f32 %v13862_v3, %v16184_v49  ;;  %13378 = vmatprep.subr.bf16.mxu1 %v17258_v7  ;;  %v16298_v49 = vld [vmem:[#allocation2 + $0x180] sm:$0xff]  ;;  %v16370_v3 = vsub.f32 %v16306_v63, %v8555_v14 }
 0x8f4   :  { %v7613_v30 = vsub.f32 %v7539_v9, %v7612_v43  ;;  %v8546_v6 = vand.u32 4294901760, %v16298_v49  ;;  %v16317_v51 = vsub.f32 %v8519_v46, %v8561_v60  ;;  %v16367_v9 = vsub.f32 %v16302_v13, %v8552_v22 }
 0x8f5   :  { %v7542_v24 = vsel %vm6235_vm3, %v6256_v55, 0  ;;  %v17013_v55 = vand.u32 4294901760, %v16370_v3 }
 0x8f6   :  { %v7614_v41 = vand.u32 4294901760, %v7613_v30  ;;  %v7622_v11 = vand.u32 4294901760, %v7542_v24  ;;  %v16310_v37 = vpack.c.bf16 %v8549_v58, %v8546_v6  ;;  %v16351_v17 = vsub.f32 %v16298_v49, %v8546_v6 }
 0x8f8   :  { %v7615_v27 = vsub.f32 %v7613_v30, %v7614_v41  ;;  %v7623_v47 = vsub.f32 %v7542_v24, %v7622_v11  ;;  %v17016_v10 = vand.u32 4294901760, %v16351_v17  ;;  %v17011_v24 = vand.u32 4294901760, %v16317_v51 }
 0x8f9   :  { %12260 = vmatmul.mubr.f32.vlgmr.msra.gmra.mrb[4].mxu1 %v7086_v44  ;;  %v16331_v44 = vpack.c.bf16 %v8561_v60, %v8558_v16 }
 0x8fa   :  { %v7616_v56 = vand.u32 4294901760, %v7615_v27  ;;  %v7624_v0 = vand.u32 4294901760, %v7623_v47  ;;  %12316 = vmatprep.mubr.msk.f32.mxu1 %vm13923_vm2, %v17259_v33  ;;  %13380 = vmatpush3.bf16.msra.mxu1 %v16310_v37  ;;  %v8656_v31 = vsub.f32 %v16351_v17, %v17016_v10 }
 0x8fb   :  { %13381 = vmatprep.subr.bf16.mxu1 %v17258_v7 }
 0x8fc   :  { %12264 = vmatprep.mubr.f32.mxu0 %v7616_v56  ;;  %v7625_v39 = vsub.f32 %v7623_v47, %v7624_v0  ;;  %v8657_v32 = vand.u32 4294901760, %v8656_v31 }
 0x8fe   :  { %v7626_v25 = vand.u32 4294901760, %v7625_v39  ;;  %13383 = vmatpush3.bf16.msra.mxu1 %v16312_v42  ;;  %v16364_v52 = vpack.c.bf16 %v8664_v38, %v8657_v32  ;;  %v13415_v32 = vpack.c.bf16 %v16354_v53, %v16351_v17 }
 0x8ff   :  { %13384 = vmatprep.subr.bf16.mxu1 %v17258_v7 }
 0x900   :  { %12265 = vmatmul.mubr.f32.vlgmr.msra.gmra.mrb[14].mxu0 %v7626_v25 }
 0x901   :  { %12268 = vmatpush3.msra.mxu0 %v7637_v62  ;;  %12269 = vmatprep.mubr.f32.mxu0 %v7612_v43 }
 0x902   :  { %12272 = vmatprep.subr.mxu0 %v16268_v4  ;;  %13386 = vmatpush3.bf16.msra.mxu1 %v16331_v44 }
 0x903   :  { %13387 = vmatprep.subr.bf16.mxu1 %v17258_v7 }
 0x908   :  { %12270 = vmatmul.mubr.f32.vlgmr.msra.gmra.mrb[14].mxu0 %v7622_v11 }
 0x909   :  { %12273 = vmatpush3.msra.mxu0 %v16268_v4  ;;  %12274 = vmatprep.mubr.f32.mxu0 %v7613_v30  ;;  %v8564_v4 = vand.u32 4294901760, %v8520_v15 }
 0x90a   :  { %12277 = vmatprep.subr.mxu0 %v16264_v18 }
 0x90b   :  { %v16320_v59 = vsub.f32 %v8520_v15, %v8564_v4  ;;  %v16337_v8 = vpack.c.bf16 %v8567_v34, %v8564_v4  ;;  %v17006_v34 = vand.u32 4294901760, %v16328_v57 }
 0x90d   :  { %13389 = vmatpush3.bf16.msra.mxu1 %v16337_v8  ;;  %v8726_v48 = vsub.f32 %v16328_v57, %v17006_v34 }
 0x90e   :  { %13390 = vmatprep.subr.bf16.mxu1 %v17258_v7 }
 0x90f   :  { %v8727_v31 = vand.u32 4294901760, %v8726_v48 }
 0x910   :  { %12275 = vmatmul.mubr.f32.vlgmr.msra.gmra.mrb[14].mxu0 %v7623_v47  ;;  %v8677_v47 = vsub.f32 %v16370_v3, %v17013_v55 }
 0x911   :  { %12278 = vmatpush3.msra.mxu0 %v16264_v18  ;;  %12279 = vmatprep.mubr.f32.mxu0 %v7614_v41  ;;  %v17010_v41 = vand.u32 4294901760, %v16320_v59 }
 0x912   :  { %12282 = vmatprep.subr.mxu0 %v16272_v29  ;;  %v8678_v58 = vand.u32 4294901760, %v8677_v47 }
 0x913   :  { %v8698_v39 = vsub.f32 %v16320_v59, %v17010_v41 }
 0x915   :  { %v8699_v46 = vand.u32 4294901760, %v8698_v39 }
 0x918   :  { %12280 = vmatmul.mubr.f32.vlgmr.msra.gmra.mrb[14].mxu0 %v7624_v0  ;;  %v8691_v0 = vsub.f32 %v16317_v51, %v17011_v24 }
 0x919   :  { %12283 = vmatpush3.msra.mxu0 %v16272_v29  ;;  %12284 = vmatprep.mubr.f32.mxu0 %v7612_v43  ;;  %v8573_v29 = vand.u32 4294901760, %v8523_v12 }
 0x91a   :  { %12287 = vmatprep.subr.mxu0 %v16264_v18 }
 0x91b   :  { %v16326_v62 = vsub.f32 %v8523_v12, %v8573_v29  ;;  %v16341_v28 = vpack.c.bf16 %v8573_v29, %v8570_v40  ;;  %v8712_v12 = vsub.f32 %v16324_v23, %v17008_v1  ;;  %v17005_v40 = vand.u32 4294901760, %v16333_v50 }
 0x91d   :  { %13392 = vmatpush3.bf16.msra.mxu1 %v16341_v28  ;;  %v17007_v60 = vand.u32 4294901760, %v16326_v62  ;;  %v8713_v26 = vand.u32 4294901760, %v8712_v12  ;;  %v8733_v45 = vsub.f32 %v16333_v50, %v17005_v40 }
 0x91e   :  { %13393 = vmatprep.subr.bf16.mxu1 %v17258_v7 }
 0x91f   :  { %v8719_v35 = vsub.f32 %v16326_v62, %v17007_v60  ;;  %v8734_v54 = vand.u32 4294901760, %v8733_v45 }
 0x920   :  { %12285 = vmatmul.mubr.f32.vlgmr.msra.gmra.mrb[14].mxu0 %v7622_v11 }
 0x921   :  { %12288 = vmatpush3.msra.mxu0 %v16264_v18  ;;  %12289 = vmatprep.mubr.f32.mxu0 %v7612_v43  ;;  %v16314_v18 = vsub.f32 %v8518_v61, %v8558_v16  ;;  %v17014_v43 = vand.u32 4294901760, %v16367_v9  ;;  %v8692_v61 = vand.u32 4294901760, %v8691_v0  ;;  %v8720_v4 = vand.u32 4294901760, %v8719_v35 }
 0x922   :  { %13492 = vmatprep.subr.bf16.mxu0 %v17258_v7  ;;  %13395 = vmatpush3.bf16.msra.mxu1 %v16345_v2  ;;  %v16422_v38 = vpack.c.bf16 %v8734_v54, %v8727_v31 }
 0x923   :  { %13396 = vmatprep.subr.bf16.mxu1 %v17258_v7  ;;  %v17012_v30 = vand.u32 4294901760, %v16314_v18  ;;  %v8670_v27 = vsub.f32 %v16367_v9, %v17014_v43  ;;  %v16412_v29 = vpack.c.bf16 %v8720_v4, %v8713_v26 }
 0x925   :  { %v8684_v56 = vsub.f32 %v16314_v18, %v17012_v30  ;;  %v8671_v6 = vand.u32 4294901760, %v8670_v27  ;;  %v13418_v27 = vpack.c.bf16 %v16370_v3, %v16367_v9 }
 0x927   :  { %v8685_v22 = vand.u32 4294901760, %v8684_v56  ;;  %v16396_v16 = vpack.c.bf16 %v8678_v58, %v8671_v6 }
 0x928   :  { %12290 = vmatmul.mubr.f32.vlgmr.msra.gmra.mrb[14].mxu0 %v7622_v11  ;;  %v17009_v11 = vand.u32 4294901760, %v16322_v21 }
 0x929   :  { %12509 = vmatprep.mubr.msk.f32.mxu0 %vm13923_vm2, %v17259_v33  ;;  %v16398_v15 = vpack.c.bf16 %v8692_v61, %v8685_v22  ;;  %v8184_v22 = vpop.permute.xlu0 %8183 }
 0x92a   :  { %v8705_v25 = vsub.f32 %v16322_v21, %v17009_v11 }
 0x92c   :  { %v8706_v14 = vand.u32 4294901760, %v8705_v25  ;;  %v8186_v25 = vpop.permute.xlu1 %8185 }
 0x92d   :  { %v8192_v45 = vpop.permute.xlu0 %8191 }
 0x92e   :  { %v16400_v20 = vpack.c.bf16 %v8706_v14, %v8699_v46 }
 0x930   :  { %v8188_v6 = vpop.permute.xlu1 %8187 }
 0x931   :  { %v8196_v36 = vpop.permute.xlu0 %8195 }
 0x934   :  { %v8190_v58 = vpop.permute.xlu1 %8189 }
 0x938   :  { %v8194_v48 = vpop.permute.xlu1 %8193 }
 0x9cc   :  { %v16434_v61 = vpop.f32.mrb[4].mxu1 }
 0x9cd   :  { %v7489_v46 = vpop.f32.mrb[5].mxu1 }
 0x9ce   :  { %v8039_v14 = vcombine.high %v7489_v46, %v7489_v46  ;;  %v8046_v12 = vrot.slane %v7489_v46, %v13958_v5 }
 0x9d0   :  { %v8053_v35 = vrot.slane %v8039_v14, %v13958_v5  ;;  %v8054_v26 = vcombine.high %v8046_v12, %v8046_v12  ;;  %v8062_v4 = vrot.slane %v8046_v12, %v13958_v5  ;;  %v8198_v12 = vpop.permute.xlu1 %8197 }
 0x9d2   :  { %v8055_v31 = vcombine.high %v8053_v35, %v8053_v35  ;;  %v8069_v54 = vrot.slane %v8053_v35, %v13958_v5  ;;  %v8076_v40 = vrot.slane %v8054_v26, %v13958_v5  ;;  %v8084_v34 = vcombine.high %v8062_v4, %v8062_v4 }
 0x9d3   :  { %v8237_v24 = vmul.f32 %v8184_v22, %v8062_v4 }
 0x9d4   :  { %v8083_v60 = vrot.slane %v8055_v31, %v13958_v5  ;;  %v8085_v1 = vcombine.high %v8069_v54, %v8069_v54  ;;  %v8086_v11 = vcombine.high %v8076_v40, %v8076_v40  ;;  %v8238_v41 = vmul.f32 %v8186_v25, %v8076_v40 }
 0x9d5   :  { %v8239_v46 = vmul.f32 %v8188_v6, %v8084_v34  ;;  %v8241_v55 = vmul.f32 %v8192_v45, %v8069_v54 }
 0x9d6   :  { %v8087_v30 = vcombine.high %v8083_v60, %v8083_v60  ;;  %v8240_v14 = vmul.f32 %v8190_v58, %v8086_v11  ;;  %v8242_v43 = vmul.f32 %v8194_v48, %v8083_v60  ;;  %v8273_v10 = vcombine.low %v8237_v24, %v8238_v41 }
 0x9d7   :  { %v8243_v39 = vmul.f32 %v8196_v36, %v8085_v1  ;;  %v8503_v36 = vpop.permute.xlu0 %8502  ;;  %v8094_v48 = vrot.slane %v16434_v61, %v13958_v5 }
 0x9d8   :  { %v8244_v0 = vmul.f32 %v8198_v12, %v8087_v30  ;;  %v8274_v35 = vcombine.low %v8239_v46, %v8240_v14  ;;  %v8275_v56 = vcombine.low %v8241_v55, %v8242_v43  ;;  %v8283_v47 = vrot.slane %v8273_v10, %v13958_v5 }
 0x9da   :  { %v8276_v26 = vcombine.low %v8243_v39, %v8244_v0  ;;  %v8290_v31 = vrot.slane %v8274_v35, %v13958_v5  ;;  %v8297_v40 = vrot.slane %v8275_v56, %v13958_v5 }
 0x9db   :  { %v8202_v56 = vpop.permute.xlu0 %8201 }
 0x9dc   :  { %v8304_v34 = vrot.slane %v8276_v26, %v13958_v5  ;;  %v8305_v25 = vcombine.low %v8283_v47, %v8290_v31  ;;  %v8200_v47 = vpop.permute.xlu1 %8199 }
 0x9de   :  { %v8306_v11 = vcombine.low %v8297_v40, %v8304_v34  ;;  %v8313_v60 = vrot.slane %v8305_v25, %v13958_v5 }
 0x9df   :  { %v8206_v58 = vpop.permute.xlu0 %8205 }
 0x9e0   :  { %v8320_v6 = vrot.slane %v8306_v11, %v13958_v5  ;;  %v8204_v39 = vpop.permute.xlu1 %8203 }
 0x9e2   :  { %v8321_v24 = vcombine.low %v8313_v60, %v8320_v6 }
 0x9e3   :  { %v8210_v4 = vpop.permute.xlu0 %8209 }
 0x9e4   :  { %v8511_v43 = vsel %vm1562_vm7, %v8321_v24, %v8503_v36  ;;  %v8208_v22 = vpop.permute.xlu1 %8207 }
 0x9e5   :  { %v8537_v55 = vsel %vm8535_vm5, %v8511_v43, 0 }
 0x9e6   :  { %v16450_v10 = vand.u32 4294901760, %v8537_v55 }
 0x9e7   :  { %v8214_v26 = vpop.permute.xlu0 %8213 }
 0x9e8   :  { %v16453_v30 = vsub.f32 %v8537_v55, %v16450_v10  ;;  %v8212_v35 = vpop.permute.xlu1 %8211 }
 0x9ea   :  { %v8624_v41 = vand.u32 4294901760, %v16453_v30 }
 0x9ec   :  { %v8625_v1 = vsub.f32 %v16453_v30, %v8624_v41 }
 0x9ee   :  { %v8626_v0 = vand.u32 4294901760, %v8625_v1 }
 0x9f0   :  { %12317 = vmatmul.mubr.f32.vlgmr.msra.gmra.mrb[6].mxu1 %v8626_v0 }
 0x9f1   :  { %13398 = vmatpush3.bf16.msra.mxu1 %v16364_v52  ;;  %12319 = vmatprep.mubr.msk.f32.mxu1 %vm13923_vm2, %v17259_v33 }
 0x9f2   :  { %13399 = vmatprep.subr.bf16.mxu1 %v17258_v7 }
 0x9f5   :  { %13401 = vmatpush3.bf16.msra.mxu1 %v16396_v16  ;;  %v8101_v16 = vrot.slane %v8094_v48, %v13958_v5 }
 0x9f6   :  { %13402 = vmatprep.subr.bf16.mxu1 %v17258_v7 }
 0x9f9   :  { %13404 = vmatpush3.bf16.msra.mxu1 %v16398_v15 }
 0x9fa   :  { %13405 = vmatprep.subr.bf16.mxu1 %v17258_v7 }
 0x9fb   :  { %v12291_v52 = vpop.f32.mrb[14].mxu0 }
 0x9fc   :  { %v8025_v45 = vpop.f32.mrb[15].mxu0  ;;  %v8157_v14 = vrot.slane %v12291_v52, %v13958_v5 }
 0x9fd   :  { %v8102_v54 = vcombine.high %v8025_v45, %v8025_v45  ;;  %v8109_v46 = vrot.slane %v8025_v45, %v13958_v5  ;;  %13407 = vmatpush3.bf16.msra.mxu1 %v16400_v20  ;;  %v8245_v20 = vmul.f32 %v8200_v47, %v8101_v16  ;;  %v8218_v47 = vpop.permute.xlu0 %8217 }
 0x9fe   :  { %13408 = vmatprep.subr.bf16.mxu1 %v17258_v7  ;;  %v8164_v11 = vrot.slane %v8157_v14, %v13958_v5 }
 0x9ff   :  { %v8116_v15 = vrot.slane %v8102_v54, %v13958_v5  ;;  %v8117_v12 = vcombine.high %v8109_v46, %v8109_v46  ;;  %v8125_v61 = vrot.slane %v8109_v46, %v13958_v5 }
 0xa01   :  { %v8118_v31 = vcombine.high %v8116_v15, %v8116_v15  ;;  %v8132_v40 = vrot.slane %v8116_v15, %v13958_v5  ;;  %v8139_v34 = vrot.slane %v8117_v12, %v13958_v5  ;;  %v8147_v25 = vcombine.high %v8125_v61, %v8125_v61  ;;  %13410 = vmatpush3.bf16.msra.mxu1 %v16412_v29  ;;  %v8216_v29 = vpop.permute.xlu1 %8215 }
 0xa02   :  { %v8246_v60 = vmul.f32 %v8202_v56, %v8125_v61  ;;  %13411 = vmatprep.subr.bf16.mxu1 %v17258_v7  ;;  %v8254_v56 = vmul.f32 %v8218_v47, %v8164_v11 }
 0xa03   :  { %v8146_v6 = vrot.slane %v8118_v31, %v13958_v5  ;;  %v8148_v24 = vcombine.high %v8132_v40, %v8132_v40  ;;  %v8149_v36 = vcombine.high %v8139_v34, %v8139_v34  ;;  %v8247_v43 = vmul.f32 %v8204_v39, %v8139_v34 }
 0xa04   :  { %v8248_v55 = vmul.f32 %v8206_v58, %v8147_v25  ;;  %v8250_v1 = vmul.f32 %v8210_v4, %v8132_v40  ;;  %v8322_v0 = vcombine.low %v8245_v20, %v8246_v60  ;;  %v16492_v25 = vld [vmem:[#allocation2 + $0x5] ss:$0 sm:$0xff] }
 0xa05   :  { %v8150_v48 = vcombine.high %v8146_v6, %v8146_v6  ;;  %v8249_v52 = vmul.f32 %v8208_v22, %v8149_v36  ;;  %v8251_v45 = vmul.f32 %v8212_v35, %v8146_v6  ;;  %v8252_v54 = vmul.f32 %v8214_v26, %v8148_v24  ;;  %13413 = vmatpush3.bf16.msra.mxu1 %v16422_v38  ;;  %v8507_v26 = vpop.permute.xlu0 %8506  ;;  %v8505_v20 = vpop.permute.xlu1 %8504 }
 0xa06   :  { %v8323_v46 = vcombine.low %v8247_v43, %v8248_v55  ;;  %13414 = vmatprep.subr.bf16.mxu1 %v17258_v7  ;;  %v8332_v39 = vrot.slane %v8322_v0, %v13958_v5  ;;  %8532 = vrot.lane.b32.xlu1 %v16492_v25, %s13925_s0 }
 0xa07   :  { %v8253_v16 = vmul.f32 %v8216_v29, %v8150_v48  ;;  %v8324_v14 = vcombine.low %v8249_v52, %v8250_v1  ;;  %v8325_v15 = vcombine.low %v8251_v45, %v8252_v54 }
 0xa08   :  { %v8339_v58 = vrot.slane %v8323_v46, %v13958_v5  ;;  %v17261_v46 = vpack.c.bf16 %v16322_v21, %v16320_v59 }
 0xa09   :  { %v8346_v4 = vrot.slane %v8324_v14, %v13958_v5  ;;  %v8371_v22 = vcombine.low %v8253_v16, %v8254_v56  ;;  %v8353_v12 = vrot.slane %v8325_v15, %v13958_v5  ;;  %v17263_v56 = vpack.c.bf16 %v16333_v50, %v16328_v57 }
 0xa0a   :  { %v8354_v61 = vcombine.low %v8332_v39, %v8339_v58  ;;  %v17264_v16 = vand.u32 4294901760, %v16351_v17  ;;  %v17265_v14 = vand.u32 4294901760, %v16354_v53  ;;  %v17266_v39 = vand.u32 4294901760, %v16367_v9 }
 0xa0b   :  { %v8378_v38 = vrot.slane %v8371_v22, %v13958_v5  ;;  %v8355_v35 = vcombine.low %v8346_v4, %v8353_v12  ;;  %v17267_v58 = vand.u32 4294901760, %v16370_v3  ;;  %v17268_v17 = vand.u32 4294901760, %v16314_v18 }
 0xa0c   :  { %v8362_v40 = vrot.slane %v8354_v61, %v13958_v5  ;;  %v13451_v15 = vpack.c.bf16 %v17265_v14, %v17264_v16  ;;  %v17269_v53 = vand.u32 4294901760, %v16317_v51  ;;  %v17270_v9 = vand.u32 4294901760, %v16320_v59 }
 0xa0d   :  { %v8385_v31 = vrot.slane %v8378_v38, %v13958_v5  ;;  %v8369_v34 = vrot.slane %v8355_v35, %v13958_v5  ;;  %v13454_v4 = vpack.c.bf16 %v17267_v58, %v17266_v39  ;;  %v17271_v3 = vand.u32 4294901760, %v16322_v21 }
 0xa0e   :  { %v17274_v12 = vand.u32 4294901760, %v16328_v57  ;;  %v17275_v59 = vand.u32 4294901760, %v16333_v50 }
 0xa0f   :  { %v8513_v11 = vsel %vm1562_vm7, %v8385_v31, %v8507_v26  ;;  %v8370_v60 = vcombine.low %v8362_v40, %v8369_v34 }
 0xa10   :  { %v8543_v6 = vsel %vm8535_vm5, %v8513_v11, 0  ;;  %v13466_v21 = vpack.c.bf16 %v17275_v59, %v17274_v12 }
 0xa11   :  { %v16498_v24 = vand.u32 4294901760, %v8543_v6  ;;  %v8512_v36 = vsel %vm1562_vm7, %v8370_v60, %v8505_v20 }
 0xa12   :  { %v8540_v43 = vsel %vm8535_vm5, %v8512_v36, 0 }
 0xa13   :  { %v8643_v55 = vsub.f32 %v8543_v6, %v16498_v24  ;;  %v16503_v1 = vand.u32 4294901760, %v8540_v43 }
 0xa15   :  { %v8633_v0 = vsub.f32 %v8540_v43, %v16503_v1  ;;  %v8644_v52 = vand.u32 4294901760, %v8643_v55 }
 0xa17   :  { %v8634_v48 = vand.u32 4294901760, %v8633_v0  ;;  %v8645_v29 = vsub.f32 %v8643_v55, %v8644_v52 }
 0xa19   :  { %v8635_v45 = vsub.f32 %v8633_v0, %v8634_v48  ;;  %v8646_v47 = vand.u32 4294901760, %v8645_v29 }
 0xa1b   :  { %v8636_v54 = vand.u32 4294901760, %v8635_v45 }
 0xa1d   :  { %12320 = vmatmul.mubr.f32.gmra.mrb[8].mxu1 %v8636_v54 }
 0xa1e   :  { %12322 = vmatprep.mubr.msk.f32.mxu1 %vm13923_vm2, %v17259_v33 }
 0xa21   :  { %12323 = vmatmul.mubr.f32.gmra.mrb[10].mxu1 %v8646_v47 }
 0xa22   :  { %12349 = vmatprep.mubr.msk.f32.mxu1 %vm13923_vm2, %v17259_v33 }
 0xa25   :  { %12350 = vmatmul.mubr.f32.vlgmr.msra.gmra.mrb[6].mxu1 %v16450_v10 }
 0xa26   :  { %13416 = vmatpush3.bf16.msra.mxu1 %v13415_v32  ;;  %12352 = vmatprep.mubr.msk.f32.mxu1 %vm13923_vm2, %v17259_v33  ;;  %v17260_v32 = vpack.c.bf16 %v16317_v51, %v16314_v18  ;;  %v17272_v18 = vand.u32 4294901760, %v16324_v23  ;;  %v17273_v51 = vand.u32 4294901760, %v16326_v62 }
 0xa27   :  { %13417 = vmatprep.subr.bf16.mxu1 %v17258_v7 }
 0xa28   :  { %v13463_v22 = vpack.c.bf16 %v17273_v51, %v17272_v18 }
 0xa29   :  { %12353 = vmatmul.mubr.f32.gmra.mrb[8].mxu1 %v16503_v1 }
 0xa2a   :  { %13419 = vmatpush3.bf16.msra.mxu1 %v13418_v27  ;;  %12355 = vmatprep.mubr.msk.f32.mxu1 %vm13923_vm2, %v17259_v33  ;;  %v17262_v27 = vpack.c.bf16 %v16326_v62, %v16324_v23 }
 0xa2b   :  { %13420 = vmatprep.subr.bf16.mxu1 %v17258_v7 }
 0xa2d   :  { %12356 = vmatmul.mubr.f32.gmra.mrb[10].mxu1 %v16498_v24 }
 0xa2e   :  { %13422 = vmatpush3.bf16.msra.mxu1 %v17260_v32  ;;  %12382 = vmatprep.mubr.msk.f32.mxu1 %vm13923_vm2, %v17259_v33 }
 0xa2f   :  { %13423 = vmatprep.subr.bf16.mxu1 %v17258_v7 }
 0xa32   :  { %13425 = vmatpush3.bf16.msra.mxu1 %v17261_v46 }
 0xa33   :  { %13426 = vmatprep.subr.bf16.mxu1 %v17258_v7 }
 0xa36   :  { %13428 = vmatpush3.bf16.msra.mxu1 %v17262_v27 }
 0xa37   :  { %13429 = vmatprep.subr.bf16.mxu1 %v17258_v7 }
 0xa3a   :  { %13431 = vmatpush3.bf16.msra.mxu1 %v17263_v56 }
 0xa3b   :  { %13432 = vmatprep.subr.bf16.mxu1 %v17258_v7 }
 0xa3d   :  { %12383 = vmatmul.mubr.f32.vlgmr.msra.gmra.mrb[6].mxu1 %v16453_v30  ;;  %v13457_v30 = vpack.c.bf16 %v17269_v53, %v17268_v17 }
 0xa3e   :  { %13434 = vmatpush3.bf16.msra.mxu1 %v16310_v37  ;;  %12385 = vmatprep.mubr.msk.f32.mxu1 %vm13923_vm2, %v17259_v33 }
 0xa3f   :  { %13435 = vmatprep.subr.bf16.mxu1 %v17258_v7 }
 0xa41   :  { %12386 = vmatmul.mubr.f32.gmra.mrb[8].mxu1 %v8633_v0 }
 0xa42   :  { %13437 = vmatpush3.bf16.msra.mxu1 %v16312_v42  ;;  %12388 = vmatprep.mubr.msk.f32.mxu1 %vm13923_vm2, %v17259_v33 }
 0xa43   :  { %13438 = vmatprep.subr.bf16.mxu1 %v17258_v7 }
 0xa45   :  { %12389 = vmatmul.mubr.f32.gmra.mrb[10].mxu1 %v8643_v55 }
 0xa46   :  { %13440 = vmatpush3.bf16.msra.mxu1 %v16331_v44  ;;  %12415 = vmatprep.mubr.msk.f32.mxu1 %vm13923_vm2, %v17259_v33 }
 0xa47   :  { %13441 = vmatprep.subr.bf16.mxu1 %v17258_v7 }
 0xa4a   :  { %13443 = vmatpush3.bf16.msra.mxu1 %v16337_v8 }
 0xa4b   :  { %13444 = vmatprep.subr.bf16.mxu1 %v17258_v7 }
 0xa4e   :  { %13446 = vmatpush3.bf16.msra.mxu1 %v16341_v28 }
 0xa4f   :  { %13447 = vmatprep.subr.bf16.mxu1 %v17258_v7 }
 0xa52   :  { %13449 = vmatpush3.bf16.msra.mxu1 %v16345_v2 }
 0xa53   :  { %13450 = vmatprep.subr.bf16.mxu1 %v17258_v7 }
 0xa55   :  { %12416 = vmatmul.mubr.f32.vlgmr.msra.gmra.mrb[6].mxu1 %v8624_v41  ;;  %v13460_v41 = vpack.c.bf16 %v17271_v3, %v17270_v9 }
 0xa56   :  { %13452 = vmatpush3.bf16.msra.mxu1 %v13451_v15  ;;  %12418 = vmatprep.mubr.msk.f32.mxu1 %vm13923_vm2, %v17259_v33 }
 0xa57   :  { %13453 = vmatprep.subr.bf16.mxu1 %v17258_v7 }
 0xa59   :  { %12419 = vmatmul.mubr.f32.gmra.mrb[8].mxu1 %v8634_v48  ;;  %v10649_v48 = vld [vmem:[#allocation2 + $0x6] ss:$0 sm:$0xff] }
 0xa5a   :  { %13455 = vmatpush3.bf16.msra.mxu1 %v13454_v4  ;;  %12421 = vmatprep.mubr.msk.f32.mxu1 %vm13923_vm2, %v17259_v33 }
 0xa5b   :  { %13456 = vmatprep.subr.bf16.mxu1 %v17258_v7 }
 0xa5d   :  { %12422 = vmatmul.mubr.f32.gmra.mrb[10].mxu1 %v8644_v52 }
 0xa5e   :  { %13458 = vmatpush3.bf16.msra.mxu1 %v13457_v30  ;;  %12448 = vmatprep.mubr.msk.f32.mxu1 %vm13923_vm2, %v17259_v33 }
 0xa5f   :  { %13459 = vmatprep.subr.bf16.mxu1 %v17258_v7 }
 0xa62   :  { %13461 = vmatpush3.bf16.msra.mxu1 %v13460_v41 }
 0xa63   :  { %13462 = vmatprep.subr.bf16.mxu1 %v17258_v7 }
 0xa66   :  { %13464 = vmatpush3.bf16.msra.mxu1 %v13463_v22 }
 0xa67   :  { %13465 = vmatprep.subr.bf16.mxu1 %v17258_v7 }
 0xa6a   :  { %13467 = vmatpush3.bf16.msra.mxu1 %v13466_v21 }
 0xa6b   :  { %13468 = vmatprep.subr.bf16.mxu1 %v17258_v7 }
 0xa6d   :  { %12449 = vmatmul.mubr.f32.vlgmr.msra.gmra.mrb[6].mxu1 %v16450_v10 }
 0xa6e   :  { %13470 = vmatpush3.bf16.msra.mxu1 %v16310_v37  ;;  %12451 = vmatprep.mubr.msk.f32.mxu1 %vm13923_vm2, %v17259_v33 }
 0xa6f   :  { %13471 = vmatprep.subr.bf16.mxu1 %v17258_v7 }
 0xa71   :  { %12452 = vmatmul.mubr.f32.gmra.mrb[8].mxu1 %v16503_v1 }
 0xa72   :  { %13473 = vmatpush3.bf16.msra.mxu1 %v16312_v42  ;;  %12454 = vmatprep.mubr.msk.f32.mxu1 %vm13923_vm2, %v17259_v33 }
 0xa73   :  { %13474 = vmatprep.subr.bf16.mxu1 %v17258_v7 }
 0xa75   :  { %12455 = vmatmul.mubr.f32.gmra.mrb[10].mxu1 %v16498_v24 }
 0xa76   :  { %13476 = vmatpush3.bf16.msra.mxu1 %v16331_v44  ;;  %12481 = vmatprep.mubr.msk.f32.mxu1 %vm13923_vm2, %v17259_v33 }
 0xa77   :  { %13477 = vmatprep.subr.bf16.mxu1 %v17258_v7 }
 0xa78   :  { %v8533_v37 = vpop.permute.xlu1 %8532 }
 0xa7a   :  { %13479 = vmatpush3.bf16.msra.mxu1 %v16337_v8 }
 0xa7b   :  { %13480 = vmatprep.subr.bf16.mxu1 %v17258_v7 }
 0xa7e   :  { %13482 = vmatpush3.bf16.msra.mxu1 %v16341_v28 }
 0xa7f   :  { %13483 = vmatprep.subr.bf16.mxu1 %v17258_v7 }
 0xa82   :  { %13485 = vmatpush3.bf16.msra.mxu1 %v16345_v2 }
 0xa83   :  { %13486 = vmatprep.subr.bf16.mxu1 %v17258_v7 }
 0xa85   :  { %12482 = vmatmul.mubr.f32.vlgmr.msra.gmra.mrb[6].mxu1 %v16450_v10 }
 0xa86   :  { %12484 = vmatprep.mubr.msk.f32.mxu1 %vm13923_vm2, %v17259_v33 }
 0xa89   :  { %12485 = vmatmul.mubr.f32.gmra.mrb[8].mxu1 %v16503_v1 }
 0xa8a   :  { %12487 = vmatprep.mubr.msk.f32.mxu1 %vm13923_vm2, %v17259_v33 }
 0xa8d   :  { %12488 = vmatmul.mubr.f32.gmra.mrb[10].mxu1 %v16498_v24 }
 0xa8e   :  { %12498 = vmatprep.mubr.msk.f32.mxu1 %vm13923_vm2, %v17259_v33 }
 0xb58   :  { %v9204_v42 = vpop.f32.mrb[6].mxu1 }
 0xb59   :  { %v13603_v23 = vadd.f32 %v9204_v42, %v8533_v37  ;;  %v12483_v62 = vpop.f32.mrb[7].mxu1 }
 0xb5b   :  { %v9221_v57 = vsel %vm330_vm0, %v13603_v23, 0.0 }
 0xb5c   :  { %9222 = vadd.xlane.f32.xlu1 %v9221_v57  ;;  %v9210_v44 = vpop.f32.mrb[8].mxu1 }
 0xb5d   :  { %v13604_v50 = vadd.f32 %v9210_v44, %v8533_v37  ;;  %v12486_v8 = vpop.f32.mrb[9].mxu1 }
 0xb5f   :  { %v9224_v28 = vsel %vm330_vm0, %v13604_v50, 0.0 }
 0xb60   :  { %9225 = vadd.xlane.f32.xlu0 %v9224_v28  ;;  %v9216_v2 = vpop.f32.mrb[10].mxu1 }
 0xb61   :  { %v13605_v10 = vadd.f32 %v9216_v2, %v8533_v37  ;;  %v12489_v61 = vpop.f32.mrb[11].mxu1 }
 0xb63   :  { %v9227_v38 = vsel %vm337_vm1, %v13605_v10, 0.0 }
 0xb64   :  { %9228 = vadd.xlane.f32.xlu0 %v9227_v38 }
 0xbe9   :  { %v9223_v35 = vpop.xlane.xlu1 %9222 }
 0xbea   :  { %v9230_v26 = vmul.f32 0.03125, %v9223_v35 }
 0xbec   :  { %v9233_v34 = vsub.f32 %v13603_v23, %v9230_v26 }
 0xbed   :  { %v9226_v31 = vpop.xlane.xlu0 %9225 }
 0xbee   :  { %v9231_v40 = vmul.f32 0.03125, %v9226_v31  ;;  %v9236_v43 = vmul.f32 %v9233_v34, %v9233_v34 }
 0xbf0   :  { %v9234_v20 = vsub.f32 %v13604_v50, %v9231_v40  ;;  %v9239_v1 = vsel %vm330_vm0, %v9236_v43, 0.0 }
 0xbf1   :  { %v9229_v11 = vpop.xlane.xlu0 %9228 }
 0xbf2   :  { %v9232_v60 = vmul.f32 0.03125, %v9229_v11  ;;  %v9237_v6 = vmul.f32 %v9234_v20, %v9234_v20 }
 0xbf4   :  { %v9235_v24 = vsub.f32 %v13605_v10, %v9232_v60  ;;  %v9242_v36 = vsel %vm330_vm0, %v9237_v6, 0.0 }
 0xbf5   :  { %9243 = vadd.xlane.f32.xlu0 %v9242_v36 }
 0xbf6   :  { %v9238_v55 = vmul.f32 %v9235_v24, %v9235_v24 }
 0xbf8   :  { %v9245_v0 = vsel %vm337_vm1, %v9238_v55, 0.0  ;;  %vm9528_vm1 = vcmask 253952  }
 0xbf9   :  { %9240 = vadd.xlane.f32.xlu0 %v9239_v1  ;;  %9246 = vadd.xlane.f32.xlu1 %v9245_v0 }
 0xc0a   :  { %9565 = vrot.lane.b32.xlu1 %v16298_v49, %s13925_s0 }
 0xc0e   :  { %9567 = vrot.lane.b32.xlu1 %v16300_v19, %s13925_s0 }
 0xc0f   :  { %9268 = vrot.lane.b32.xlu0 %v10649_v48, %s13926_s3 }
 0xc12   :  { %9569 = vrot.lane.b32.xlu1 %v16302_v13, %s13925_s0 }
 0xc13   :  { %9571 = vrot.lane.b32.xlu0 %v16306_v63, %s13925_s0 }
 0xc82   :  { %v9244_v52 = vpop.xlane.xlu0 %9243 }
 0xc83   :  { %v9249_v45 = vmul.f32 0.03125, %v9244_v52 }
 0xc85   :  { %v9252_v54 = vadd.f32 1e-05, %v9249_v45 }
 0xc86   :  { %v9247_v29 = vpop.xlane.xlu1 %9246  ;;  %v9241_v47 = vpop.xlane.xlu0 %9240 }
 0xc87   :  { %13863 = vrsqrt.f32 %v9252_v54  ;;  %v9250_v32 = vmul.f32 0.03125, %v9247_v29  ;;  %v9248_v49 = vmul.f32 0.03125, %v9241_v47 }
 0xc89   :  { %v9253_v46 = vadd.f32 1e-05, %v9250_v32  ;;  %v9251_v27 = vadd.f32 1e-05, %v9248_v49 }
 0xc8a   :  { %v9269_v56 = vpop.permute.xlu0 %9268  ;;  %v9566_v19 = vpop.permute.xlu1 %9565 }
 0xc8b   :  { %13865 = vrsqrt.f32 %v9253_v46  ;;  %v9580_v16 = vand.u32 4294901760, %v9566_v19 }
 0xc8c   :  { %13867 = vrsqrt.f32 %v9251_v27 }
 0xc8d   :  { %v16644_v14 = vsub.f32 %v9566_v19, %v9580_v16 }
 0xc8e   :  { %v9568_v13 = vpop.permute.xlu1 %9567  ;;  %v9572_v15 = vpop.permute.xlu0 %9571 }
 0xc8f   :  { %v9661_v63 = vand.u32 4294901760, %v16644_v14  ;;  %v9583_v39 = vand.u32 4294901760, %v9568_v13  ;;  %v9589_v58 = vand.u32 4294901760, %v9572_v15 }
 0xc91   :  { %v13864_v4 = vpop.eup %13863  ;;  %v9662_v17 = vsub.f32 %v16644_v14, %v9661_v63  ;;  %v16650_v53 = vpack.c.bf16 %v9583_v39, %v9580_v16  ;;  %v16652_v30 = vsub.f32 %v9568_v13, %v9583_v39  ;;  %v16655_v51 = vsub.f32 %v9572_v15, %v9589_v58 }
 0xc92   :  { %v9258_v9 = vmul.f32 %v13864_v4, %v9234_v20  ;;  %v9570_v3 = vpop.permute.xlu1 %9569 }
 0xc93   :  { %v9668_v41 = vand.u32 4294901760, %v16652_v30  ;;  %v9586_v18 = vand.u32 4294901760, %v9570_v3  ;;  %13488 = vmatpush3.bf16.msra.mxu1 %v16650_v53  ;;  %v9663_v59 = vand.u32 4294901760, %v9662_v17  ;;  %v9682_v28 = vand.u32 4294901760, %v16655_v51 }
 0xc94   :  { %v9265_v22 = vmul.f32 %v10649_v48, %v9258_v9  ;;  %13489 = vmatprep.subr.bf16.mxu1 %v17258_v7 }
 0xc95   :  { %v13866_v12 = vpop.eup %13865  ;;  %v9669_v21 = vsub.f32 %v16652_v30, %v9668_v41  ;;  %v16662_v37 = vsub.f32 %v9570_v3, %v9586_v18  ;;  %v16664_v42 = vpack.c.bf16 %v9589_v58, %v9586_v18  ;;  %v9683_v60 = vsub.f32 %v16655_v51, %v9682_v28 }
 0xc96   :  { %v13868_v23 = vpop.eup %13867  ;;  %v9259_v62 = vmul.f32 %v13866_v12, %v9235_v24  ;;  %v9272_v57 = vadd.f32 %v9269_v56, %v9265_v22 }
 0xc97   :  { %v9257_v44 = vmul.f32 %v13868_v23, %v9233_v34  ;;  %v9670_v50 = vand.u32 4294901760, %v9669_v21  ;;  %v9675_v8 = vand.u32 4294901760, %v16662_v37  ;;  %13491 = vmatpush3.bf16.msra.mxu1 %v16664_v42  ;;  %v9684_v49 = vand.u32 4294901760, %v9683_v60 }
 0xc98   :  { %v9266_v2 = vmul.f32 %v10649_v48, %v9259_v62  ;;  %v9326_v10 = vcombine.high %v9272_v57, %v9272_v57  ;;  %v9333_v61 = vrot.slane %v9272_v57, %v13958_v5 }
 0xc99   :  { %v9264_v38 = vmul.f32 %v10649_v48, %v9257_v44  ;;  %v13493_v35 = vpack.c.bf16 %v9670_v50, %v9663_v59  ;;  %v9676_v11 = vsub.f32 %v16662_v37, %v9675_v8 }
 0xc9a   :  { %v9273_v26 = vadd.f32 %v9269_v56, %v9266_v2  ;;  %v9340_v31 = vrot.slane %v9326_v10, %v13958_v5  ;;  %v9341_v40 = vcombine.high %v9333_v61, %v9333_v61  ;;  %v9349_v20 = vrot.slane %v9333_v61, %v13958_v5 }
 0xc9b   :  { %v9271_v34 = vadd.f32 %v9269_v56, %v9264_v38  ;;  %13494 = vmatpush3.bf16.msra.mxu0 %v13493_v35  ;;  %v9677_v19 = vand.u32 4294901760, %v9676_v11 }
 0xc9c   :  { %v9342_v6 = vcombine.high %v9340_v31, %v9340_v31  ;;  %v9356_v24 = vrot.slane %v9340_v31, %v13958_v5  ;;  %v9363_v36 = vrot.slane %v9341_v40, %v13958_v5  ;;  %v9371_v43 = vcombine.high %v9349_v20, %v9349_v20  ;;  %13495 = vmatprep.subr.bf16.mxu0 %v17258_v7 }
 0xc9d   :  { %v9277_v55 = vcombine.high %v9271_v34, %v9271_v34  ;;  %v9284_v1 = vrot.slane %v9271_v34, %v13958_v5  ;;  %v9381_v0 = vrot.slane %v9273_v26, %v13958_v5  ;;  %v13496_v61 = vpack.c.bf16 %v9684_v49, %v9677_v19 }
 0xc9e   :  { %v9370_v48 = vrot.slane %v9342_v6, %v13958_v5  ;;  %v9372_v52 = vcombine.high %v9356_v24, %v9356_v24  ;;  %v9373_v45 = vcombine.high %v9363_v36, %v9363_v36  ;;  %v9460_v54 = vcombine.low %v9363_v36, %v9371_v43 }
 0xc9f   :  { %v9291_v29 = vrot.slane %v9277_v55, %v13958_v5  ;;  %v9292_v47 = vcombine.high %v9284_v1, %v9284_v1  ;;  %v9382_v32 = vcombine.high %v9381_v0, %v9381_v0  ;;  %v9389_v27 = vrot.slane %v9381_v0, %v13958_v5  ;;  %13497 = vmatpush3.bf16.msra.mxu0 %v13496_v61 }
 0xca0   :  { %v9374_v46 = vcombine.high %v9370_v48, %v9370_v48  ;;  %v9461_v56 = vcombine.low %v9373_v45, %v9356_v24  ;;  %v9300_v13 = vrot.slane %v9284_v1, %v13958_v5  ;;  %v9462_v58 = vcombine.low %v9370_v48, %v9372_v52  ;;  %13498 = vmatprep.subr.bf16.mxu0 %v17258_v7 }
 0xca1   :  { %v9293_v16 = vcombine.high %v9291_v29, %v9291_v29  ;;  %v9314_v15 = vrot.slane %v9292_v47, %v13958_v5  ;;  %v9396_v39 = vrot.slane %v9382_v32, %v13958_v5  ;;  %v9470_v17 = vrot.slane %v9460_v54, %v13958_v5 }
 0xca2   :  { %v9463_v4 = vcombine.low %v9374_v46, %v9389_v27  ;;  %v9477_v9 = vrot.slane %v9461_v56, %v13958_v5  ;;  %v9307_v3 = vrot.slane %v9291_v29, %v13958_v5  ;;  %v9484_v59 = vrot.slane %v9462_v58, %v13958_v5 }
 0xca3   :  { %v9321_v18 = vrot.slane %v9293_v16, %v13958_v5  ;;  %v9397_v22 = vcombine.low %v9300_v13, %v9314_v15  ;;  %v10650_v12 = vcombine.high %v9300_v13, %v9314_v15  ;;  %v9515_v62 = vrot.slane %v9396_v39, %v13958_v5 }
 0xca4   :  { %v9491_v21 = vrot.slane %v9463_v4, %v13958_v5  ;;  %v9492_v23 = vcombine.low %v9470_v17, %v9477_v9  ;;  %v9452_v31 = vrot.slane %v9349_v20, %v13958_v5  ;;  %v13499_v9 = vpack.c.bf16 %v16652_v30, %v16644_v14  ;;  %v10065_v14 = vld [vmem:[#allocation2 + $0x1e0] sm:$0xff]  ;;  %v10067_v30 = vld [vmem:[#allocation2 + $0x1f0] sm:$0xff] }
 0xca5   :  { %v9399_v57 = vcombine.low %v9307_v3, %v9321_v18  ;;  %v10651_v44 = vcombine.high %v9307_v3, %v9321_v18  ;;  %v9407_v50 = vrot.slane %v9397_v22, %v13958_v5  ;;  %v9414_v2 = vrot.slane %v10650_v12, %v13958_v5 }
 0xca6   :  { %v9493_v10 = vcombine.low %v9484_v59, %v9491_v21  ;;  %v9500_v40 = vrot.slane %v9492_v23, %v13958_v5  ;;  %v9522_v11 = vrot.slane %v9515_v62, %v13958_v5  ;;  %v9459_v43 = vrot.slane %v9452_v31, %v13958_v5 }
 0xca7   :  { %v9421_v38 = vrot.slane %v9399_v57, %v13958_v5  ;;  %v9428_v35 = vrot.slane %v10651_v44, %v13958_v5  ;;  %v9429_v26 = vcombine.low %v9407_v50, %v9414_v2  ;;  %v13502_v22 = vpack.c.bf16 %v16655_v51, %v16662_v37  ;;  %v10068_v37 = vld [vmem:[#allocation2 + $0x1f8] sm:$0xff]  ;;  %v10071_v50 = vld [vmem:[#allocation2 + $0x210] sm:$0xff] }
 0xca8   :  { %v9507_v34 = vrot.slane %v9493_v10, %v13958_v5  ;;  %v9538_v55 = vsel %vm9528_vm1, %v9522_v11, 0.0  ;;  %v9529_v52 = vsel %vm9528_vm1, %v9459_v43, 0.0  ;;  %v13511_v21 = vpack.c.bf16 %v9668_v41, %v9661_v63  ;;  %v10066_v63 = vld [vmem:[#allocation2 + $0x1e8] sm:$0xff] }
 0xca9   :  { %v9430_v60 = vcombine.low %v9421_v38, %v9428_v35  ;;  %v9437_v24 = vrot.slane %v9429_v26, %v13958_v5  ;;  %v13514_v23 = vpack.c.bf16 %v9682_v28, %v9675_v8  ;;  %v10082_v41 = vand.u32 4294901760, %v10065_v14  ;;  %v10069_v8 = vld [vmem:[#allocation2 + $0x200] sm:$0xff]  ;;  %v10070_v28 = vld [vmem:[#allocation2 + $0x208] sm:$0xff] }
 0xcaa   :  { %v9508_v6 = vcombine.low %v9500_v40, %v9507_v34  ;;  %v10085_v51 = vand.u32 4294901760, %v10066_v63  ;;  %v10091_v62 = vand.u32 4294901760, %v10068_v37  ;;  %v10094_v57 = vand.u32 4294901760, %v10069_v8 }
 0xcab   :  { %v9444_v36 = vrot.slane %v9430_v60, %v13958_v5  ;;  %v10097_v44 = vand.u32 4294901760, %v10070_v28  ;;  %v16748_v10 = vsub.f32 %v10065_v14, %v10082_v41  ;;  %v10100_v34 = vand.u32 4294901760, %v10071_v50 }
 0xcac   :  { %v9537_v20 = vsel %vm330_vm0, %v9508_v6, 0.0  ;;  %v16746_v2 = vpack.c.bf16 %v10085_v51, %v10082_v41  ;;  %v16750_v61 = vsub.f32 %v10066_v63, %v10085_v51  ;;  %v16754_v35 = vsub.f32 %v10068_v37, %v10091_v62 }
 0xcad   :  { %v9445_v1 = vcombine.low %v9437_v24, %v9444_v36  ;;  %v9539_v0 = vadd.f32 %v9538_v55, %v9537_v20  ;;  %v16756_v26 = vsub.f32 %v10069_v8, %v10094_v57  ;;  %v16761_v40 = vsub.f32 %v10070_v28, %v10097_v44 }
 0xcae   :  { %v10167_v60 = vand.u32 4294901760, %v16748_v10  ;;  %v10174_v6 = vand.u32 4294901760, %v16750_v61  ;;  %v16766_v24 = vsub.f32 %v10071_v50, %v10100_v34 }
 0xcaf   :  { %v9527_v48 = vsel %vm330_vm0, %v9445_v1, 0.0  ;;  %v9540_v45 = vrot.slane %v9539_v0, 4  ;;  %v10188_v1 = vand.u32 4294901760, %v16754_v35 }
 0xcb0   :  { %v9530_v54 = vadd.f32 %v9529_v52, %v9527_v48  ;;  %v10168_v43 = vsub.f32 %v16748_v10, %v10167_v60  ;;  %v10175_v20 = vsub.f32 %v16750_v61, %v10174_v6 }
 0xcb1   :  { %v9541_v29 = vadd.f32 %v9540_v45, %v9539_v0  ;;  %v16775_v0 = vpack.c.bf16 %v10097_v44, %v10094_v57 }
 0xcb2   :  { %v9531_v47 = vrot.slane %v9530_v54, 4  ;;  %v10169_v48 = vand.u32 4294901760, %v10168_v43  ;;  %v10176_v52 = vand.u32 4294901760, %v10175_v20 }
 0xcb3   :  { %v9542_v32 = vrot.slane %v9541_v29, 2 }
 0xcb4   :  { %v9532_v49 = vadd.f32 %v9531_v47, %v9530_v54  ;;  %v10189_v54 = vsub.f32 %v16754_v35, %v10188_v1 }
 0xcb5   :  { %v9543_v46 = vadd.f32 %v9542_v32, %v9541_v29  ;;  %v13535_v29 = vpack.c.bf16 %v10176_v52, %v10169_v48 }
 0xcb6   :  { %v9533_v27 = vrot.slane %v9532_v49, 2  ;;  %v10190_v32 = vand.u32 4294901760, %v10189_v54 }
 0xcb7   :  { %v9544_v56 = vrot.slane %v9543_v46, 1 }
 0xcb8   :  { %v9534_v19 = vadd.f32 %v9533_v27, %v9532_v49  ;;  %v10195_v49 = vand.u32 4294901760, %v16756_v26  ;;  %v10202_v27 = vand.u32 4294901760, %v16761_v40 }
 0xcb9   :  { %v9545_v5 = vadd.f32 %v9544_v56, %v9543_v46 }
 0xcba   :  { %v9535_v16 = vrot.slane %v9534_v19, 1  ;;  %v13577_v63 = vpack.c.bf16 %v10202_v27, %v10195_v49 }
 0xcbb   :  { %v9548_v39 = vmul.f32 0.11111111, %v9545_v5 }
 0xcbc   :  { %v9536_v13 = vadd.f32 %v9535_v16, %v9534_v19  ;;  %v10196_v19 = vsub.f32 %v16756_v26, %v10195_v49  ;;  %v10203_v16 = vsub.f32 %v16761_v40, %v10202_v27 }
 0xcbe   :  { %v9547_v15 = vmul.f32 0.11111111, %v9536_v13  ;;  %v10197_v5 = vand.u32 4294901760, %v10196_v19  ;;  %v10209_v13 = vand.u32 4294901760, %v16766_v24 }
 0xcc0   :  { %v9560_v58 = vsel %vm4232_vm8, %v9548_v39, %v9547_v15  ;;  %v10204_v39 = vand.u32 4294901760, %v10203_v16 }
 0xcc1   :  { %v9577_v4 = vsel %vm330_vm0, %v9560_v58, 0  ;;  %v10210_v58 = vsub.f32 %v16766_v24, %v10209_v13 }
 0xcc2   :  { %v9648_v17 = vand.u32 4294901760, %v9577_v4 }
 0xcc4   :  { %v9649_v3 = vsub.f32 %v9577_v4, %v9648_v17  ;;  %12510 = vmatmul.mubr.f32.vlgmr.msra.gmra.mrb[16].mxu0 %v9648_v17 }
 0xcc5   :  { %13500 = vmatpush3.bf16.msra.mxu0 %v13499_v9  ;;  %12520 = vmatprep.mubr.msk.f32.mxu0 %vm13923_vm2, %v17259_v33  ;;  %v10211_v9 = vand.u32 4294901760, %v10210_v58 }
 0xcc6   :  { %v9650_v18 = vand.u32 4294901760, %v9649_v3  ;;  %13501 = vmatprep.subr.bf16.mxu0 %v17258_v7 }
 0xcc8   :  { %v9651_v12 = vsub.f32 %v9649_v3, %v9650_v18 }
 0xcc9   :  { %13503 = vmatpush3.bf16.msra.mxu0 %v13502_v22  ;;  %v13547_v22 = vpack.c.bf16 %v16750_v61, %v16748_v10 }
 0xcca   :  { %13504 = vmatprep.subr.bf16.mxu0 %v17258_v7  ;;  %v9652_v59 = vand.u32 4294901760, %v9651_v12 }
 0xccc   :  { %12499 = vmatmul.mubr.f32.vlgmr.msra.gmra.mrb[12].mxu1 %v9652_v59  ;;  %12521 = vmatmul.mubr.f32.vlgmr.msra.gmra.mrb[16].mxu0 %v9649_v3  ;;  %v13553_v59 = vpack.c.bf16 %v16761_v40, %v16756_v26 }
 0xccd   :  { %13506 = vmatpush3.bf16.msra.mxu0 %v16650_v53  ;;  %12531 = vmatprep.mubr.msk.f32.mxu0 %vm13923_vm2, %v17259_v33 }
 0xcce   :  { %13507 = vmatprep.subr.bf16.mxu0 %v17258_v7 }
 0xcd1   :  { %13509 = vmatpush3.bf16.msra.mxu0 %v16664_v42 }
 0xcd2   :  { %13510 = vmatprep.subr.bf16.mxu0 %v17258_v7 }
 0xcd4   :  { %12532 = vmatmul.mubr.f32.vlgmr.msra.gmra.mrb[16].mxu0 %v9650_v18 }
 0xcd5   :  { %13512 = vmatpush3.bf16.msra.mxu0 %v13511_v21  ;;  %12542 = vmatprep.mubr.msk.f32.mxu0 %vm13923_vm2, %v17259_v33 }
 0xcd6   :  { %13513 = vmatprep.subr.bf16.mxu0 %v17258_v7 }
 0xcd9   :  { %13515 = vmatpush3.bf16.msra.mxu0 %v13514_v23  ;;  %v13571_v23 = vpack.c.bf16 %v10174_v6, %v10167_v60 }
 0xcda   :  { %13516 = vmatprep.subr.bf16.mxu0 %v17258_v7 }
 0xcdc   :  { %12543 = vmatmul.mubr.f32.vlgmr.msra.gmra.mrb[16].mxu0 %v9648_v17 }
 0xcdd   :  { %13518 = vmatpush3.bf16.msra.mxu0 %v16650_v53  ;;  %12553 = vmatprep.mubr.msk.f32.mxu0 %vm13923_vm2, %v17259_v33  ;;  %v10088_v53 = vand.u32 4294901760, %v10067_v30 }
 0xcde   :  { %13519 = vmatprep.subr.bf16.mxu0 %v17258_v7 }
 0xcdf   :  { %v16752_v38 = vsub.f32 %v10067_v30, %v10088_v53  ;;  %v16759_v31 = vpack.c.bf16 %v10091_v62, %v10088_v53 }
 0xce1   :  { %13521 = vmatpush3.bf16.msra.mxu0 %v16664_v42  ;;  %v10072_v42 = vld [vmem:[#allocation2 + $0x218] sm:$0xff]  ;;  %v10181_v55 = vand.u32 4294901760, %v16752_v38  ;;  %v13550_v12 = vpack.c.bf16 %v16754_v35, %v16752_v38 }
 0xce2   :  { %13522 = vmatprep.subr.bf16.mxu0 %v17258_v7  ;;  %v10103_v11 = vand.u32 4294901760, %v10072_v42 }
 0xce3   :  { %v10182_v45 = vsub.f32 %v16752_v38, %v10181_v55  ;;  %v13574_v14 = vpack.c.bf16 %v10188_v1, %v10181_v55 }
 0xce4   :  { %12554 = vmatmul.mubr.f32.vlgmr.msra.gmra.mrb[16].mxu0 %v9648_v17  ;;  %v16768_v36 = vsub.f32 %v10072_v42, %v10103_v11  ;;  %v16782_v46 = vpack.c.bf16 %v10103_v11, %v10100_v34  ;;  %v13541_v17 = vpack.c.bf16 %v10204_v39, %v10197_v5 }
 0xce5   :  { %12572 = vmatprep.mubr.msk.f32.mxu0 %vm13923_vm2, %v17259_v33  ;;  %13524 = vmatpush3.bf16.msra.mxu0 %v16746_v2  ;;  %v10183_v47 = vand.u32 4294901760, %v10182_v45 }
 0xce6   :  { %13525 = vmatprep.subr.bf16.mxu0 %v17258_v7  ;;  %v10216_v15 = vand.u32 4294901760, %v16768_v36  ;;  %v13556_v21 = vpack.c.bf16 %v16768_v36, %v16766_v24 }
 0xce7   :  { %v13538_v56 = vpack.c.bf16 %v10190_v32, %v10183_v47 }
 0xce8   :  { %v10217_v4 = vsub.f32 %v16768_v36, %v10216_v15  ;;  %v13580_v30 = vpack.c.bf16 %v10216_v15, %v10209_v13 }
 0xce9   :  { %13527 = vmatpush3.bf16.msra.mxu0 %v16759_v31 }
 0xcea   :  { %13528 = vmatprep.subr.bf16.mxu0 %v17258_v7  ;;  %v10218_v3 = vand.u32 4294901760, %v10217_v4 }
 0xcec   :  { %v13544_v18 = vpack.c.bf16 %v10218_v3, %v10211_v9 }
 0xced   :  { %13530 = vmatpush3.bf16.msra.mxu0 %v16775_v0 }
 0xcee   :  { %13531 = vmatprep.subr.bf16.mxu0 %v17258_v7 }
 0xcf1   :  { %13533 = vmatpush3.bf16.msra.mxu0 %v16782_v46 }
 0xcf2   :  { %13534 = vmatprep.subr.bf16.mxu0 %v17258_v7 }
 0xd9f   :  { %v9654_v41 = vpop.f32.mrb[12].mxu1 }
 0xda0   :  { %v12500_v51 = vpop.f32.mrb[13].mxu1  ;;  %v9655_v37 = vadd.f32 %v16492_v25, %v9654_v41  ;;  %v10653_v25 = vld [vmem:[#allocation2 + $0x3] ss:$0 sm:$0xff] }
 0xdb7   :  { %v10060_v53 = vpop.f32.mrb[16].mxu0 }
 0xdb8   :  { %v13607_v8 = vadd.f32 %v10060_v53, %v9655_v37  ;;  %v12555_v28 = vpop.f32.mrb[17].mxu0 }
 0xdba   :  { %v10064_v62 = vmax.f32 %v13607_v8, 0.0 }
 0xdbc   :  { %v10079_v57 = vsel %vm1562_vm7, %v10064_v62, 0 }
 0xdbd   :  { %v10154_v44 = vand.u32 4294901760, %v10079_v57 }
 0xdbf   :  { %v10155_v50 = vsub.f32 %v10079_v57, %v10154_v44 }
 0xdc1   :  { %v10156_v42 = vand.u32 4294901760, %v10155_v50 }
 0xdc3   :  { %v10157_v10 = vsub.f32 %v10155_v50, %v10156_v42 }
 0xdc5   :  { %v10158_v61 = vand.u32 4294901760, %v10157_v10 }
 0xdc7   :  { %12573 = vmatmul.mubr.f32.vlgmr.msra.gmra.mrb[18].mxu0 %v10158_v61 }
 0xdc8   :  { %13536 = vmatpush3.bf16.msra.mxu0 %v13535_v29  ;;  %12591 = vmatprep.mubr.msk.f32.mxu0 %vm13923_vm2, %v17259_v33 }
 0xdc9   :  { %13537 = vmatprep.subr.bf16.mxu0 %v17258_v7 }
 0xdcc   :  { %13539 = vmatpush3.bf16.msra.mxu0 %v13538_v56 }
 0xdcd   :  { %13540 = vmatprep.subr.bf16.mxu0 %v17258_v7 }
 0xdd0   :  { %13542 = vmatpush3.bf16.msra.mxu0 %v13541_v17 }
 0xdd1   :  { %13543 = vmatprep.subr.bf16.mxu0 %v17258_v7 }
 0xdd4   :  { %13545 = vmatpush3.bf16.msra.mxu0 %v13544_v18 }
 0xdd5   :  { %13546 = vmatprep.subr.bf16.mxu0 %v17258_v7 }
 0xdd7   :  { %12592 = vmatmul.mubr.f32.vlgmr.msra.gmra.mrb[18].mxu0 %v10154_v44 }
 0xdd8   :  { %13548 = vmatpush3.bf16.msra.mxu0 %v13547_v22  ;;  %12610 = vmatprep.mubr.msk.f32.mxu0 %vm13923_vm2, %v17259_v33 }
 0xdd9   :  { %13549 = vmatprep.subr.bf16.mxu0 %v17258_v7 }
 0xddc   :  { %13551 = vmatpush3.bf16.msra.mxu0 %v13550_v12 }
 0xddd   :  { %13552 = vmatprep.subr.bf16.mxu0 %v17258_v7 }
 0xde0   :  { %13554 = vmatpush3.bf16.msra.mxu0 %v13553_v59 }
 0xde1   :  { %13555 = vmatprep.subr.bf16.mxu0 %v17258_v7 }
 0xde4   :  { %13557 = vmatpush3.bf16.msra.mxu0 %v13556_v21 }
 0xde5   :  { %13558 = vmatprep.subr.bf16.mxu0 %v17258_v7 }
 0xde7   :  { %12611 = vmatmul.mubr.f32.vlgmr.msra.gmra.mrb[18].mxu0 %v10155_v50 }
 0xde8   :  { %13560 = vmatpush3.bf16.msra.mxu0 %v16746_v2  ;;  %12629 = vmatprep.mubr.msk.f32.mxu0 %vm13923_vm2, %v17259_v33 }
 0xde9   :  { %13561 = vmatprep.subr.bf16.mxu0 %v17258_v7 }
 0xdec   :  { %13563 = vmatpush3.bf16.msra.mxu0 %v16759_v31 }
 0xded   :  { %13564 = vmatprep.subr.bf16.mxu0 %v17258_v7 }
 0xdf0   :  { %13566 = vmatpush3.bf16.msra.mxu0 %v16775_v0 }
 0xdf1   :  { %13567 = vmatprep.subr.bf16.mxu0 %v17258_v7 }
 0xdf4   :  { %13569 = vmatpush3.bf16.msra.mxu0 %v16782_v46 }
 0xdf5   :  { %13570 = vmatprep.subr.bf16.mxu0 %v17258_v7 }
 0xdf7   :  { %12630 = vmatmul.mubr.f32.vlgmr.msra.gmra.mrb[18].mxu0 %v10156_v42 }
 0xdf8   :  { %13572 = vmatpush3.bf16.msra.mxu0 %v13571_v23  ;;  %12648 = vmatprep.mubr.msk.f32.mxu0 %vm13923_vm2, %v17259_v33 }
 0xdf9   :  { %13573 = vmatprep.subr.bf16.mxu0 %v17258_v7 }
 0xdfc   :  { %13575 = vmatpush3.bf16.msra.mxu0 %v13574_v14 }
 0xdfd   :  { %13576 = vmatprep.subr.bf16.mxu0 %v17258_v7 }
 0xe00   :  { %13578 = vmatpush3.bf16.msra.mxu0 %v13577_v63 }
 0xe01   :  { %13579 = vmatprep.subr.bf16.mxu0 %v17258_v7 }
 0xe04   :  { %13581 = vmatpush3.bf16.msra.mxu0 %v13580_v30 }
 0xe05   :  { %13582 = vmatprep.subr.bf16.mxu0 %v17258_v7 }
 0xe07   :  { %12649 = vmatmul.mubr.f32.vlgmr.msra.gmra.mrb[18].mxu0 %v10154_v44 }
 0xe08   :  { %13584 = vmatpush3.bf16.msra.mxu0 %v16746_v2  ;;  %12667 = vmatprep.mubr.msk.f32.mxu0 %vm13923_vm2, %v17259_v33 }
 0xe09   :  { %13585 = vmatprep.subr.bf16.mxu0 %v17258_v7 }
 0xe0c   :  { %13587 = vmatpush3.bf16.msra.mxu0 %v16759_v31 }
 0xe0d   :  { %13588 = vmatprep.subr.bf16.mxu0 %v17258_v7 }
 0xe10   :  { %13590 = vmatpush3.bf16.msra.mxu0 %v16775_v0 }
 0xe11   :  { %13591 = vmatprep.subr.bf16.mxu0 %v17258_v7 }
 0xe14   :  { %13593 = vmatpush3.bf16.msra.mxu0 %v16782_v46 }
 0xe17   :  { %12668 = vmatmul.mubr.f32.vlgmr.msra.gmra.mrb[18].mxu0 %v10154_v44 }
 0xeea   :  { %v10614_v2 = vpop.f32.mrb[18].mxu0 }
 0xeeb   :  { %v13608_v38 = vadd.f32 %v10653_v25, %v10614_v2  ;;  %v12669_v35 = vpop.f32.mrb[19].mxu0 }
 0xeed   :  { %10618 = vst [vmem:[#allocation5] sm:$0x3] %v13608_v38 }
 0xeee   :  { %13902 = shalt.err (!%p13899_p12)
}
 0xeef   :  { %s13903_s9 = scalar_lea.hbm %s16855_s2, 32 }
 0xef0   :  { %p13904_p13 = scmp.ne.s32.totalorder %s16855_s2, %s13903_s9  ;;  %p13907_p0 = scmp.lt.u32.totalorder %s13903_s9, %s16855_s2 }
 0xef2   :  { %p13909_p1 = pnand %p13907_p0, %p13904_p13 }
 0xef4   :  { %13912 = shalt.err (!%p13909_p1)
}
 0xef5   :  { %10628 = dma.vmem_to_hbm [thread:$0]  %s10626_s5, 32, %s16855_s2, [#allocation4]  }
 0xef6   :  { %13915 = dma.done.wait [#allocation4], 32  }
 0xef7   :  { %13916 = vsyncadd [#allocation4], 4294967264 }
 0xef8   :  { %10632 = vsyncpa [#allocation3], 1 }
 0xef9   :  { %10633 = vsyncpa [#allocation4], 1 }

</bundles_post_ra>
